<compile_context>
chip_gen: v5e
topology: v5e:2x2
jax: 0.10.0
libtpu: 0.0.40
codegen_flags: <defaults>
</compile_context>

<pallas_src>
import jax
import jax.numpy as jnp
from jax.experimental import pallas as pl
from jax.experimental.pallas import tpu as pltpu

CFG = dict(d_model=32, d_ff=64, n_heads=4, d_kv=8, n_layers=2, vocab=64,
           rel_buckets=32, rel_max_dist=128, n_classes=3, clf_hidden=300)

LANE = 128      # transformer weight-slab lane width
V_PAD = 128     # vocab padded to 128 lanes (lane-dense LM-logit store)
CLF_PAD = 384   # classifier hidden width padded 300 -> 384 (3 * 128)
W2_ROWS = 128   # classifier output lanes padded num_classes -> 128


# --------------------------- host-side (JAX) helpers ---------------------------

def relative_position_bucket(rel_pos, bidirectional, num_buckets, max_distance):
    rel_buckets = jnp.zeros_like(rel_pos)
    if bidirectional:
        num_buckets //= 2
        rel_buckets = rel_buckets + (rel_pos > 0).astype(jnp.int32) * num_buckets
        rel_pos = jnp.abs(rel_pos)
    else:
        rel_pos = -jnp.minimum(rel_pos, 0)
    max_exact = num_buckets // 2
    is_small = rel_pos < max_exact
    rp_f = jnp.maximum(rel_pos, 1).astype(jnp.float32)
    rel_if_large = max_exact + (
        jnp.log(rp_f / max_exact) / jnp.log(max_distance / max_exact)
        * (num_buckets - max_exact)).astype(jnp.int32)
    rel_if_large = jnp.minimum(rel_if_large, num_buckets - 1)
    return rel_buckets + jnp.where(is_small, rel_pos, rel_if_large)


def pack_pos_bias(rel_emb, qlen, klen, bidirectional, causal=False):
    """Relative position bias packed into the block-diagonal score layout
    [qlen, H*klen] (lane index = h*klen + j) used inside the kernel."""
    ctx = jnp.arange(qlen)[:, None]
    mem = jnp.arange(klen)[None, :]
    buckets = relative_position_bucket(mem - ctx, bidirectional,
                                       CFG['rel_buckets'], CFG['rel_max_dist'])
    bias = jnp.transpose(rel_emb[buckets], (2, 0, 1))       # [H, q, k]
    if causal:
        mask = jnp.where(ctx >= mem, 0.0, -1e9)
        bias = bias + mask[None]
    return jnp.transpose(bias, (1, 0, 2)).reshape(qlen, CFG['n_heads'] * klen)


def _pack_rows(entries, width):
    """Pack 2-D arrays into one [R, width] slab (rows of each entry padded to a
    multiple of 8 so every in-kernel slice is sublane-aligned). Returns slab and
    {name: (row_start, n_rows, n_cols)} with static Python-int offsets."""
    offs, blocks, r = {}, [], 0
    for name, a in entries:
        a = jnp.asarray(a, jnp.float32)
        nr, nc = a.shape
        offs[name] = (r, nr, nc)
        rp = (-nr) % 8
        blocks.append(jnp.pad(a, ((0, rp), (0, width - nc))))
        r += nr + rp
    return jnp.concatenate(blocks, axis=0), offs


def build_weight_slab(params):
    L, V = CFG['n_layers'], CFG['vocab']
    emb_p = jnp.pad(params['emb'], ((0, V_PAD - V), (0, 0)))   # [128, D]
    entries = [('emb', emb_p)]
    e = params['enc']
    for l in range(L):
        entries += [(f'e{l}_ln1', e['ln1'][l]), (f'e{l}_ln2', e['ln2'][l]),
                    (f'e{l}_wqkv', e['wqkv'][l]), (f'e{l}_wo', e['wo'][l]),
                    (f'e{l}_wi', e['wi'][l]), (f'e{l}_wff', e['wff'][l])]
    entries.append(('e_fln', params['enc_final_ln']))
    d = params['dec']
    for l in range(L):
        entries += [(f'd{l}_ln1', d['ln1'][l]), (f'd{l}_ln2', d['ln2'][l]),
                    (f'd{l}_ln3', d['ln3'][l]),
                    (f'd{l}_swqkv', d['s_wqkv'][l]), (f'd{l}_swo', d['s_wo'][l]),
                    (f'd{l}_cwq', d['c_wq'][l]), (f'd{l}_cwkv', d['c_wkv'][l]),
                    (f'd{l}_cwo', d['c_wo'][l]),
                    (f'd{l}_wi', d['wi'][l]), (f'd{l}_wff', d['wff'][l])]
    entries.append(('d_fln', params['dec_final_ln']))
    return _pack_rows(entries, LANE)


def build_clf_slab(clf):
    NC = CFG['n_classes']

    def wide(a):
        a = jnp.asarray(a, jnp.float32)
        return jnp.pad(a, ((0, 0), (0, CLF_PAD - a.shape[1])))

    # w2 stored transposed and row-padded to 128 so the final matmul directly
    # produces a lane-dense [B, 128] output (pad rows are zero -> pad lanes 0).
    w2t = jnp.pad(jnp.asarray(clf['w2'], jnp.float32).T, ((0, W2_ROWS - NC), (0, 0)))
    entries = [('c_w1', wide(clf['w1'])), ('c_b1', wide(clf['b1'])),
               ('c_g', wide(clf['gamma'])), ('c_bt', wide(clf['beta'])),
               ('c_w2t', wide(w2t)), ('c_b2', wide(clf['b2']))]
    return _pack_rows(entries, CLF_PAD)


def _full_spec(shape):
    """Whole-array VMEM block for a grid=(1,) kernel."""
    nd = len(shape)
    return pl.BlockSpec(shape, lambda *_: (0,) * nd)


# ------------------------------ the fused kernel -------------------------------

def make_kernel(B, Te, Td, offs_w, offs_c):
    D, H, dk = CFG['d_model'], CFG['n_heads'], CFG['d_kv']
    V, L, NC = CFG['vocab'], CFG['n_layers'], CFG['n_classes']
    Hd = H * dk
    f32 = jnp.float32

    def kernel(enc_oh_ref, dec_oh_ref, lab_oh_ref, ebias_ref, dbias_ref,
               wslab_ref, cslab_ref, lm_ref, clf_ref, loss_ref):

        def Ww(name):                                  # transformer weight slice
            r0, nr, nc = offs_w[name]
            return wslab_ref[r0:r0 + nr, 0:nc]

        def Wc(name):                                  # classifier weight slice
            r0, nr, nc = offs_c[name]
            return cslab_ref[r0:r0 + nr, 0:nc]

        emb = Ww('emb')                                # [V_PAD, D], pad rows zero
        ebias = ebias_ref[...]                         # [Te, H*Te]
        dbias = dbias_ref[...]                         # [Td, H*Td] (incl. causal)

        def rmsnorm(x, g):
            var = jnp.mean(x * x, axis=-1, keepdims=True)
            return x * jax.lax.rsqrt(var + 1e-6) * g

        mask_cache = {}

        def head_masks(Tk):
            # per-head lane masks [Tk, Hd] + their sublane concat [H*Tk, Hd];
            # built once per distinct Tk (trace-level cache).
            if Tk not in mask_cache:
                lane = jax.lax.broadcasted_iota(jnp.int32, (Tk, Hd), 1)
                m = [((lane >= h * dk) & (lane < (h + 1) * dk)).astype(f32)
                     for h in range(H)]
                mask_cache[Tk] = (m, jnp.concatenate(m, axis=0))
            return mask_cache[Tk]

        def attention(q, k, v, bias, Tq, Tk):
            # q [B*Tq, Hd]; k, v [B*Tk, Hd]; bias None or [Tq, H*Tk].
            # Block-diagonal K / V: all heads of one batch go through a single
            # scores matmul and a single P.V matmul; head outputs land directly
            # in their [Tq, h*dk:(h+1)*dk] lane slots (no scratch, no stores).
            masks, ones_bd = head_masks(Tk)
            outs = []
            for b in range(B):
                qb = q[b * Tq:(b + 1) * Tq, :]
                kb = k[b * Tk:(b + 1) * Tk, :]
                vb = v[b * Tk:(b + 1) * Tk, :]
                kbd = jnp.concatenate([kb * m for m in masks], axis=0)  # [H*Tk, Hd]
                vbd = jnp.concatenate([vb * m for m in masks], axis=0)  # [H*Tk, Hd]
                # T5 attention: no 1/sqrt(dk) scaling, additive position bias.
                s = jax.lax.dot_general(qb, kbd, (((1,), (1,)), ((), ())),
                                        preferred_element_type=f32)     # [Tq, H*Tk]
                if bias is not None:
                    s = s + bias
                # row max is a valid shift for every head segment (softmax is
                # shift invariant); segment sums are recovered via ones_bd.
                p = jnp.exp(s - jnp.max(s, axis=-1, keepdims=True))
                num = jnp.dot(p, vbd, preferred_element_type=f32)       # [Tq, Hd]
                den = jnp.dot(p, ones_bd, preferred_element_type=f32)   # [Tq, Hd]
                outs.append(num * pl.reciprocal(den, approx=True))
            return jnp.concatenate(outs, axis=0)                        # [B*Tq, Hd]

        def mha_self(x, wqkv, wo, bias, T):
            qkv = jnp.dot(x, wqkv, preferred_element_type=f32)          # fused Q|K|V
            a = attention(qkv[:, 0:Hd], qkv[:, Hd:2 * Hd], qkv[:, 2 * Hd:3 * Hd],
                          bias, T, T)
            return jnp.dot(a, wo, preferred_element_type=f32)

        def mha_cross(y, mem, wq, wkv, wo, Tq, Tk):
            q = jnp.dot(y, wq, preferred_element_type=f32)
            kv = jnp.dot(mem, wkv, preferred_element_type=f32)          # fused K|V
            a = attention(q, kv[:, 0:Hd], kv[:, Hd:2 * Hd], None, Tq, Tk)
            return jnp.dot(a, wo, preferred_element_type=f32)

        def ff(x, wi, wo):
            h = jnp.maximum(jnp.dot(x, wi, preferred_element_type=f32), 0.0)
            return jnp.dot(h, wo, preferred_element_type=f32)

        # ------------------------------- encoder -------------------------------
        x = jnp.dot(enc_oh_ref[...], emb, preferred_element_type=f32)   # [B*Te, D]
        for l in range(L):
            x = x + mha_self(rmsnorm(x, Ww(f'e{l}_ln1')),
                             Ww(f'e{l}_wqkv'), Ww(f'e{l}_wo'), ebias, Te)
            x = x + ff(rmsnorm(x, Ww(f'e{l}_ln2')),
                       Ww(f'e{l}_wi'), Ww(f'e{l}_wff'))
        enc_out = rmsnorm(x, Ww('e_fln'))     # encoder_last_hidden_state [B*Te, D]

        # ------------------------------- decoder -------------------------------
        y = jnp.dot(dec_oh_ref[...], emb, preferred_element_type=f32)   # [B*Td, D]
        for l in range(L):
            y = y + mha_self(rmsnorm(y, Ww(f'd{l}_ln1')),
                             Ww(f'd{l}_swqkv'), Ww(f'd{l}_swo'), dbias, Td)
            y = y + mha_cross(rmsnorm(y, Ww(f'd{l}_ln2')), enc_out,
                              Ww(f'd{l}_cwq'), Ww(f'd{l}_cwkv'), Ww(f'd{l}_cwo'),
                              Td, Te)
            y = y + ff(rmsnorm(y, Ww(f'd{l}_ln3')),
                       Ww(f'd{l}_wi'), Ww(f'd{l}_wff'))
        dec_out = rmsnorm(y, Ww('d_fln'))                               # [B*Td, D]

        # --------------------- tied LM head + cross entropy --------------------
        seq = dec_out * (D ** -0.5)
        # contract on D against the UNtransposed padded [V_PAD, D] embedding:
        # output is already lane-dense [B*Td, 128] (pad lanes are exactly 0).
        logits_p = jax.lax.dot_general(seq, emb, (((1,), (1,)), ((), ())),
                                       preferred_element_type=f32)
        lm_ref[...] = logits_p

        logits = logits_p[:, 0:V]                                       # real vocab
        m = jnp.max(logits, axis=-1, keepdims=True)
        lse = jnp.log(jnp.sum(jnp.exp(logits - m), axis=-1, keepdims=True)) + m
        picked = jnp.sum(logits_p * lab_oh_ref[...], axis=-1, keepdims=True)
        # TODO(synk): CrossEntropyLoss ignore_index=-100 masking omitted (all labels valid here).
        loss_ref[...] = jnp.mean(lse - picked, keepdims=True)

        # ------------- classification head on encoder last timestep ------------
        rows = jax.lax.broadcasted_iota(jnp.int32, (B, B * Te), 1)
        want = jax.lax.broadcasted_iota(jnp.int32, (B, B * Te), 0) * Te + (Te - 1)
        sel = (rows == want).astype(f32)                                # [B, B*Te]
        clf_in = jnp.dot(sel, enc_out, preferred_element_type=f32)      # [B, D]

        hc = jnp.dot(clf_in, Wc('c_w1'), preferred_element_type=f32) + Wc('c_b1')
        # BatchNorm1d, training-mode batch statistics (nn.Module default is train()).
        mu = jnp.mean(hc, axis=0, keepdims=True)
        var = jnp.mean((hc - mu) ** 2, axis=0, keepdims=True)
        hn = (hc - mu) * jax.lax.rsqrt(var + 1e-5) * Wc('c_g') + Wc('c_bt')
        hn = jnp.maximum(hn, 0.0)
        b2_r0 = offs_c['c_b2'][0]
        b2 = cslab_ref[b2_r0:b2_r0 + 1, 0:W2_ROWS]                      # [1, 128]
        # lane-dense [B, 128] store; only the first NC lanes are meaningful.
        clf_ref[...] = jax.lax.dot_general(hn, Wc('c_w2t'), (((1,), (1,)), ((), ())),
                                           preferred_element_type=f32) + b2

    return kernel


# ------------------------------- forward wrapper --------------------------------

def t5_novel_forward(params, input_ids, labels):
    V, NC = CFG['vocab'], CFG['n_classes']
    B, Te = input_ids.shape
    Td = labels.shape[1]

    # Host-side prep (a few KB): one-hot ids/labels, packed position biases,
    # and the two lane-dense weight slabs -> 7 input DMAs total.
    enc_oh = jax.nn.one_hot(input_ids.reshape(-1), V_PAD, dtype=jnp.float32)
    # decoder_input_ids = shift_right(labels), start token id 0.
    dec_ids = jnp.concatenate(
        [jnp.zeros((B, 1), jnp.int32), labels[:, :-1].astype(jnp.int32)], axis=1)
    dec_oh = jax.nn.one_hot(dec_ids.reshape(-1), V_PAD, dtype=jnp.float32)
    lab_oh = jax.nn.one_hot(labels.reshape(-1), V_PAD, dtype=jnp.float32)

    ebias = pack_pos_bias(params['enc_rel_bias'], Te, Te, bidirectional=True)
    dbias = pack_pos_bias(params['dec_rel_bias'], Td, Td, bidirectional=False,
                          causal=True)

    wslab, offs_w = build_weight_slab(params)
    cslab, offs_c = build_clf_slab(params['clf'])

    inputs = [enc_oh, dec_oh, lab_oh, ebias, dbias, wslab, cslab]

    out_shape = (jax.ShapeDtypeStruct((B * Td, V_PAD), jnp.float32),   # lm logits (padded)
                 jax.ShapeDtypeStruct((B, W2_ROWS), jnp.float32),      # clf logits (padded)
                 jax.ShapeDtypeStruct((1, 1), jnp.float32))            # lm loss

    lm_pad, clf_pad, loss = pl.pallas_call(
        make_kernel(B, Te, Td, offs_w, offs_c),
        out_shape=out_shape,
        grid=(1,),
        in_specs=[_full_spec(x.shape) for x in inputs],
        out_specs=tuple(_full_spec(s.shape) for s in out_shape),
        compiler_params=pltpu.CompilerParams(dimension_semantics=("arbitrary",)),
    )(*inputs)

    lm_logits = lm_pad[:, :V].reshape(B, Td, V)
    clf_logits = clf_pad[:, :NC]
    lm_loss = loss[0, 0]
    # TODO(synk): dropout is omitted (no-op in a single deterministic forward).
    return lm_loss, lm_logits, clf_logits


# ------------------------------- parameter init ---------------------------------

def init_params(key):
    ks = iter(jax.random.split(key, 32))
    D, F, H, dk = CFG['d_model'], CFG['d_ff'], CFG['n_heads'], CFG['d_kv']
    V, NB = CFG['vocab'], CFG['rel_buckets']
    CH, NC, L = CFG['clf_hidden'], CFG['n_classes'], CFG['n_layers']
    Hd = H * dk

    def nrm(shape, scale=0.05):
        return jax.random.normal(next(ks), shape, jnp.float32) * scale

    enc = dict(ln1=jnp.ones((L, 1, D), jnp.float32),
               ln2=jnp.ones((L, 1, D), jnp.float32),
               wqkv=nrm((L, D, 3 * Hd)), wo=nrm((L, Hd, D)),
               wi=nrm((L, D, F)), wff=nrm((L, F, D)))
    dec = dict(ln1=jnp.ones((L, 1, D), jnp.float32),
               ln2=jnp.ones((L, 1, D), jnp.float32),
               ln3=jnp.ones((L, 1, D), jnp.float32),
               s_wqkv=nrm((L, D, 3 * Hd)), s_wo=nrm((L, Hd, D)),
               c_wq=nrm((L, D, Hd)), c_wkv=nrm((L, D, 2 * Hd)), c_wo=nrm((L, Hd, D)),
               wi=nrm((L, D, F)), wff=nrm((L, F, D)))
    clf = dict(w1=nrm((D, CH)), b1=nrm((1, CH)),
               gamma=jnp.ones((1, CH), jnp.float32),
               beta=jnp.zeros((1, CH), jnp.float32),
               w2=nrm((CH, NC)), b2=nrm((1, NC)))
    return dict(emb=nrm((V, D), 1.0),
                enc_rel_bias=nrm((NB, H), 0.1),
                dec_rel_bias=nrm((NB, H), 0.1),
                enc_final_ln=jnp.ones((1, D), jnp.float32),
                dec_final_ln=jnp.ones((1, D), jnp.float32),
                enc=enc, dec=dec, clf=clf)


# ------------------------------------ main ---------------------------------------

if __name__ == "__main__":
    key = jax.random.PRNGKey(0)
    pkey, ikey, lkey = jax.random.split(key, 3)
    params = init_params(pkey)

    B, Te, Td = 2, 8, 8
    input_ids = jax.random.randint(ikey, (B, Te), 0, CFG['vocab'], dtype=jnp.int32)
    labels = jax.random.randint(lkey, (B, Td), 0, CFG['vocab'], dtype=jnp.int32)

    fwd = jax.jit(t5_novel_forward)
    lm_loss, lm_logits, clf_logits = fwd(params, input_ids, labels)
    lm_loss, lm_logits, clf_logits = jax.block_until_ready(
        (lm_loss, lm_logits, clf_logits))

    assert lm_logits.shape == (B, Td, CFG['vocab'])
    assert clf_logits.shape == (B, CFG['n_classes'])
    assert bool(jnp.isfinite(lm_loss))
    assert bool(jnp.all(jnp.isfinite(lm_logits)))
    assert bool(jnp.all(jnp.isfinite(clf_logits)))
    print("KERNEL_OK")
</pallas_src>

<mosaic_0001>
module attributes {stable_mosaic.version = 11 : i64} {
  func.func @kernel(%arg0: i32, %arg1: memref<16x128xf32, #tpu.memory_space<vmem>>, %arg2: memref<16x128xf32, #tpu.memory_space<vmem>>, %arg3: memref<16x128xf32, #tpu.memory_space<vmem>>, %arg4: memref<8x32xf32, #tpu.memory_space<vmem>>, %arg5: memref<8x32xf32, #tpu.memory_space<vmem>>, %arg6: memref<1056x128xf32, #tpu.memory_space<vmem>>, %arg7: memref<192x384xf32, #tpu.memory_space<vmem>>, %arg8: memref<16x128xf32, #tpu.memory_space<vmem>>, %arg9: memref<2x128xf32, #tpu.memory_space<vmem>>, %arg10: memref<1x1xf32, #tpu.memory_space<vmem>>) attributes {dimension_semantics = [#tpu.dimension_semantics<arbitrary>], iteration_bounds = array<i64: 1>, scalar_prefetch = 0 : i64, scratch_operands = 0 : i64, tpu.core_type = #tpu.core_type<tc>, window_params = [{pipeline_mode = #tpu.pipeline_mode<synchronous>, transform_indices = @transform_0, window_bounds = array<i64: 16, 128>}, {pipeline_mode = #tpu.pipeline_mode<synchronous>, transform_indices = @transform_1, window_bounds = array<i64: 16, 128>}, {pipeline_mode = #tpu.pipeline_mode<synchronous>, transform_indices = @transform_2, window_bounds = array<i64: 16, 128>}, {pipeline_mode = #tpu.pipeline_mode<synchronous>, transform_indices = @transform_3, window_bounds = array<i64: 8, 32>}, {pipeline_mode = #tpu.pipeline_mode<synchronous>, transform_indices = @transform_4, window_bounds = array<i64: 8, 32>}, {pipeline_mode = #tpu.pipeline_mode<synchronous>, transform_indices = @transform_5, window_bounds = array<i64: 1056, 128>}, {pipeline_mode = #tpu.pipeline_mode<synchronous>, transform_indices = @transform_6, window_bounds = array<i64: 192, 384>}, {pipeline_mode = #tpu.pipeline_mode<synchronous>, transform_indices = @transform_7, window_bounds = array<i64: 16, 128>}, {pipeline_mode = #tpu.pipeline_mode<synchronous>, transform_indices = @transform_8, window_bounds = array<i64: 2, 128>}, {pipeline_mode = #tpu.pipeline_mode<synchronous>, transform_indices = @transform_9, window_bounds = array<i64: 1, 1>}]} {
    %c0 = arith.constant 0 : index
    %c0_0 = arith.constant 0 : index
    %0 = vector.load %arg6[%c0, %c0_0] : memref<1056x128xf32, #tpu.memory_space<vmem>>, vector<128x32xf32>
    %c0_1 = arith.constant 0 : index
    %c0_2 = arith.constant 0 : index
    %1 = vector.load %arg4[%c0_1, %c0_2] : memref<8x32xf32, #tpu.memory_space<vmem>>, vector<8x32xf32>
    %c0_3 = arith.constant 0 : index
    %c0_4 = arith.constant 0 : index
    %2 = vector.load %arg5[%c0_3, %c0_4] : memref<8x32xf32, #tpu.memory_space<vmem>>, vector<8x32xf32>
    %c0_5 = arith.constant 0 : index
    %c0_6 = arith.constant 0 : index
    %3 = vector.load %arg1[%c0_5, %c0_6] : memref<16x128xf32, #tpu.memory_space<vmem>>, vector<16x128xf32>
    %cst = arith.constant dense<0.000000e+00> : vector<16x32xf32>
    %4 = tpu.matmul %3, %0, %cst {dimension_numbers = #tpu.dot_dimension_numbers<[1], [0], [0], [1], [0, 0, 1, 1], [], []>} : vector<16x128xf32>, vector<128x32xf32>, vector<16x32xf32> -> vector<16x32xf32>
    %c128 = arith.constant 128 : index
    %c0_7 = arith.constant 0 : index
    %5 = vector.load %arg6[%c128, %c0_7] : memref<1056x128xf32, #tpu.memory_space<vmem>>, vector<1x32xf32>
    %6 = arith.mulf %4, %4 : vector<16x32xf32>
    %cst_8 = arith.constant dense<0.000000e+00> : vector<16xf32>
    %7 = vector.multi_reduction <add>, %6, %cst_8 [1] : vector<16x32xf32> to vector<16xf32>
    %8 = vector.shape_cast %7 : vector<16xf32> to vector<16x1xf32>
    %cst_9 = arith.constant 3.200000e+01 : f32
    %9 = vector.broadcast %cst_9 : f32 to vector<16x1xf32>
    %10 = arith.divf %8, %9 : vector<16x1xf32>
    %cst_10 = arith.constant 9.99999997E-7 : f32
    %11 = vector.broadcast %cst_10 : f32 to vector<16x1xf32>
    %12 = arith.addf %10, %11 : vector<16x1xf32>
    %13 = math.rsqrt %12 : vector<16x1xf32>
    %14 = vector.broadcast %13 : vector<16x1xf32> to vector<16x32xf32>
    %15 = arith.mulf %4, %14 : vector<16x32xf32>
    %16 = vector.broadcast %5 : vector<1x32xf32> to vector<16x32xf32>
    %17 = arith.mulf %15, %16 : vector<16x32xf32>
    %c144 = arith.constant 144 : index
    %c0_11 = arith.constant 0 : index
    %18 = vector.load %arg6[%c144, %c0_11] : memref<1056x128xf32, #tpu.memory_space<vmem>>, vector<32x96xf32>
    %c176 = arith.constant 176 : index
    %c0_12 = arith.constant 0 : index
    %19 = vector.load %arg6[%c176, %c0_12] : memref<1056x128xf32, #tpu.memory_space<vmem>>, vector<32x32xf32>
    %cst_13 = arith.constant dense<0.000000e+00> : vector<16x96xf32>
    %20 = tpu.matmul %17, %18, %cst_13 {dimension_numbers = #tpu.dot_dimension_numbers<[1], [0], [0], [1], [0, 0, 1, 1], [], []>} : vector<16x32xf32>, vector<32x96xf32>, vector<16x96xf32> -> vector<16x96xf32>
    %21 = vector.extract_strided_slice %20 {offsets = [0, 0], sizes = [16, 32], strides = [1, 1]} : vector<16x96xf32> to vector<16x32xf32>
    %22 = vector.extract_strided_slice %20 {offsets = [0, 32], sizes = [16, 32], strides = [1, 1]} : vector<16x96xf32> to vector<16x32xf32>
    %23 = vector.extract_strided_slice %20 {offsets = [0, 64], sizes = [16, 32], strides = [1, 1]} : vector<16x96xf32> to vector<16x32xf32>
    %24 = tpu.iota {dimensions = array<i32: 1>} : vector<8x32xi32>
    %c0_i32 = arith.constant 0 : i32
    %25 = vector.broadcast %c0_i32 : i32 to vector<8x32xi32>
    %26 = arith.cmpi sge, %24, %25 : vector<8x32xi32>
    %c8_i32 = arith.constant 8 : i32
    %27 = vector.broadcast %c8_i32 : i32 to vector<8x32xi32>
    %28 = arith.cmpi slt, %24, %27 : vector<8x32xi32>
    %29 = arith.andi %26, %28 : vector<8x32xi1>
    %30 = arith.extui %29 : vector<8x32xi1> to vector<8x32xi32>
    %31 = arith.sitofp %30 : vector<8x32xi32> to vector<8x32xf32>
    %c8_i32_14 = arith.constant 8 : i32
    %32 = vector.broadcast %c8_i32_14 : i32 to vector<8x32xi32>
    %33 = arith.cmpi sge, %24, %32 : vector<8x32xi32>
    %c16_i32 = arith.constant 16 : i32
    %34 = vector.broadcast %c16_i32 : i32 to vector<8x32xi32>
    %35 = arith.cmpi slt, %24, %34 : vector<8x32xi32>
    %36 = arith.andi %33, %35 : vector<8x32xi1>
    %37 = arith.extui %36 : vector<8x32xi1> to vector<8x32xi32>
    %38 = arith.sitofp %37 : vector<8x32xi32> to vector<8x32xf32>
    %c16_i32_15 = arith.constant 16 : i32
    %39 = vector.broadcast %c16_i32_15 : i32 to vector<8x32xi32>
    %40 = arith.cmpi sge, %24, %39 : vector<8x32xi32>
    %c24_i32 = arith.constant 24 : i32
    %41 = vector.broadcast %c24_i32 : i32 to vector<8x32xi32>
    %42 = arith.cmpi slt, %24, %41 : vector<8x32xi32>
    %43 = arith.andi %40, %42 : vector<8x32xi1>
    %44 = arith.extui %43 : vector<8x32xi1> to vector<8x32xi32>
    %45 = arith.sitofp %44 : vector<8x32xi32> to vector<8x32xf32>
    %c24_i32_16 = arith.constant 24 : i32
    %46 = vector.broadcast %c24_i32_16 : i32 to vector<8x32xi32>
    %47 = arith.cmpi sge, %24, %46 : vector<8x32xi32>
    %c32_i32 = arith.constant 32 : i32
    %48 = vector.broadcast %c32_i32 : i32 to vector<8x32xi32>
    %49 = arith.cmpi slt, %24, %48 : vector<8x32xi32>
    %50 = arith.andi %47, %49 : vector<8x32xi1>
    %51 = arith.extui %50 : vector<8x32xi1> to vector<8x32xi32>
    %52 = arith.sitofp %51 : vector<8x32xi32> to vector<8x32xf32>
    %53 = tpu.concatenate %31, %38, %45, %52 in 0 : vector<8x32xf32>, vector<8x32xf32>, vector<8x32xf32>, vector<8x32xf32> -> vector<32x32xf32>
    %54 = vector.extract_strided_slice %21 {offsets = [0, 0], sizes = [8, 32], strides = [1, 1]} : vector<16x32xf32> to vector<8x32xf32>
    %55 = vector.extract_strided_slice %22 {offsets = [0, 0], sizes = [8, 32], strides = [1, 1]} : vector<16x32xf32> to vector<8x32xf32>
    %56 = vector.extract_strided_slice %23 {offsets = [0, 0], sizes = [8, 32], strides = [1, 1]} : vector<16x32xf32> to vector<8x32xf32>
    %57 = arith.mulf %55, %31 : vector<8x32xf32>
    %58 = arith.mulf %55, %38 : vector<8x32xf32>
    %59 = arith.mulf %55, %45 : vector<8x32xf32>
    %60 = arith.mulf %55, %52 : vector<8x32xf32>
    %61 = tpu.concatenate %57, %58, %59, %60 in 0 : vector<8x32xf32>, vector<8x32xf32>, vector<8x32xf32>, vector<8x32xf32> -> vector<32x32xf32>
    %62 = arith.mulf %56, %31 : vector<8x32xf32>
    %63 = arith.mulf %56, %38 : vector<8x32xf32>
    %64 = arith.mulf %56, %45 : vector<8x32xf32>
    %65 = arith.mulf %56, %52 : vector<8x32xf32>
    %66 = tpu.concatenate %62, %63, %64, %65 in 0 : vector<8x32xf32>, vector<8x32xf32>, vector<8x32xf32>, vector<8x32xf32> -> vector<32x32xf32>
    %cst_17 = arith.constant dense<0.000000e+00> : vector<8x32xf32>
    %67 = tpu.matmul %54, %61, %cst_17 {dimension_numbers = #tpu.dot_dimension_numbers<[1], [1], [0], [0], [0, 0, 1, 0], [], []>} : vector<8x32xf32>, vector<32x32xf32>, vector<8x32xf32> -> vector<8x32xf32>
    %68 = arith.addf %67, %1 : vector<8x32xf32>
    %cst_18 = arith.constant dense<0xFF800000> : vector<8xf32>
    %69 = vector.multi_reduction <maximumf>, %68, %cst_18 [1] : vector<8x32xf32> to vector<8xf32>
    %70 = vector.shape_cast %69 : vector<8xf32> to vector<8x1xf32>
    %71 = vector.broadcast %70 : vector<8x1xf32> to vector<8x32xf32>
    %72 = arith.subf %68, %71 : vector<8x32xf32>
    %73 = math.exp %72 : vector<8x32xf32>
    %cst_19 = arith.constant dense<0.000000e+00> : vector<8x32xf32>
    %74 = tpu.matmul %73, %66, %cst_19 {dimension_numbers = #tpu.dot_dimension_numbers<[1], [0], [0], [1], [0, 0, 1, 1], [], []>} : vector<8x32xf32>, vector<32x32xf32>, vector<8x32xf32> -> vector<8x32xf32>
    %cst_20 = arith.constant dense<0.000000e+00> : vector<8x32xf32>
    %75 = tpu.matmul %73, %53, %cst_20 {dimension_numbers = #tpu.dot_dimension_numbers<[1], [0], [0], [1], [0, 0, 1, 1], [], []>} : vector<8x32xf32>, vector<32x32xf32>, vector<8x32xf32> -> vector<8x32xf32>
    %76 = tpu.reciprocal %75 {approx = true} : vector<8x32xf32> -> vector<8x32xf32>
    %77 = arith.mulf %74, %76 : vector<8x32xf32>
    %78 = vector.extract_strided_slice %21 {offsets = [8, 0], sizes = [8, 32], strides = [1, 1]} : vector<16x32xf32> to vector<8x32xf32>
    %79 = vector.extract_strided_slice %22 {offsets = [8, 0], sizes = [8, 32], strides = [1, 1]} : vector<16x32xf32> to vector<8x32xf32>
    %80 = vector.extract_strided_slice %23 {offsets = [8, 0], sizes = [8, 32], strides = [1, 1]} : vector<16x32xf32> to vector<8x32xf32>
    %81 = arith.mulf %79, %31 : vector<8x32xf32>
    %82 = arith.mulf %79, %38 : vector<8x32xf32>
    %83 = arith.mulf %79, %45 : vector<8x32xf32>
    %84 = arith.mulf %79, %52 : vector<8x32xf32>
    %85 = tpu.concatenate %81, %82, %83, %84 in 0 : vector<8x32xf32>, vector<8x32xf32>, vector<8x32xf32>, vector<8x32xf32> -> vector<32x32xf32>
    %86 = arith.mulf %80, %31 : vector<8x32xf32>
    %87 = arith.mulf %80, %38 : vector<8x32xf32>
    %88 = arith.mulf %80, %45 : vector<8x32xf32>
    %89 = arith.mulf %80, %52 : vector<8x32xf32>
    %90 = tpu.concatenate %86, %87, %88, %89 in 0 : vector<8x32xf32>, vector<8x32xf32>, vector<8x32xf32>, vector<8x32xf32> -> vector<32x32xf32>
    %cst_21 = arith.constant dense<0.000000e+00> : vector<8x32xf32>
    %91 = tpu.matmul %78, %85, %cst_21 {dimension_numbers = #tpu.dot_dimension_numbers<[1], [1], [0], [0], [0, 0, 1, 0], [], []>} : vector<8x32xf32>, vector<32x32xf32>, vector<8x32xf32> -> vector<8x32xf32>
    %92 = arith.addf %91, %1 : vector<8x32xf32>
    %cst_22 = arith.constant dense<0xFF800000> : vector<8xf32>
    %93 = vector.multi_reduction <maximumf>, %92, %cst_22 [1] : vector<8x32xf32> to vector<8xf32>
    %94 = vector.shape_cast %93 : vector<8xf32> to vector<8x1xf32>
    %95 = vector.broadcast %94 : vector<8x1xf32> to vector<8x32xf32>
    %96 = arith.subf %92, %95 : vector<8x32xf32>
    %97 = math.exp %96 : vector<8x32xf32>
    %cst_23 = arith.constant dense<0.000000e+00> : vector<8x32xf32>
    %98 = tpu.matmul %97, %90, %cst_23 {dimension_numbers = #tpu.dot_dimension_numbers<[1], [0], [0], [1], [0, 0, 1, 1], [], []>} : vector<8x32xf32>, vector<32x32xf32>, vector<8x32xf32> -> vector<8x32xf32>
    %cst_24 = arith.constant dense<0.000000e+00> : vector<8x32xf32>
    %99 = tpu.matmul %97, %53, %cst_24 {dimension_numbers = #tpu.dot_dimension_numbers<[1], [0], [0], [1], [0, 0, 1, 1], [], []>} : vector<8x32xf32>, vector<32x32xf32>, vector<8x32xf32> -> vector<8x32xf32>
    %100 = tpu.reciprocal %99 {approx = true} : vector<8x32xf32> -> vector<8x32xf32>
    %101 = arith.mulf %98, %100 : vector<8x32xf32>
    %102 = tpu.concatenate %77, %101 in 0 : vector<8x32xf32>, vector<8x32xf32> -> vector<16x32xf32>
    %cst_25 = arith.constant dense<0.000000e+00> : vector<16x32xf32>
    %103 = tpu.matmul %102, %19, %cst_25 {dimension_numbers = #tpu.dot_dimension_numbers<[1], [0], [0], [1], [0, 0, 1, 1], [], []>} : vector<16x32xf32>, vector<32x32xf32>, vector<16x32xf32> -> vector<16x32xf32>
    %104 = arith.addf %4, %103 : vector<16x32xf32>
    %c136 = arith.constant 136 : index
    %c0_26 = arith.constant 0 : index
    %105 = vector.load %arg6[%c136, %c0_26] : memref<1056x128xf32, #tpu.memory_space<vmem>>, vector<1x32xf32>
    %106 = arith.mulf %104, %104 : vector<16x32xf32>
    %cst_27 = arith.constant dense<0.000000e+00> : vector<16xf32>
    %107 = vector.multi_reduction <add>, %106, %cst_27 [1] : vector<16x32xf32> to vector<16xf32>
    %108 = vector.shape_cast %107 : vector<16xf32> to vector<16x1xf32>
    %cst_28 = arith.constant 3.200000e+01 : f32
    %109 = vector.broadcast %cst_28 : f32 to vector<16x1xf32>
    %110 = arith.divf %108, %109 : vector<16x1xf32>
    %cst_29 = arith.constant 9.99999997E-7 : f32
    %111 = vector.broadcast %cst_29 : f32 to vector<16x1xf32>
    %112 = arith.addf %110, %111 : vector<16x1xf32>
    %113 = math.rsqrt %112 : vector<16x1xf32>
    %114 = vector.broadcast %113 : vector<16x1xf32> to vector<16x32xf32>
    %115 = arith.mulf %104, %114 : vector<16x32xf32>
    %116 = vector.broadcast %105 : vector<1x32xf32> to vector<16x32xf32>
    %117 = arith.mulf %115, %116 : vector<16x32xf32>
    %c208 = arith.constant 208 : index
    %c0_30 = arith.constant 0 : index
    %118 = vector.load %arg6[%c208, %c0_30] : memref<1056x128xf32, #tpu.memory_space<vmem>>, vector<32x64xf32>
    %c240 = arith.constant 240 : index
    %c0_31 = arith.constant 0 : index
    %119 = vector.load %arg6[%c240, %c0_31] : memref<1056x128xf32, #tpu.memory_space<vmem>>, vector<64x32xf32>
    %cst_32 = arith.constant dense<0.000000e+00> : vector<16x64xf32>
    %120 = tpu.matmul %117, %118, %cst_32 {dimension_numbers = #tpu.dot_dimension_numbers<[1], [0], [0], [1], [0, 0, 1, 1], [], []>} : vector<16x32xf32>, vector<32x64xf32>, vector<16x64xf32> -> vector<16x64xf32>
    %cst_33 = arith.constant 0.000000e+00 : f32
    %121 = vector.broadcast %cst_33 : f32 to vector<16x64xf32>
    %122 = arith.maximumf %120, %121 : vector<16x64xf32>
    %cst_34 = arith.constant dense<0.000000e+00> : vector<16x32xf32>
    %123 = tpu.matmul %122, %119, %cst_34 {dimension_numbers = #tpu.dot_dimension_numbers<[1], [0], [0], [1], [0, 0, 1, 1], [], []>} : vector<16x64xf32>, vector<64x32xf32>, vector<16x32xf32> -> vector<16x32xf32>
    %124 = arith.addf %104, %123 : vector<16x32xf32>
    %c304 = arith.constant 304 : index
    %c0_35 = arith.constant 0 : index
    %125 = vector.load %arg6[%c304, %c0_35] : memref<1056x128xf32, #tpu.memory_space<vmem>>, vector<1x32xf32>
    %126 = arith.mulf %124, %124 : vector<16x32xf32>
    %cst_36 = arith.constant dense<0.000000e+00> : vector<16xf32>
    %127 = vector.multi_reduction <add>, %126, %cst_36 [1] : vector<16x32xf32> to vector<16xf32>
    %128 = vector.shape_cast %127 : vector<16xf32> to vector<16x1xf32>
    %cst_37 = arith.constant 3.200000e+01 : f32
    %129 = vector.broadcast %cst_37 : f32 to vector<16x1xf32>
    %130 = arith.divf %128, %129 : vector<16x1xf32>
    %cst_38 = arith.constant 9.99999997E-7 : f32
    %131 = vector.broadcast %cst_38 : f32 to vector<16x1xf32>
    %132 = arith.addf %130, %131 : vector<16x1xf32>
    %133 = math.rsqrt %132 : vector<16x1xf32>
    %134 = vector.broadcast %133 : vector<16x1xf32> to vector<16x32xf32>
    %135 = arith.mulf %124, %134 : vector<16x32xf32>
    %136 = vector.broadcast %125 : vector<1x32xf32> to vector<16x32xf32>
    %137 = arith.mulf %135, %136 : vector<16x32xf32>
    %c320 = arith.constant 320 : index
    %c0_39 = arith.constant 0 : index
    %138 = vector.load %arg6[%c320, %c0_39] : memref<1056x128xf32, #tpu.memory_space<vmem>>, vector<32x96xf32>
    %c352 = arith.constant 352 : index
    %c0_40 = arith.constant 0 : index
    %139 = vector.load %arg6[%c352, %c0_40] : memref<1056x128xf32, #tpu.memory_space<vmem>>, vector<32x32xf32>
    %cst_41 = arith.constant dense<0.000000e+00> : vector<16x96xf32>
    %140 = tpu.matmul %137, %138, %cst_41 {dimension_numbers = #tpu.dot_dimension_numbers<[1], [0], [0], [1], [0, 0, 1, 1], [], []>} : vector<16x32xf32>, vector<32x96xf32>, vector<16x96xf32> -> vector<16x96xf32>
    %141 = vector.extract_strided_slice %140 {offsets = [0, 0], sizes = [16, 32], strides = [1, 1]} : vector<16x96xf32> to vector<16x32xf32>
    %142 = vector.extract_strided_slice %140 {offsets = [0, 32], sizes = [16, 32], strides = [1, 1]} : vector<16x96xf32> to vector<16x32xf32>
    %143 = vector.extract_strided_slice %140 {offsets = [0, 64], sizes = [16, 32], strides = [1, 1]} : vector<16x96xf32> to vector<16x32xf32>
    %144 = vector.extract_strided_slice %141 {offsets = [0, 0], sizes = [8, 32], strides = [1, 1]} : vector<16x32xf32> to vector<8x32xf32>
    %145 = vector.extract_strided_slice %142 {offsets = [0, 0], sizes = [8, 32], strides = [1, 1]} : vector<16x32xf32> to vector<8x32xf32>
    %146 = vector.extract_strided_slice %143 {offsets = [0, 0], sizes = [8, 32], strides = [1, 1]} : vector<16x32xf32> to vector<8x32xf32>
    %147 = arith.mulf %145, %31 : vector<8x32xf32>
    %148 = arith.mulf %145, %38 : vector<8x32xf32>
    %149 = arith.mulf %145, %45 : vector<8x32xf32>
    %150 = arith.mulf %145, %52 : vector<8x32xf32>
    %151 = tpu.concatenate %147, %148, %149, %150 in 0 : vector<8x32xf32>, vector<8x32xf32>, vector<8x32xf32>, vector<8x32xf32> -> vector<32x32xf32>
    %152 = arith.mulf %146, %31 : vector<8x32xf32>
    %153 = arith.mulf %146, %38 : vector<8x32xf32>
    %154 = arith.mulf %146, %45 : vector<8x32xf32>
    %155 = arith.mulf %146, %52 : vector<8x32xf32>
    %156 = tpu.concatenate %152, %153, %154, %155 in 0 : vector<8x32xf32>, vector<8x32xf32>, vector<8x32xf32>, vector<8x32xf32> -> vector<32x32xf32>
    %cst_42 = arith.constant dense<0.000000e+00> : vector<8x32xf32>
    %157 = tpu.matmul %144, %151, %cst_42 {dimension_numbers = #tpu.dot_dimension_numbers<[1], [1], [0], [0], [0, 0, 1, 0], [], []>} : vector<8x32xf32>, vector<32x32xf32>, vector<8x32xf32> -> vector<8x32xf32>
    %158 = arith.addf %157, %1 : vector<8x32xf32>
    %cst_43 = arith.constant dense<0xFF800000> : vector<8xf32>
    %159 = vector.multi_reduction <maximumf>, %158, %cst_43 [1] : vector<8x32xf32> to vector<8xf32>
    %160 = vector.shape_cast %159 : vector<8xf32> to vector<8x1xf32>
    %161 = vector.broadcast %160 : vector<8x1xf32> to vector<8x32xf32>
    %162 = arith.subf %158, %161 : vector<8x32xf32>
    %163 = math.exp %162 : vector<8x32xf32>
    %cst_44 = arith.constant dense<0.000000e+00> : vector<8x32xf32>
    %164 = tpu.matmul %163, %156, %cst_44 {dimension_numbers = #tpu.dot_dimension_numbers<[1], [0], [0], [1], [0, 0, 1, 1], [], []>} : vector<8x32xf32>, vector<32x32xf32>, vector<8x32xf32> -> vector<8x32xf32>
    %cst_45 = arith.constant dense<0.000000e+00> : vector<8x32xf32>
    %165 = tpu.matmul %163, %53, %cst_45 {dimension_numbers = #tpu.dot_dimension_numbers<[1], [0], [0], [1], [0, 0, 1, 1], [], []>} : vector<8x32xf32>, vector<32x32xf32>, vector<8x32xf32> -> vector<8x32xf32>
    %166 = tpu.reciprocal %165 {approx = true} : vector<8x32xf32> -> vector<8x32xf32>
    %167 = arith.mulf %164, %166 : vector<8x32xf32>
    %168 = vector.extract_strided_slice %141 {offsets = [8, 0], sizes = [8, 32], strides = [1, 1]} : vector<16x32xf32> to vector<8x32xf32>
    %169 = vector.extract_strided_slice %142 {offsets = [8, 0], sizes = [8, 32], strides = [1, 1]} : vector<16x32xf32> to vector<8x32xf32>
    %170 = vector.extract_strided_slice %143 {offsets = [8, 0], sizes = [8, 32], strides = [1, 1]} : vector<16x32xf32> to vector<8x32xf32>
    %171 = arith.mulf %169, %31 : vector<8x32xf32>
    %172 = arith.mulf %169, %38 : vector<8x32xf32>
    %173 = arith.mulf %169, %45 : vector<8x32xf32>
    %174 = arith.mulf %169, %52 : vector<8x32xf32>
    %175 = tpu.concatenate %171, %172, %173, %174 in 0 : vector<8x32xf32>, vector<8x32xf32>, vector<8x32xf32>, vector<8x32xf32> -> vector<32x32xf32>
    %176 = arith.mulf %170, %31 : vector<8x32xf32>
    %177 = arith.mulf %170, %38 : vector<8x32xf32>
    %178 = arith.mulf %170, %45 : vector<8x32xf32>
    %179 = arith.mulf %170, %52 : vector<8x32xf32>
    %180 = tpu.concatenate %176, %177, %178, %179 in 0 : vector<8x32xf32>, vector<8x32xf32>, vector<8x32xf32>, vector<8x32xf32> -> vector<32x32xf32>
    %cst_46 = arith.constant dense<0.000000e+00> : vector<8x32xf32>
    %181 = tpu.matmul %168, %175, %cst_46 {dimension_numbers = #tpu.dot_dimension_numbers<[1], [1], [0], [0], [0, 0, 1, 0], [], []>} : vector<8x32xf32>, vector<32x32xf32>, vector<8x32xf32> -> vector<8x32xf32>
    %182 = arith.addf %181, %1 : vector<8x32xf32>
    %cst_47 = arith.constant dense<0xFF800000> : vector<8xf32>
    %183 = vector.multi_reduction <maximumf>, %182, %cst_47 [1] : vector<8x32xf32> to vector<8xf32>
    %184 = vector.shape_cast %183 : vector<8xf32> to vector<8x1xf32>
    %185 = vector.broadcast %184 : vector<8x1xf32> to vector<8x32xf32>
    %186 = arith.subf %182, %185 : vector<8x32xf32>
    %187 = math.exp %186 : vector<8x32xf32>
    %cst_48 = arith.constant dense<0.000000e+00> : vector<8x32xf32>
    %188 = tpu.matmul %187, %180, %cst_48 {dimension_numbers = #tpu.dot_dimension_numbers<[1], [0], [0], [1], [0, 0, 1, 1], [], []>} : vector<8x32xf32>, vector<32x32xf32>, vector<8x32xf32> -> vector<8x32xf32>
    %cst_49 = arith.constant dense<0.000000e+00> : vector<8x32xf32>
    %189 = tpu.matmul %187, %53, %cst_49 {dimension_numbers = #tpu.dot_dimension_numbers<[1], [0], [0], [1], [0, 0, 1, 1], [], []>} : vector<8x32xf32>, vector<32x32xf32>, vector<8x32xf32> -> vector<8x32xf32>
    %190 = tpu.reciprocal %189 {approx = true} : vector<8x32xf32> -> vector<8x32xf32>
    %191 = arith.mulf %188, %190 : vector<8x32xf32>
    %192 = tpu.concatenate %167, %191 in 0 : vector<8x32xf32>, vector<8x32xf32> -> vector<16x32xf32>
    %cst_50 = arith.constant dense<0.000000e+00> : vector<16x32xf32>
    %193 = tpu.matmul %192, %139, %cst_50 {dimension_numbers = #tpu.dot_dimension_numbers<[1], [0], [0], [1], [0, 0, 1, 1], [], []>} : vector<16x32xf32>, vector<32x32xf32>, vector<16x32xf32> -> vector<16x32xf32>
    %194 = arith.addf %124, %193 : vector<16x32xf32>
    %c312 = arith.constant 312 : index
    %c0_51 = arith.constant 0 : index
    %195 = vector.load %arg6[%c312, %c0_51] : memref<1056x128xf32, #tpu.memory_space<vmem>>, vector<1x32xf32>
    %196 = arith.mulf %194, %194 : vector<16x32xf32>
    %cst_52 = arith.constant dense<0.000000e+00> : vector<16xf32>
    %197 = vector.multi_reduction <add>, %196, %cst_52 [1] : vector<16x32xf32> to vector<16xf32>
    %198 = vector.shape_cast %197 : vector<16xf32> to vector<16x1xf32>
    %cst_53 = arith.constant 3.200000e+01 : f32
    %199 = vector.broadcast %cst_53 : f32 to vector<16x1xf32>
    %200 = arith.divf %198, %199 : vector<16x1xf32>
    %cst_54 = arith.constant 9.99999997E-7 : f32
    %201 = vector.broadcast %cst_54 : f32 to vector<16x1xf32>
    %202 = arith.addf %200, %201 : vector<16x1xf32>
    %203 = math.rsqrt %202 : vector<16x1xf32>
    %204 = vector.broadcast %203 : vector<16x1xf32> to vector<16x32xf32>
    %205 = arith.mulf %194, %204 : vector<16x32xf32>
    %206 = vector.broadcast %195 : vector<1x32xf32> to vector<16x32xf32>
    %207 = arith.mulf %205, %206 : vector<16x32xf32>
    %c384 = arith.constant 384 : index
    %c0_55 = arith.constant 0 : index
    %208 = vector.load %arg6[%c384, %c0_55] : memref<1056x128xf32, #tpu.memory_space<vmem>>, vector<32x64xf32>
    %c416 = arith.constant 416 : index
    %c0_56 = arith.constant 0 : index
    %209 = vector.load %arg6[%c416, %c0_56] : memref<1056x128xf32, #tpu.memory_space<vmem>>, vector<64x32xf32>
    %cst_57 = arith.constant dense<0.000000e+00> : vector<16x64xf32>
    %210 = tpu.matmul %207, %208, %cst_57 {dimension_numbers = #tpu.dot_dimension_numbers<[1], [0], [0], [1], [0, 0, 1, 1], [], []>} : vector<16x32xf32>, vector<32x64xf32>, vector<16x64xf32> -> vector<16x64xf32>
    %cst_58 = arith.constant 0.000000e+00 : f32
    %211 = vector.broadcast %cst_58 : f32 to vector<16x64xf32>
    %212 = arith.maximumf %210, %211 : vector<16x64xf32>
    %cst_59 = arith.constant dense<0.000000e+00> : vector<16x32xf32>
    %213 = tpu.matmul %212, %209, %cst_59 {dimension_numbers = #tpu.dot_dimension_numbers<[1], [0], [0], [1], [0, 0, 1, 1], [], []>} : vector<16x64xf32>, vector<64x32xf32>, vector<16x32xf32> -> vector<16x32xf32>
    %214 = arith.addf %194, %213 : vector<16x32xf32>
    %c480 = arith.constant 480 : index
    %c0_60 = arith.constant 0 : index
    %215 = vector.load %arg6[%c480, %c0_60] : memref<1056x128xf32, #tpu.memory_space<vmem>>, vector<1x32xf32>
    %216 = arith.mulf %214, %214 : vector<16x32xf32>
    %cst_61 = arith.constant dense<0.000000e+00> : vector<16xf32>
    %217 = vector.multi_reduction <add>, %216, %cst_61 [1] : vector<16x32xf32> to vector<16xf32>
    %218 = vector.shape_cast %217 : vector<16xf32> to vector<16x1xf32>
    %cst_62 = arith.constant 3.200000e+01 : f32
    %219 = vector.broadcast %cst_62 : f32 to vector<16x1xf32>
    %220 = arith.divf %218, %219 : vector<16x1xf32>
    %cst_63 = arith.constant 9.99999997E-7 : f32
    %221 = vector.broadcast %cst_63 : f32 to vector<16x1xf32>
    %222 = arith.addf %220, %221 : vector<16x1xf32>
    %223 = math.rsqrt %222 : vector<16x1xf32>
    %224 = vector.broadcast %223 : vector<16x1xf32> to vector<16x32xf32>
    %225 = arith.mulf %214, %224 : vector<16x32xf32>
    %226 = vector.broadcast %215 : vector<1x32xf32> to vector<16x32xf32>
    %227 = arith.mulf %225, %226 : vector<16x32xf32>
    %c0_64 = arith.constant 0 : index
    %c0_65 = arith.constant 0 : index
    %228 = vector.load %arg2[%c0_64, %c0_65] : memref<16x128xf32, #tpu.memory_space<vmem>>, vector<16x128xf32>
    %cst_66 = arith.constant dense<0.000000e+00> : vector<16x32xf32>
    %229 = tpu.matmul %228, %0, %cst_66 {dimension_numbers = #tpu.dot_dimension_numbers<[1], [0], [0], [1], [0, 0, 1, 1], [], []>} : vector<16x128xf32>, vector<128x32xf32>, vector<16x32xf32> -> vector<16x32xf32>
    %c488 = arith.constant 488 : index
    %c0_67 = arith.constant 0 : index
    %230 = vector.load %arg6[%c488, %c0_67] : memref<1056x128xf32, #tpu.memory_space<vmem>>, vector<1x32xf32>
    %231 = arith.mulf %229, %229 : vector<16x32xf32>
    %cst_68 = arith.constant dense<0.000000e+00> : vector<16xf32>
    %232 = vector.multi_reduction <add>, %231, %cst_68 [1] : vector<16x32xf32> to vector<16xf32>
    %233 = vector.shape_cast %232 : vector<16xf32> to vector<16x1xf32>
    %cst_69 = arith.constant 3.200000e+01 : f32
    %234 = vector.broadcast %cst_69 : f32 to vector<16x1xf32>
    %235 = arith.divf %233, %234 : vector<16x1xf32>
    %cst_70 = arith.constant 9.99999997E-7 : f32
    %236 = vector.broadcast %cst_70 : f32 to vector<16x1xf32>
    %237 = arith.addf %235, %236 : vector<16x1xf32>
    %238 = math.rsqrt %237 : vector<16x1xf32>
    %239 = vector.broadcast %238 : vector<16x1xf32> to vector<16x32xf32>
    %240 = arith.mulf %229, %239 : vector<16x32xf32>
    %241 = vector.broadcast %230 : vector<1x32xf32> to vector<16x32xf32>
    %242 = arith.mulf %240, %241 : vector<16x32xf32>
    %c512 = arith.constant 512 : index
    %c0_71 = arith.constant 0 : index
    %243 = vector.load %arg6[%c512, %c0_71] : memref<1056x128xf32, #tpu.memory_space<vmem>>, vector<32x96xf32>
    %c544 = arith.constant 544 : index
    %c0_72 = arith.constant 0 : index
    %244 = vector.load %arg6[%c544, %c0_72] : memref<1056x128xf32, #tpu.memory_space<vmem>>, vector<32x32xf32>
    %cst_73 = arith.constant dense<0.000000e+00> : vector<16x96xf32>
    %245 = tpu.matmul %242, %243, %cst_73 {dimension_numbers = #tpu.dot_dimension_numbers<[1], [0], [0], [1], [0, 0, 1, 1], [], []>} : vector<16x32xf32>, vector<32x96xf32>, vector<16x96xf32> -> vector<16x96xf32>
    %246 = vector.extract_strided_slice %245 {offsets = [0, 0], sizes = [16, 32], strides = [1, 1]} : vector<16x96xf32> to vector<16x32xf32>
    %247 = vector.extract_strided_slice %245 {offsets = [0, 32], sizes = [16, 32], strides = [1, 1]} : vector<16x96xf32> to vector<16x32xf32>
    %248 = vector.extract_strided_slice %245 {offsets = [0, 64], sizes = [16, 32], strides = [1, 1]} : vector<16x96xf32> to vector<16x32xf32>
    %249 = vector.extract_strided_slice %246 {offsets = [0, 0], sizes = [8, 32], strides = [1, 1]} : vector<16x32xf32> to vector<8x32xf32>
    %250 = vector.extract_strided_slice %247 {offsets = [0, 0], sizes = [8, 32], strides = [1, 1]} : vector<16x32xf32> to vector<8x32xf32>
    %251 = vector.extract_strided_slice %248 {offsets = [0, 0], sizes = [8, 32], strides = [1, 1]} : vector<16x32xf32> to vector<8x32xf32>
    %252 = arith.mulf %250, %31 : vector<8x32xf32>
    %253 = arith.mulf %250, %38 : vector<8x32xf32>
    %254 = arith.mulf %250, %45 : vector<8x32xf32>
    %255 = arith.mulf %250, %52 : vector<8x32xf32>
    %256 = tpu.concatenate %252, %253, %254, %255 in 0 : vector<8x32xf32>, vector<8x32xf32>, vector<8x32xf32>, vector<8x32xf32> -> vector<32x32xf32>
    %257 = arith.mulf %251, %31 : vector<8x32xf32>
    %258 = arith.mulf %251, %38 : vector<8x32xf32>
    %259 = arith.mulf %251, %45 : vector<8x32xf32>
    %260 = arith.mulf %251, %52 : vector<8x32xf32>
    %261 = tpu.concatenate %257, %258, %259, %260 in 0 : vector<8x32xf32>, vector<8x32xf32>, vector<8x32xf32>, vector<8x32xf32> -> vector<32x32xf32>
    %cst_74 = arith.constant dense<0.000000e+00> : vector<8x32xf32>
    %262 = tpu.matmul %249, %256, %cst_74 {dimension_numbers = #tpu.dot_dimension_numbers<[1], [1], [0], [0], [0, 0, 1, 0], [], []>} : vector<8x32xf32>, vector<32x32xf32>, vector<8x32xf32> -> vector<8x32xf32>
    %263 = arith.addf %262, %2 : vector<8x32xf32>
    %cst_75 = arith.constant dense<0xFF800000> : vector<8xf32>
    %264 = vector.multi_reduction <maximumf>, %263, %cst_75 [1] : vector<8x32xf32> to vector<8xf32>
    %265 = vector.shape_cast %264 : vector<8xf32> to vector<8x1xf32>
    %266 = vector.broadcast %265 : vector<8x1xf32> to vector<8x32xf32>
    %267 = arith.subf %263, %266 : vector<8x32xf32>
    %268 = math.exp %267 : vector<8x32xf32>
    %cst_76 = arith.constant dense<0.000000e+00> : vector<8x32xf32>
    %269 = tpu.matmul %268, %261, %cst_76 {dimension_numbers = #tpu.dot_dimension_numbers<[1], [0], [0], [1], [0, 0, 1, 1], [], []>} : vector<8x32xf32>, vector<32x32xf32>, vector<8x32xf32> -> vector<8x32xf32>
    %cst_77 = arith.constant dense<0.000000e+00> : vector<8x32xf32>
    %270 = tpu.matmul %268, %53, %cst_77 {dimension_numbers = #tpu.dot_dimension_numbers<[1], [0], [0], [1], [0, 0, 1, 1], [], []>} : vector<8x32xf32>, vector<32x32xf32>, vector<8x32xf32> -> vector<8x32xf32>
    %271 = tpu.reciprocal %270 {approx = true} : vector<8x32xf32> -> vector<8x32xf32>
    %272 = arith.mulf %269, %271 : vector<8x32xf32>
    %273 = vector.extract_strided_slice %246 {offsets = [8, 0], sizes = [8, 32], strides = [1, 1]} : vector<16x32xf32> to vector<8x32xf32>
    %274 = vector.extract_strided_slice %247 {offsets = [8, 0], sizes = [8, 32], strides = [1, 1]} : vector<16x32xf32> to vector<8x32xf32>
    %275 = vector.extract_strided_slice %248 {offsets = [8, 0], sizes = [8, 32], strides = [1, 1]} : vector<16x32xf32> to vector<8x32xf32>
    %276 = arith.mulf %274, %31 : vector<8x32xf32>
    %277 = arith.mulf %274, %38 : vector<8x32xf32>
    %278 = arith.mulf %274, %45 : vector<8x32xf32>
    %279 = arith.mulf %274, %52 : vector<8x32xf32>
    %280 = tpu.concatenate %276, %277, %278, %279 in 0 : vector<8x32xf32>, vector<8x32xf32>, vector<8x32xf32>, vector<8x32xf32> -> vector<32x32xf32>
    %281 = arith.mulf %275, %31 : vector<8x32xf32>
    %282 = arith.mulf %275, %38 : vector<8x32xf32>
    %283 = arith.mulf %275, %45 : vector<8x32xf32>
    %284 = arith.mulf %275, %52 : vector<8x32xf32>
    %285 = tpu.concatenate %281, %282, %283, %284 in 0 : vector<8x32xf32>, vector<8x32xf32>, vector<8x32xf32>, vector<8x32xf32> -> vector<32x32xf32>
    %cst_78 = arith.constant dense<0.000000e+00> : vector<8x32xf32>
    %286 = tpu.matmul %273, %280, %cst_78 {dimension_numbers = #tpu.dot_dimension_numbers<[1], [1], [0], [0], [0, 0, 1, 0], [], []>} : vector<8x32xf32>, vector<32x32xf32>, vector<8x32xf32> -> vector<8x32xf32>
    %287 = arith.addf %286, %2 : vector<8x32xf32>
    %cst_79 = arith.constant dense<0xFF800000> : vector<8xf32>
    %288 = vector.multi_reduction <maximumf>, %287, %cst_79 [1] : vector<8x32xf32> to vector<8xf32>
    %289 = vector.shape_cast %288 : vector<8xf32> to vector<8x1xf32>
    %290 = vector.broadcast %289 : vector<8x1xf32> to vector<8x32xf32>
    %291 = arith.subf %287, %290 : vector<8x32xf32>
    %292 = math.exp %291 : vector<8x32xf32>
    %cst_80 = arith.constant dense<0.000000e+00> : vector<8x32xf32>
    %293 = tpu.matmul %292, %285, %cst_80 {dimension_numbers = #tpu.dot_dimension_numbers<[1], [0], [0], [1], [0, 0, 1, 1], [], []>} : vector<8x32xf32>, vector<32x32xf32>, vector<8x32xf32> -> vector<8x32xf32>
    %cst_81 = arith.constant dense<0.000000e+00> : vector<8x32xf32>
    %294 = tpu.matmul %292, %53, %cst_81 {dimension_numbers = #tpu.dot_dimension_numbers<[1], [0], [0], [1], [0, 0, 1, 1], [], []>} : vector<8x32xf32>, vector<32x32xf32>, vector<8x32xf32> -> vector<8x32xf32>
    %295 = tpu.reciprocal %294 {approx = true} : vector<8x32xf32> -> vector<8x32xf32>
    %296 = arith.mulf %293, %295 : vector<8x32xf32>
    %297 = tpu.concatenate %272, %296 in 0 : vector<8x32xf32>, vector<8x32xf32> -> vector<16x32xf32>
    %cst_82 = arith.constant dense<0.000000e+00> : vector<16x32xf32>
    %298 = tpu.matmul %297, %244, %cst_82 {dimension_numbers = #tpu.dot_dimension_numbers<[1], [0], [0], [1], [0, 0, 1, 1], [], []>} : vector<16x32xf32>, vector<32x32xf32>, vector<16x32xf32> -> vector<16x32xf32>
    %299 = arith.addf %229, %298 : vector<16x32xf32>
    %c496 = arith.constant 496 : index
    %c0_83 = arith.constant 0 : index
    %300 = vector.load %arg6[%c496, %c0_83] : memref<1056x128xf32, #tpu.memory_space<vmem>>, vector<1x32xf32>
    %301 = arith.mulf %299, %299 : vector<16x32xf32>
    %cst_84 = arith.constant dense<0.000000e+00> : vector<16xf32>
    %302 = vector.multi_reduction <add>, %301, %cst_84 [1] : vector<16x32xf32> to vector<16xf32>
    %303 = vector.shape_cast %302 : vector<16xf32> to vector<16x1xf32>
    %cst_85 = arith.constant 3.200000e+01 : f32
    %304 = vector.broadcast %cst_85 : f32 to vector<16x1xf32>
    %305 = arith.divf %303, %304 : vector<16x1xf32>
    %cst_86 = arith.constant 9.99999997E-7 : f32
    %306 = vector.broadcast %cst_86 : f32 to vector<16x1xf32>
    %307 = arith.addf %305, %306 : vector<16x1xf32>
    %308 = math.rsqrt %307 : vector<16x1xf32>
    %309 = vector.broadcast %308 : vector<16x1xf32> to vector<16x32xf32>
    %310 = arith.mulf %299, %309 : vector<16x32xf32>
    %311 = vector.broadcast %300 : vector<1x32xf32> to vector<16x32xf32>
    %312 = arith.mulf %310, %311 : vector<16x32xf32>
    %c576 = arith.constant 576 : index
    %c0_87 = arith.constant 0 : index
    %313 = vector.load %arg6[%c576, %c0_87] : memref<1056x128xf32, #tpu.memory_space<vmem>>, vector<32x32xf32>
    %c608 = arith.constant 608 : index
    %c0_88 = arith.constant 0 : index
    %314 = vector.load %arg6[%c608, %c0_88] : memref<1056x128xf32, #tpu.memory_space<vmem>>, vector<32x64xf32>
    %c640 = arith.constant 640 : index
    %c0_89 = arith.constant 0 : index
    %315 = vector.load %arg6[%c640, %c0_89] : memref<1056x128xf32, #tpu.memory_space<vmem>>, vector<32x32xf32>
    %cst_90 = arith.constant dense<0.000000e+00> : vector<16x32xf32>
    %316 = tpu.matmul %312, %313, %cst_90 {dimension_numbers = #tpu.dot_dimension_numbers<[1], [0], [0], [1], [0, 0, 1, 1], [], []>} : vector<16x32xf32>, vector<32x32xf32>, vector<16x32xf32> -> vector<16x32xf32>
    %cst_91 = arith.constant dense<0.000000e+00> : vector<16x64xf32>
    %317 = tpu.matmul %227, %314, %cst_91 {dimension_numbers = #tpu.dot_dimension_numbers<[1], [0], [0], [1], [0, 0, 1, 1], [], []>} : vector<16x32xf32>, vector<32x64xf32>, vector<16x64xf32> -> vector<16x64xf32>
    %318 = vector.extract_strided_slice %317 {offsets = [0, 0], sizes = [16, 32], strides = [1, 1]} : vector<16x64xf32> to vector<16x32xf32>
    %319 = vector.extract_strided_slice %317 {offsets = [0, 32], sizes = [16, 32], strides = [1, 1]} : vector<16x64xf32> to vector<16x32xf32>
    %320 = vector.extract_strided_slice %316 {offsets = [0, 0], sizes = [8, 32], strides = [1, 1]} : vector<16x32xf32> to vector<8x32xf32>
    %321 = vector.extract_strided_slice %318 {offsets = [0, 0], sizes = [8, 32], strides = [1, 1]} : vector<16x32xf32> to vector<8x32xf32>
    %322 = vector.extract_strided_slice %319 {offsets = [0, 0], sizes = [8, 32], strides = [1, 1]} : vector<16x32xf32> to vector<8x32xf32>
    %323 = arith.mulf %321, %31 : vector<8x32xf32>
    %324 = arith.mulf %321, %38 : vector<8x32xf32>
    %325 = arith.mulf %321, %45 : vector<8x32xf32>
    %326 = arith.mulf %321, %52 : vector<8x32xf32>
    %327 = tpu.concatenate %323, %324, %325, %326 in 0 : vector<8x32xf32>, vector<8x32xf32>, vector<8x32xf32>, vector<8x32xf32> -> vector<32x32xf32>
    %328 = arith.mulf %322, %31 : vector<8x32xf32>
    %329 = arith.mulf %322, %38 : vector<8x32xf32>
    %330 = arith.mulf %322, %45 : vector<8x32xf32>
    %331 = arith.mulf %322, %52 : vector<8x32xf32>
    %332 = tpu.concatenate %328, %329, %330, %331 in 0 : vector<8x32xf32>, vector<8x32xf32>, vector<8x32xf32>, vector<8x32xf32> -> vector<32x32xf32>
    %cst_92 = arith.constant dense<0.000000e+00> : vector<8x32xf32>
    %333 = tpu.matmul %320, %327, %cst_92 {dimension_numbers = #tpu.dot_dimension_numbers<[1], [1], [0], [0], [0, 0, 1, 0], [], []>} : vector<8x32xf32>, vector<32x32xf32>, vector<8x32xf32> -> vector<8x32xf32>
    %cst_93 = arith.constant dense<0xFF800000> : vector<8xf32>
    %334 = vector.multi_reduction <maximumf>, %333, %cst_93 [1] : vector<8x32xf32> to vector<8xf32>
    %335 = vector.shape_cast %334 : vector<8xf32> to vector<8x1xf32>
    %336 = vector.broadcast %335 : vector<8x1xf32> to vector<8x32xf32>
    %337 = arith.subf %333, %336 : vector<8x32xf32>
    %338 = math.exp %337 : vector<8x32xf32>
    %cst_94 = arith.constant dense<0.000000e+00> : vector<8x32xf32>
    %339 = tpu.matmul %338, %332, %cst_94 {dimension_numbers = #tpu.dot_dimension_numbers<[1], [0], [0], [1], [0, 0, 1, 1], [], []>} : vector<8x32xf32>, vector<32x32xf32>, vector<8x32xf32> -> vector<8x32xf32>
    %cst_95 = arith.constant dense<0.000000e+00> : vector<8x32xf32>
    %340 = tpu.matmul %338, %53, %cst_95 {dimension_numbers = #tpu.dot_dimension_numbers<[1], [0], [0], [1], [0, 0, 1, 1], [], []>} : vector<8x32xf32>, vector<32x32xf32>, vector<8x32xf32> -> vector<8x32xf32>
    %341 = tpu.reciprocal %340 {approx = true} : vector<8x32xf32> -> vector<8x32xf32>
    %342 = arith.mulf %339, %341 : vector<8x32xf32>
    %343 = vector.extract_strided_slice %316 {offsets = [8, 0], sizes = [8, 32], strides = [1, 1]} : vector<16x32xf32> to vector<8x32xf32>
    %344 = vector.extract_strided_slice %318 {offsets = [8, 0], sizes = [8, 32], strides = [1, 1]} : vector<16x32xf32> to vector<8x32xf32>
    %345 = vector.extract_strided_slice %319 {offsets = [8, 0], sizes = [8, 32], strides = [1, 1]} : vector<16x32xf32> to vector<8x32xf32>
    %346 = arith.mulf %344, %31 : vector<8x32xf32>
    %347 = arith.mulf %344, %38 : vector<8x32xf32>
    %348 = arith.mulf %344, %45 : vector<8x32xf32>
    %349 = arith.mulf %344, %52 : vector<8x32xf32>
    %350 = tpu.concatenate %346, %347, %348, %349 in 0 : vector<8x32xf32>, vector<8x32xf32>, vector<8x32xf32>, vector<8x32xf32> -> vector<32x32xf32>
    %351 = arith.mulf %345, %31 : vector<8x32xf32>
    %352 = arith.mulf %345, %38 : vector<8x32xf32>
    %353 = arith.mulf %345, %45 : vector<8x32xf32>
    %354 = arith.mulf %345, %52 : vector<8x32xf32>
    %355 = tpu.concatenate %351, %352, %353, %354 in 0 : vector<8x32xf32>, vector<8x32xf32>, vector<8x32xf32>, vector<8x32xf32> -> vector<32x32xf32>
    %cst_96 = arith.constant dense<0.000000e+00> : vector<8x32xf32>
    %356 = tpu.matmul %343, %350, %cst_96 {dimension_numbers = #tpu.dot_dimension_numbers<[1], [1], [0], [0], [0, 0, 1, 0], [], []>} : vector<8x32xf32>, vector<32x32xf32>, vector<8x32xf32> -> vector<8x32xf32>
    %cst_97 = arith.constant dense<0xFF800000> : vector<8xf32>
    %357 = vector.multi_reduction <maximumf>, %356, %cst_97 [1] : vector<8x32xf32> to vector<8xf32>
    %358 = vector.shape_cast %357 : vector<8xf32> to vector<8x1xf32>
    %359 = vector.broadcast %358 : vector<8x1xf32> to vector<8x32xf32>
    %360 = arith.subf %356, %359 : vector<8x32xf32>
    %361 = math.exp %360 : vector<8x32xf32>
    %cst_98 = arith.constant dense<0.000000e+00> : vector<8x32xf32>
    %362 = tpu.matmul %361, %355, %cst_98 {dimension_numbers = #tpu.dot_dimension_numbers<[1], [0], [0], [1], [0, 0, 1, 1], [], []>} : vector<8x32xf32>, vector<32x32xf32>, vector<8x32xf32> -> vector<8x32xf32>
    %cst_99 = arith.constant dense<0.000000e+00> : vector<8x32xf32>
    %363 = tpu.matmul %361, %53, %cst_99 {dimension_numbers = #tpu.dot_dimension_numbers<[1], [0], [0], [1], [0, 0, 1, 1], [], []>} : vector<8x32xf32>, vector<32x32xf32>, vector<8x32xf32> -> vector<8x32xf32>
    %364 = tpu.reciprocal %363 {approx = true} : vector<8x32xf32> -> vector<8x32xf32>
    %365 = arith.mulf %362, %364 : vector<8x32xf32>
    %366 = tpu.concatenate %342, %365 in 0 : vector<8x32xf32>, vector<8x32xf32> -> vector<16x32xf32>
    %cst_100 = arith.constant dense<0.000000e+00> : vector<16x32xf32>
    %367 = tpu.matmul %366, %315, %cst_100 {dimension_numbers = #tpu.dot_dimension_numbers<[1], [0], [0], [1], [0, 0, 1, 1], [], []>} : vector<16x32xf32>, vector<32x32xf32>, vector<16x32xf32> -> vector<16x32xf32>
    %368 = arith.addf %299, %367 : vector<16x32xf32>
    %c504 = arith.constant 504 : index
    %c0_101 = arith.constant 0 : index
    %369 = vector.load %arg6[%c504, %c0_101] : memref<1056x128xf32, #tpu.memory_space<vmem>>, vector<1x32xf32>
    %370 = arith.mulf %368, %368 : vector<16x32xf32>
    %cst_102 = arith.constant dense<0.000000e+00> : vector<16xf32>
    %371 = vector.multi_reduction <add>, %370, %cst_102 [1] : vector<16x32xf32> to vector<16xf32>
    %372 = vector.shape_cast %371 : vector<16xf32> to vector<16x1xf32>
    %cst_103 = arith.constant 3.200000e+01 : f32
    %373 = vector.broadcast %cst_103 : f32 to vector<16x1xf32>
    %374 = arith.divf %372, %373 : vector<16x1xf32>
    %cst_104 = arith.constant 9.99999997E-7 : f32
    %375 = vector.broadcast %cst_104 : f32 to vector<16x1xf32>
    %376 = arith.addf %374, %375 : vector<16x1xf32>
    %377 = math.rsqrt %376 : vector<16x1xf32>
    %378 = vector.broadcast %377 : vector<16x1xf32> to vector<16x32xf32>
    %379 = arith.mulf %368, %378 : vector<16x32xf32>
    %380 = vector.broadcast %369 : vector<1x32xf32> to vector<16x32xf32>
    %381 = arith.mulf %379, %380 : vector<16x32xf32>
    %c672 = arith.constant 672 : index
    %c0_105 = arith.constant 0 : index
    %382 = vector.load %arg6[%c672, %c0_105] : memref<1056x128xf32, #tpu.memory_space<vmem>>, vector<32x64xf32>
    %c704 = arith.constant 704 : index
    %c0_106 = arith.constant 0 : index
    %383 = vector.load %arg6[%c704, %c0_106] : memref<1056x128xf32, #tpu.memory_space<vmem>>, vector<64x32xf32>
    %cst_107 = arith.constant dense<0.000000e+00> : vector<16x64xf32>
    %384 = tpu.matmul %381, %382, %cst_107 {dimension_numbers = #tpu.dot_dimension_numbers<[1], [0], [0], [1], [0, 0, 1, 1], [], []>} : vector<16x32xf32>, vector<32x64xf32>, vector<16x64xf32> -> vector<16x64xf32>
    %cst_108 = arith.constant 0.000000e+00 : f32
    %385 = vector.broadcast %cst_108 : f32 to vector<16x64xf32>
    %386 = arith.maximumf %384, %385 : vector<16x64xf32>
    %cst_109 = arith.constant dense<0.000000e+00> : vector<16x32xf32>
    %387 = tpu.matmul %386, %383, %cst_109 {dimension_numbers = #tpu.dot_dimension_numbers<[1], [0], [0], [1], [0, 0, 1, 1], [], []>} : vector<16x64xf32>, vector<64x32xf32>, vector<16x32xf32> -> vector<16x32xf32>
    %388 = arith.addf %368, %387 : vector<16x32xf32>
    %c768 = arith.constant 768 : index
    %c0_110 = arith.constant 0 : index
    %389 = vector.load %arg6[%c768, %c0_110] : memref<1056x128xf32, #tpu.memory_space<vmem>>, vector<1x32xf32>
    %390 = arith.mulf %388, %388 : vector<16x32xf32>
    %cst_111 = arith.constant dense<0.000000e+00> : vector<16xf32>
    %391 = vector.multi_reduction <add>, %390, %cst_111 [1] : vector<16x32xf32> to vector<16xf32>
    %392 = vector.shape_cast %391 : vector<16xf32> to vector<16x1xf32>
    %cst_112 = arith.constant 3.200000e+01 : f32
    %393 = vector.broadcast %cst_112 : f32 to vector<16x1xf32>
    %394 = arith.divf %392, %393 : vector<16x1xf32>
    %cst_113 = arith.constant 9.99999997E-7 : f32
    %395 = vector.broadcast %cst_113 : f32 to vector<16x1xf32>
    %396 = arith.addf %394, %395 : vector<16x1xf32>
    %397 = math.rsqrt %396 : vector<16x1xf32>
    %398 = vector.broadcast %397 : vector<16x1xf32> to vector<16x32xf32>
    %399 = arith.mulf %388, %398 : vector<16x32xf32>
    %400 = vector.broadcast %389 : vector<1x32xf32> to vector<16x32xf32>
    %401 = arith.mulf %399, %400 : vector<16x32xf32>
    %c792 = arith.constant 792 : index
    %c0_114 = arith.constant 0 : index
    %402 = vector.load %arg6[%c792, %c0_114] : memref<1056x128xf32, #tpu.memory_space<vmem>>, vector<32x96xf32>
    %c824 = arith.constant 824 : index
    %c0_115 = arith.constant 0 : index
    %403 = vector.load %arg6[%c824, %c0_115] : memref<1056x128xf32, #tpu.memory_space<vmem>>, vector<32x32xf32>
    %cst_116 = arith.constant dense<0.000000e+00> : vector<16x96xf32>
    %404 = tpu.matmul %401, %402, %cst_116 {dimension_numbers = #tpu.dot_dimension_numbers<[1], [0], [0], [1], [0, 0, 1, 1], [], []>} : vector<16x32xf32>, vector<32x96xf32>, vector<16x96xf32> -> vector<16x96xf32>
    %405 = vector.extract_strided_slice %404 {offsets = [0, 0], sizes = [16, 32], strides = [1, 1]} : vector<16x96xf32> to vector<16x32xf32>
    %406 = vector.extract_strided_slice %404 {offsets = [0, 32], sizes = [16, 32], strides = [1, 1]} : vector<16x96xf32> to vector<16x32xf32>
    %407 = vector.extract_strided_slice %404 {offsets = [0, 64], sizes = [16, 32], strides = [1, 1]} : vector<16x96xf32> to vector<16x32xf32>
    %408 = vector.extract_strided_slice %405 {offsets = [0, 0], sizes = [8, 32], strides = [1, 1]} : vector<16x32xf32> to vector<8x32xf32>
    %409 = vector.extract_strided_slice %406 {offsets = [0, 0], sizes = [8, 32], strides = [1, 1]} : vector<16x32xf32> to vector<8x32xf32>
    %410 = vector.extract_strided_slice %407 {offsets = [0, 0], sizes = [8, 32], strides = [1, 1]} : vector<16x32xf32> to vector<8x32xf32>
    %411 = arith.mulf %409, %31 : vector<8x32xf32>
    %412 = arith.mulf %409, %38 : vector<8x32xf32>
    %413 = arith.mulf %409, %45 : vector<8x32xf32>
    %414 = arith.mulf %409, %52 : vector<8x32xf32>
    %415 = tpu.concatenate %411, %412, %413, %414 in 0 : vector<8x32xf32>, vector<8x32xf32>, vector<8x32xf32>, vector<8x32xf32> -> vector<32x32xf32>
    %416 = arith.mulf %410, %31 : vector<8x32xf32>
    %417 = arith.mulf %410, %38 : vector<8x32xf32>
    %418 = arith.mulf %410, %45 : vector<8x32xf32>
    %419 = arith.mulf %410, %52 : vector<8x32xf32>
    %420 = tpu.concatenate %416, %417, %418, %419 in 0 : vector<8x32xf32>, vector<8x32xf32>, vector<8x32xf32>, vector<8x32xf32> -> vector<32x32xf32>
    %cst_117 = arith.constant dense<0.000000e+00> : vector<8x32xf32>
    %421 = tpu.matmul %408, %415, %cst_117 {dimension_numbers = #tpu.dot_dimension_numbers<[1], [1], [0], [0], [0, 0, 1, 0], [], []>} : vector<8x32xf32>, vector<32x32xf32>, vector<8x32xf32> -> vector<8x32xf32>
    %422 = arith.addf %421, %2 : vector<8x32xf32>
    %cst_118 = arith.constant dense<0xFF800000> : vector<8xf32>
    %423 = vector.multi_reduction <maximumf>, %422, %cst_118 [1] : vector<8x32xf32> to vector<8xf32>
    %424 = vector.shape_cast %423 : vector<8xf32> to vector<8x1xf32>
    %425 = vector.broadcast %424 : vector<8x1xf32> to vector<8x32xf32>
    %426 = arith.subf %422, %425 : vector<8x32xf32>
    %427 = math.exp %426 : vector<8x32xf32>
    %cst_119 = arith.constant dense<0.000000e+00> : vector<8x32xf32>
    %428 = tpu.matmul %427, %420, %cst_119 {dimension_numbers = #tpu.dot_dimension_numbers<[1], [0], [0], [1], [0, 0, 1, 1], [], []>} : vector<8x32xf32>, vector<32x32xf32>, vector<8x32xf32> -> vector<8x32xf32>
    %cst_120 = arith.constant dense<0.000000e+00> : vector<8x32xf32>
    %429 = tpu.matmul %427, %53, %cst_120 {dimension_numbers = #tpu.dot_dimension_numbers<[1], [0], [0], [1], [0, 0, 1, 1], [], []>} : vector<8x32xf32>, vector<32x32xf32>, vector<8x32xf32> -> vector<8x32xf32>
    %430 = tpu.reciprocal %429 {approx = true} : vector<8x32xf32> -> vector<8x32xf32>
    %431 = arith.mulf %428, %430 : vector<8x32xf32>
    %432 = vector.extract_strided_slice %405 {offsets = [8, 0], sizes = [8, 32], strides = [1, 1]} : vector<16x32xf32> to vector<8x32xf32>
    %433 = vector.extract_strided_slice %406 {offsets = [8, 0], sizes = [8, 32], strides = [1, 1]} : vector<16x32xf32> to vector<8x32xf32>
    %434 = vector.extract_strided_slice %407 {offsets = [8, 0], sizes = [8, 32], strides = [1, 1]} : vector<16x32xf32> to vector<8x32xf32>
    %435 = arith.mulf %433, %31 : vector<8x32xf32>
    %436 = arith.mulf %433, %38 : vector<8x32xf32>
    %437 = arith.mulf %433, %45 : vector<8x32xf32>
    %438 = arith.mulf %433, %52 : vector<8x32xf32>
    %439 = tpu.concatenate %435, %436, %437, %438 in 0 : vector<8x32xf32>, vector<8x32xf32>, vector<8x32xf32>, vector<8x32xf32> -> vector<32x32xf32>
    %440 = arith.mulf %434, %31 : vector<8x32xf32>
    %441 = arith.mulf %434, %38 : vector<8x32xf32>
    %442 = arith.mulf %434, %45 : vector<8x32xf32>
    %443 = arith.mulf %434, %52 : vector<8x32xf32>
    %444 = tpu.concatenate %440, %441, %442, %443 in 0 : vector<8x32xf32>, vector<8x32xf32>, vector<8x32xf32>, vector<8x32xf32> -> vector<32x32xf32>
    %cst_121 = arith.constant dense<0.000000e+00> : vector<8x32xf32>
    %445 = tpu.matmul %432, %439, %cst_121 {dimension_numbers = #tpu.dot_dimension_numbers<[1], [1], [0], [0], [0, 0, 1, 0], [], []>} : vector<8x32xf32>, vector<32x32xf32>, vector<8x32xf32> -> vector<8x32xf32>
    %446 = arith.addf %445, %2 : vector<8x32xf32>
    %cst_122 = arith.constant dense<0xFF800000> : vector<8xf32>
    %447 = vector.multi_reduction <maximumf>, %446, %cst_122 [1] : vector<8x32xf32> to vector<8xf32>
    %448 = vector.shape_cast %447 : vector<8xf32> to vector<8x1xf32>
    %449 = vector.broadcast %448 : vector<8x1xf32> to vector<8x32xf32>
    %450 = arith.subf %446, %449 : vector<8x32xf32>
    %451 = math.exp %450 : vector<8x32xf32>
    %cst_123 = arith.constant dense<0.000000e+00> : vector<8x32xf32>
    %452 = tpu.matmul %451, %444, %cst_123 {dimension_numbers = #tpu.dot_dimension_numbers<[1], [0], [0], [1], [0, 0, 1, 1], [], []>} : vector<8x32xf32>, vector<32x32xf32>, vector<8x32xf32> -> vector<8x32xf32>
    %cst_124 = arith.constant dense<0.000000e+00> : vector<8x32xf32>
    %453 = tpu.matmul %451, %53, %cst_124 {dimension_numbers = #tpu.dot_dimension_numbers<[1], [0], [0], [1], [0, 0, 1, 1], [], []>} : vector<8x32xf32>, vector<32x32xf32>, vector<8x32xf32> -> vector<8x32xf32>
    %454 = tpu.reciprocal %453 {approx = true} : vector<8x32xf32> -> vector<8x32xf32>
    %455 = arith.mulf %452, %454 : vector<8x32xf32>
    %456 = tpu.concatenate %431, %455 in 0 : vector<8x32xf32>, vector<8x32xf32> -> vector<16x32xf32>
    %cst_125 = arith.constant dense<0.000000e+00> : vector<16x32xf32>
    %457 = tpu.matmul %456, %403, %cst_125 {dimension_numbers = #tpu.dot_dimension_numbers<[1], [0], [0], [1], [0, 0, 1, 1], [], []>} : vector<16x32xf32>, vector<32x32xf32>, vector<16x32xf32> -> vector<16x32xf32>
    %458 = arith.addf %388, %457 : vector<16x32xf32>
    %c776 = arith.constant 776 : index
    %c0_126 = arith.constant 0 : index
    %459 = vector.load %arg6[%c776, %c0_126] : memref<1056x128xf32, #tpu.memory_space<vmem>>, vector<1x32xf32>
    %460 = arith.mulf %458, %458 : vector<16x32xf32>
    %cst_127 = arith.constant dense<0.000000e+00> : vector<16xf32>
    %461 = vector.multi_reduction <add>, %460, %cst_127 [1] : vector<16x32xf32> to vector<16xf32>
    %462 = vector.shape_cast %461 : vector<16xf32> to vector<16x1xf32>
    %cst_128 = arith.constant 3.200000e+01 : f32
    %463 = vector.broadcast %cst_128 : f32 to vector<16x1xf32>
    %464 = arith.divf %462, %463 : vector<16x1xf32>
    %cst_129 = arith.constant 9.99999997E-7 : f32
    %465 = vector.broadcast %cst_129 : f32 to vector<16x1xf32>
    %466 = arith.addf %464, %465 : vector<16x1xf32>
    %467 = math.rsqrt %466 : vector<16x1xf32>
    %468 = vector.broadcast %467 : vector<16x1xf32> to vector<16x32xf32>
    %469 = arith.mulf %458, %468 : vector<16x32xf32>
    %470 = vector.broadcast %459 : vector<1x32xf32> to vector<16x32xf32>
    %471 = arith.mulf %469, %470 : vector<16x32xf32>
    %c856 = arith.constant 856 : index
    %c0_130 = arith.constant 0 : index
    %472 = vector.load %arg6[%c856, %c0_130] : memref<1056x128xf32, #tpu.memory_space<vmem>>, vector<32x32xf32>
    %c888 = arith.constant 888 : index
    %c0_131 = arith.constant 0 : index
    %473 = vector.load %arg6[%c888, %c0_131] : memref<1056x128xf32, #tpu.memory_space<vmem>>, vector<32x64xf32>
    %c920 = arith.constant 920 : index
    %c0_132 = arith.constant 0 : index
    %474 = vector.load %arg6[%c920, %c0_132] : memref<1056x128xf32, #tpu.memory_space<vmem>>, vector<32x32xf32>
    %cst_133 = arith.constant dense<0.000000e+00> : vector<16x32xf32>
    %475 = tpu.matmul %471, %472, %cst_133 {dimension_numbers = #tpu.dot_dimension_numbers<[1], [0], [0], [1], [0, 0, 1, 1], [], []>} : vector<16x32xf32>, vector<32x32xf32>, vector<16x32xf32> -> vector<16x32xf32>
    %cst_134 = arith.constant dense<0.000000e+00> : vector<16x64xf32>
    %476 = tpu.matmul %227, %473, %cst_134 {dimension_numbers = #tpu.dot_dimension_numbers<[1], [0], [0], [1], [0, 0, 1, 1], [], []>} : vector<16x32xf32>, vector<32x64xf32>, vector<16x64xf32> -> vector<16x64xf32>
    %477 = vector.extract_strided_slice %476 {offsets = [0, 0], sizes = [16, 32], strides = [1, 1]} : vector<16x64xf32> to vector<16x32xf32>
    %478 = vector.extract_strided_slice %476 {offsets = [0, 32], sizes = [16, 32], strides = [1, 1]} : vector<16x64xf32> to vector<16x32xf32>
    %479 = vector.extract_strided_slice %475 {offsets = [0, 0], sizes = [8, 32], strides = [1, 1]} : vector<16x32xf32> to vector<8x32xf32>
    %480 = vector.extract_strided_slice %477 {offsets = [0, 0], sizes = [8, 32], strides = [1, 1]} : vector<16x32xf32> to vector<8x32xf32>
    %481 = vector.extract_strided_slice %478 {offsets = [0, 0], sizes = [8, 32], strides = [1, 1]} : vector<16x32xf32> to vector<8x32xf32>
    %482 = arith.mulf %480, %31 : vector<8x32xf32>
    %483 = arith.mulf %480, %38 : vector<8x32xf32>
    %484 = arith.mulf %480, %45 : vector<8x32xf32>
    %485 = arith.mulf %480, %52 : vector<8x32xf32>
    %486 = tpu.concatenate %482, %483, %484, %485 in 0 : vector<8x32xf32>, vector<8x32xf32>, vector<8x32xf32>, vector<8x32xf32> -> vector<32x32xf32>
    %487 = arith.mulf %481, %31 : vector<8x32xf32>
    %488 = arith.mulf %481, %38 : vector<8x32xf32>
    %489 = arith.mulf %481, %45 : vector<8x32xf32>
    %490 = arith.mulf %481, %52 : vector<8x32xf32>
    %491 = tpu.concatenate %487, %488, %489, %490 in 0 : vector<8x32xf32>, vector<8x32xf32>, vector<8x32xf32>, vector<8x32xf32> -> vector<32x32xf32>
    %cst_135 = arith.constant dense<0.000000e+00> : vector<8x32xf32>
    %492 = tpu.matmul %479, %486, %cst_135 {dimension_numbers = #tpu.dot_dimension_numbers<[1], [1], [0], [0], [0, 0, 1, 0], [], []>} : vector<8x32xf32>, vector<32x32xf32>, vector<8x32xf32> -> vector<8x32xf32>
    %cst_136 = arith.constant dense<0xFF800000> : vector<8xf32>
    %493 = vector.multi_reduction <maximumf>, %492, %cst_136 [1] : vector<8x32xf32> to vector<8xf32>
    %494 = vector.shape_cast %493 : vector<8xf32> to vector<8x1xf32>
    %495 = vector.broadcast %494 : vector<8x1xf32> to vector<8x32xf32>
    %496 = arith.subf %492, %495 : vector<8x32xf32>
    %497 = math.exp %496 : vector<8x32xf32>
    %cst_137 = arith.constant dense<0.000000e+00> : vector<8x32xf32>
    %498 = tpu.matmul %497, %491, %cst_137 {dimension_numbers = #tpu.dot_dimension_numbers<[1], [0], [0], [1], [0, 0, 1, 1], [], []>} : vector<8x32xf32>, vector<32x32xf32>, vector<8x32xf32> -> vector<8x32xf32>
    %cst_138 = arith.constant dense<0.000000e+00> : vector<8x32xf32>
    %499 = tpu.matmul %497, %53, %cst_138 {dimension_numbers = #tpu.dot_dimension_numbers<[1], [0], [0], [1], [0, 0, 1, 1], [], []>} : vector<8x32xf32>, vector<32x32xf32>, vector<8x32xf32> -> vector<8x32xf32>
    %500 = tpu.reciprocal %499 {approx = true} : vector<8x32xf32> -> vector<8x32xf32>
    %501 = arith.mulf %498, %500 : vector<8x32xf32>
    %502 = vector.extract_strided_slice %475 {offsets = [8, 0], sizes = [8, 32], strides = [1, 1]} : vector<16x32xf32> to vector<8x32xf32>
    %503 = vector.extract_strided_slice %477 {offsets = [8, 0], sizes = [8, 32], strides = [1, 1]} : vector<16x32xf32> to vector<8x32xf32>
    %504 = vector.extract_strided_slice %478 {offsets = [8, 0], sizes = [8, 32], strides = [1, 1]} : vector<16x32xf32> to vector<8x32xf32>
    %505 = arith.mulf %503, %31 : vector<8x32xf32>
    %506 = arith.mulf %503, %38 : vector<8x32xf32>
    %507 = arith.mulf %503, %45 : vector<8x32xf32>
    %508 = arith.mulf %503, %52 : vector<8x32xf32>
    %509 = tpu.concatenate %505, %506, %507, %508 in 0 : vector<8x32xf32>, vector<8x32xf32>, vector<8x32xf32>, vector<8x32xf32> -> vector<32x32xf32>
    %510 = arith.mulf %504, %31 : vector<8x32xf32>
    %511 = arith.mulf %504, %38 : vector<8x32xf32>
    %512 = arith.mulf %504, %45 : vector<8x32xf32>
    %513 = arith.mulf %504, %52 : vector<8x32xf32>
    %514 = tpu.concatenate %510, %511, %512, %513 in 0 : vector<8x32xf32>, vector<8x32xf32>, vector<8x32xf32>, vector<8x32xf32> -> vector<32x32xf32>
    %cst_139 = arith.constant dense<0.000000e+00> : vector<8x32xf32>
    %515 = tpu.matmul %502, %509, %cst_139 {dimension_numbers = #tpu.dot_dimension_numbers<[1], [1], [0], [0], [0, 0, 1, 0], [], []>} : vector<8x32xf32>, vector<32x32xf32>, vector<8x32xf32> -> vector<8x32xf32>
    %cst_140 = arith.constant dense<0xFF800000> : vector<8xf32>
    %516 = vector.multi_reduction <maximumf>, %515, %cst_140 [1] : vector<8x32xf32> to vector<8xf32>
    %517 = vector.shape_cast %516 : vector<8xf32> to vector<8x1xf32>
    %518 = vector.broadcast %517 : vector<8x1xf32> to vector<8x32xf32>
    %519 = arith.subf %515, %518 : vector<8x32xf32>
    %520 = math.exp %519 : vector<8x32xf32>
    %cst_141 = arith.constant dense<0.000000e+00> : vector<8x32xf32>
    %521 = tpu.matmul %520, %514, %cst_141 {dimension_numbers = #tpu.dot_dimension_numbers<[1], [0], [0], [1], [0, 0, 1, 1], [], []>} : vector<8x32xf32>, vector<32x32xf32>, vector<8x32xf32> -> vector<8x32xf32>
    %cst_142 = arith.constant dense<0.000000e+00> : vector<8x32xf32>
    %522 = tpu.matmul %520, %53, %cst_142 {dimension_numbers = #tpu.dot_dimension_numbers<[1], [0], [0], [1], [0, 0, 1, 1], [], []>} : vector<8x32xf32>, vector<32x32xf32>, vector<8x32xf32> -> vector<8x32xf32>
    %523 = tpu.reciprocal %522 {approx = true} : vector<8x32xf32> -> vector<8x32xf32>
    %524 = arith.mulf %521, %523 : vector<8x32xf32>
    %525 = tpu.concatenate %501, %524 in 0 : vector<8x32xf32>, vector<8x32xf32> -> vector<16x32xf32>
    %cst_143 = arith.constant dense<0.000000e+00> : vector<16x32xf32>
    %526 = tpu.matmul %525, %474, %cst_143 {dimension_numbers = #tpu.dot_dimension_numbers<[1], [0], [0], [1], [0, 0, 1, 1], [], []>} : vector<16x32xf32>, vector<32x32xf32>, vector<16x32xf32> -> vector<16x32xf32>
    %527 = arith.addf %458, %526 : vector<16x32xf32>
    %c784 = arith.constant 784 : index
    %c0_144 = arith.constant 0 : index
    %528 = vector.load %arg6[%c784, %c0_144] : memref<1056x128xf32, #tpu.memory_space<vmem>>, vector<1x32xf32>
    %529 = arith.mulf %527, %527 : vector<16x32xf32>
    %cst_145 = arith.constant dense<0.000000e+00> : vector<16xf32>
    %530 = vector.multi_reduction <add>, %529, %cst_145 [1] : vector<16x32xf32> to vector<16xf32>
    %531 = vector.shape_cast %530 : vector<16xf32> to vector<16x1xf32>
    %cst_146 = arith.constant 3.200000e+01 : f32
    %532 = vector.broadcast %cst_146 : f32 to vector<16x1xf32>
    %533 = arith.divf %531, %532 : vector<16x1xf32>
    %cst_147 = arith.constant 9.99999997E-7 : f32
    %534 = vector.broadcast %cst_147 : f32 to vector<16x1xf32>
    %535 = arith.addf %533, %534 : vector<16x1xf32>
    %536 = math.rsqrt %535 : vector<16x1xf32>
    %537 = vector.broadcast %536 : vector<16x1xf32> to vector<16x32xf32>
    %538 = arith.mulf %527, %537 : vector<16x32xf32>
    %539 = vector.broadcast %528 : vector<1x32xf32> to vector<16x32xf32>
    %540 = arith.mulf %538, %539 : vector<16x32xf32>
    %c952 = arith.constant 952 : index
    %c0_148 = arith.constant 0 : index
    %541 = vector.load %arg6[%c952, %c0_148] : memref<1056x128xf32, #tpu.memory_space<vmem>>, vector<32x64xf32>
    %c984 = arith.constant 984 : index
    %c0_149 = arith.constant 0 : index
    %542 = vector.load %arg6[%c984, %c0_149] : memref<1056x128xf32, #tpu.memory_space<vmem>>, vector<64x32xf32>
    %cst_150 = arith.constant dense<0.000000e+00> : vector<16x64xf32>
    %543 = tpu.matmul %540, %541, %cst_150 {dimension_numbers = #tpu.dot_dimension_numbers<[1], [0], [0], [1], [0, 0, 1, 1], [], []>} : vector<16x32xf32>, vector<32x64xf32>, vector<16x64xf32> -> vector<16x64xf32>
    %cst_151 = arith.constant 0.000000e+00 : f32
    %544 = vector.broadcast %cst_151 : f32 to vector<16x64xf32>
    %545 = arith.maximumf %543, %544 : vector<16x64xf32>
    %cst_152 = arith.constant dense<0.000000e+00> : vector<16x32xf32>
    %546 = tpu.matmul %545, %542, %cst_152 {dimension_numbers = #tpu.dot_dimension_numbers<[1], [0], [0], [1], [0, 0, 1, 1], [], []>} : vector<16x64xf32>, vector<64x32xf32>, vector<16x32xf32> -> vector<16x32xf32>
    %547 = arith.addf %527, %546 : vector<16x32xf32>
    %c1048 = arith.constant 1048 : index
    %c0_153 = arith.constant 0 : index
    %548 = vector.load %arg6[%c1048, %c0_153] : memref<1056x128xf32, #tpu.memory_space<vmem>>, vector<1x32xf32>
    %549 = arith.mulf %547, %547 : vector<16x32xf32>
    %cst_154 = arith.constant dense<0.000000e+00> : vector<16xf32>
    %550 = vector.multi_reduction <add>, %549, %cst_154 [1] : vector<16x32xf32> to vector<16xf32>
    %551 = vector.shape_cast %550 : vector<16xf32> to vector<16x1xf32>
    %cst_155 = arith.constant 3.200000e+01 : f32
    %552 = vector.broadcast %cst_155 : f32 to vector<16x1xf32>
    %553 = arith.divf %551, %552 : vector<16x1xf32>
    %cst_156 = arith.constant 9.99999997E-7 : f32
    %554 = vector.broadcast %cst_156 : f32 to vector<16x1xf32>
    %555 = arith.addf %553, %554 : vector<16x1xf32>
    %556 = math.rsqrt %555 : vector<16x1xf32>
    %557 = vector.broadcast %556 : vector<16x1xf32> to vector<16x32xf32>
    %558 = arith.mulf %547, %557 : vector<16x32xf32>
    %559 = vector.broadcast %548 : vector<1x32xf32> to vector<16x32xf32>
    %560 = arith.mulf %558, %559 : vector<16x32xf32>
    %cst_157 = arith.constant 0.176776692 : f32
    %561 = vector.broadcast %cst_157 : f32 to vector<16x32xf32>
    %562 = arith.mulf %560, %561 : vector<16x32xf32>
    %cst_158 = arith.constant dense<0.000000e+00> : vector<16x128xf32>
    %563 = tpu.matmul %562, %0, %cst_158 {dimension_numbers = #tpu.dot_dimension_numbers<[1], [1], [0], [0], [0, 0, 1, 0], [], []>} : vector<16x32xf32>, vector<128x32xf32>, vector<16x128xf32> -> vector<16x128xf32>
    %c0_159 = arith.constant 0 : index
    %c0_160 = arith.constant 0 : index
    %564 = vector.load %arg8[%c0_159, %c0_160] : memref<16x128xf32, #tpu.memory_space<vmem>>, vector<16x128xf32>
    tpu.vector_store %arg8[%c0_159, %c0_160], %563 {strides = array<i32>} : memref<16x128xf32, #tpu.memory_space<vmem>>, vector<16x128xf32>,
    %565 = vector.extract_strided_slice %563 {offsets = [0, 0], sizes = [16, 64], strides = [1, 1]} : vector<16x128xf32> to vector<16x64xf32>
    %cst_161 = arith.constant dense<0xFF800000> : vector<16xf32>
    %566 = vector.multi_reduction <maximumf>, %565, %cst_161 [1] : vector<16x64xf32> to vector<16xf32>
    %567 = vector.shape_cast %566 : vector<16xf32> to vector<16x1xf32>
    %568 = vector.broadcast %567 : vector<16x1xf32> to vector<16x64xf32>
    %569 = arith.subf %565, %568 : vector<16x64xf32>
    %570 = math.exp %569 : vector<16x64xf32>
    %cst_162 = arith.constant dense<0.000000e+00> : vector<16xf32>
    %571 = vector.multi_reduction <add>, %570, %cst_162 [1] : vector<16x64xf32> to vector<16xf32>
    %572 = vector.shape_cast %571 : vector<16xf32> to vector<16x1xf32>
    %573 = math.log %572 : vector<16x1xf32>
    %574 = arith.addf %573, %567 : vector<16x1xf32>
    %c0_163 = arith.constant 0 : index
    %c0_164 = arith.constant 0 : index
    %575 = vector.load %arg3[%c0_163, %c0_164] : memref<16x128xf32, #tpu.memory_space<vmem>>, vector<16x128xf32>
    %576 = arith.mulf %563, %575 : vector<16x128xf32>
    %cst_165 = arith.constant dense<0.000000e+00> : vector<16xf32>
    %577 = vector.multi_reduction <add>, %576, %cst_165 [1] : vector<16x128xf32> to vector<16xf32>
    %578 = vector.shape_cast %577 : vector<16xf32> to vector<16x1xf32>
    %579 = arith.subf %574, %578 : vector<16x1xf32>
    %580 = vector.shape_cast %579 : vector<16x1xf32> to vector<1x16x1xf32>
    %cst_166 = arith.constant dense<0.000000e+00> : vector<1xf32>
    %581 = vector.multi_reduction <add>, %580, %cst_166 [1, 2] : vector<1x16x1xf32> to vector<1xf32>
    %582 = vector.shape_cast %581 : vector<1xf32> to vector<1x1x1xf32>
    %583 = vector.extract %582[0, 0, 0] : f32 from vector<1x1x1xf32>
    %584 = vector.broadcast %583 : f32 to vector<1x1xf32>
    %cst_167 = arith.constant 1.600000e+01 : f32
    %585 = vector.broadcast %cst_167 : f32 to vector<1x1xf32>
    %586 = arith.divf %584, %585 : vector<1x1xf32>
    %c0_168 = arith.constant 0 : index
    %c0_169 = arith.constant 0 : index
    %587 = vector.load %arg10[%c0_168, %c0_169] : memref<1x1xf32, #tpu.memory_space<vmem>>, vector<1x1xf32>
    tpu.vector_store %arg10[%c0_168, %c0_169], %586 {strides = array<i32>} : memref<1x1xf32, #tpu.memory_space<vmem>>, vector<1x1xf32>,
    %588 = tpu.iota {dimensions = array<i32: 1>} : vector<2x16xi32>
    %589 = tpu.iota {dimensions = array<i32: 0>} : vector<2x16xi32>
    %c8_i32_170 = arith.constant 8 : i32
    %590 = vector.broadcast %c8_i32_170 : i32 to vector<2x16xi32>
    %591 = arith.muli %589, %590 : vector<2x16xi32>
    %c7_i32 = arith.constant 7 : i32
    %592 = vector.broadcast %c7_i32 : i32 to vector<2x16xi32>
    %593 = arith.addi %591, %592 : vector<2x16xi32>
    %594 = arith.cmpi eq, %588, %593 : vector<2x16xi32>
    %595 = arith.extui %594 : vector<2x16xi1> to vector<2x16xi32>
    %596 = arith.sitofp %595 : vector<2x16xi32> to vector<2x16xf32>
    %cst_171 = arith.constant dense<0.000000e+00> : vector<2x32xf32>
    %597 = tpu.matmul %596, %227, %cst_171 {dimension_numbers = #tpu.dot_dimension_numbers<[1], [0], [0], [1], [0, 0, 1, 1], [], []>} : vector<2x16xf32>, vector<16x32xf32>, vector<2x32xf32> -> vector<2x32xf32>
    %c0_172 = arith.constant 0 : index
    %c0_173 = arith.constant 0 : index
    %598 = vector.load %arg7[%c0_172, %c0_173] : memref<192x384xf32, #tpu.memory_space<vmem>>, vector<32x384xf32>
    %cst_174 = arith.constant dense<0.000000e+00> : vector<2x384xf32>
    %599 = tpu.matmul %597, %598, %cst_174 {dimension_numbers = #tpu.dot_dimension_numbers<[1], [0], [0], [1], [0, 0, 1, 1], [], []>} : vector<2x32xf32>, vector<32x384xf32>, vector<2x384xf32> -> vector<2x384xf32>
    %c32 = arith.constant 32 : index
    %c0_175 = arith.constant 0 : index
    %600 = vector.load %arg7[%c32, %c0_175] : memref<192x384xf32, #tpu.memory_space<vmem>>, vector<1x384xf32>
    %601 = vector.broadcast %600 : vector<1x384xf32> to vector<2x384xf32>
    %602 = arith.addf %599, %601 : vector<2x384xf32>
    %cst_176 = arith.constant dense<0.000000e+00> : vector<384xf32>
    %603 = vector.multi_reduction <add>, %602, %cst_176 [0] : vector<2x384xf32> to vector<384xf32>
    %604 = vector.shape_cast %603 : vector<384xf32> to vector<1x384xf32>
    %cst_177 = arith.constant 2.000000e+00 : f32
    %605 = vector.broadcast %cst_177 : f32 to vector<1x384xf32>
    %606 = arith.divf %604, %605 : vector<1x384xf32>
    %607 = vector.broadcast %606 : vector<1x384xf32> to vector<2x384xf32>
    %608 = arith.subf %602, %607 : vector<2x384xf32>
    %609 = arith.mulf %608, %608 : vector<2x384xf32>
    %cst_178 = arith.constant dense<0.000000e+00> : vector<384xf32>
    %610 = vector.multi_reduction <add>, %609, %cst_178 [0] : vector<2x384xf32> to vector<384xf32>
    %611 = vector.shape_cast %610 : vector<384xf32> to vector<1x384xf32>
    %cst_179 = arith.constant 2.000000e+00 : f32
    %612 = vector.broadcast %cst_179 : f32 to vector<1x384xf32>
    %613 = arith.divf %611, %612 : vector<1x384xf32>
    %614 = vector.broadcast %606 : vector<1x384xf32> to vector<2x384xf32>
    %615 = arith.subf %602, %614 : vector<2x384xf32>
    %cst_180 = arith.constant 9.99999974E-6 : f32
    %616 = vector.broadcast %cst_180 : f32 to vector<1x384xf32>
    %617 = arith.addf %613, %616 : vector<1x384xf32>
    %618 = math.rsqrt %617 : vector<1x384xf32>
    %619 = vector.broadcast %618 : vector<1x384xf32> to vector<2x384xf32>
    %620 = arith.mulf %615, %619 : vector<2x384xf32>
    %c40 = arith.constant 40 : index
    %c0_181 = arith.constant 0 : index
    %621 = vector.load %arg7[%c40, %c0_181] : memref<192x384xf32, #tpu.memory_space<vmem>>, vector<1x384xf32>
    %622 = vector.broadcast %621 : vector<1x384xf32> to vector<2x384xf32>
    %623 = arith.mulf %620, %622 : vector<2x384xf32>
    %c48 = arith.constant 48 : index
    %c0_182 = arith.constant 0 : index
    %624 = vector.load %arg7[%c48, %c0_182] : memref<192x384xf32, #tpu.memory_space<vmem>>, vector<1x384xf32>
    %625 = vector.broadcast %624 : vector<1x384xf32> to vector<2x384xf32>
    %626 = arith.addf %623, %625 : vector<2x384xf32>
    %cst_183 = arith.constant 0.000000e+00 : f32
    %627 = vector.broadcast %cst_183 : f32 to vector<2x384xf32>
    %628 = arith.maximumf %626, %627 : vector<2x384xf32>
    %c184 = arith.constant 184 : index
    %c0_184 = arith.constant 0 : index
    %629 = vector.load %arg7[%c184, %c0_184] : memref<192x384xf32, #tpu.memory_space<vmem>>, vector<1x128xf32>
    %c56 = arith.constant 56 : index
    %c0_185 = arith.constant 0 : index
    %630 = vector.load %arg7[%c56, %c0_185] : memref<192x384xf32, #tpu.memory_space<vmem>>, vector<128x384xf32>
    %cst_186 = arith.constant dense<0.000000e+00> : vector<2x128xf32>
    %631 = tpu.matmul %628, %630, %cst_186 {dimension_numbers = #tpu.dot_dimension_numbers<[1], [1], [0], [0], [0, 0, 1, 0], [], []>} : vector<2x384xf32>, vector<128x384xf32>, vector<2x128xf32> -> vector<2x128xf32>
    %632 = vector.broadcast %629 : vector<1x128xf32> to vector<2x128xf32>
    %633 = arith.addf %631, %632 : vector<2x128xf32>
    %c0_187 = arith.constant 0 : index
    %c0_188 = arith.constant 0 : index
    %634 = vector.load %arg9[%c0_187, %c0_188] : memref<2x128xf32, #tpu.memory_space<vmem>>, vector<2x128xf32>
    tpu.vector_store %arg9[%c0_187, %c0_188], %633 {strides = array<i32>} : memref<2x128xf32, #tpu.memory_space<vmem>>, vector<2x128xf32>,
    return
  }
  func.func @transform_0(%arg0: i32) -> (i32, i32) {
    %c0_i32 = arith.constant 0 : i32
    %c0_i32_0 = arith.constant 0 : i32
    %c0_i32_1 = arith.constant 0 : i32
    return %c0_i32, %c0_i32_0 : i32, i32
  }
  func.func @transform_1(%arg0: i32) -> (i32, i32) {
    %c0_i32 = arith.constant 0 : i32
    %c0_i32_0 = arith.constant 0 : i32
    %c0_i32_1 = arith.constant 0 : i32
    return %c0_i32, %c0_i32_0 : i32, i32
  }
  func.func @transform_2(%arg0: i32) -> (i32, i32) {
    %c0_i32 = arith.constant 0 : i32
    %c0_i32_0 = arith.constant 0 : i32
    %c0_i32_1 = arith.constant 0 : i32
    return %c0_i32, %c0_i32_0 : i32, i32
  }
  func.func @transform_3(%arg0: i32) -> (i32, i32) {
    %c0_i32 = arith.constant 0 : i32
    %c0_i32_0 = arith.constant 0 : i32
    %c0_i32_1 = arith.constant 0 : i32
    return %c0_i32, %c0_i32_0 : i32, i32
  }
  func.func @transform_4(%arg0: i32) -> (i32, i32) {
    %c0_i32 = arith.constant 0 : i32
    %c0_i32_0 = arith.constant 0 : i32
    %c0_i32_1 = arith.constant 0 : i32
    return %c0_i32, %c0_i32_0 : i32, i32
  }
  func.func @transform_5(%arg0: i32) -> (i32, i32) {
    %c0_i32 = arith.constant 0 : i32
    %c0_i32_0 = arith.constant 0 : i32
    %c0_i32_1 = arith.constant 0 : i32
    return %c0_i32, %c0_i32_0 : i32, i32
  }
  func.func @transform_6(%arg0: i32) -> (i32, i32) {
    %c0_i32 = arith.constant 0 : i32
    %c0_i32_0 = arith.constant 0 : i32
    %c0_i32_1 = arith.constant 0 : i32
    return %c0_i32, %c0_i32_0 : i32, i32
  }
  func.func @transform_7(%arg0: i32) -> (i32, i32) {
    %c0_i32 = arith.constant 0 : i32
    %c0_i32_0 = arith.constant 0 : i32
    %c0_i32_1 = arith.constant 0 : i32
    return %c0_i32, %c0_i32_0 : i32, i32
  }
  func.func @transform_8(%arg0: i32) -> (i32, i32) {
    %c0_i32 = arith.constant 0 : i32
    %c0_i32_0 = arith.constant 0 : i32
    %c0_i32_1 = arith.constant 0 : i32
    return %c0_i32, %c0_i32_0 : i32, i32
  }
  func.func @transform_9(%arg0: i32) -> (i32, i32) {
    %c0_i32 = arith.constant 0 : i32
    %c0_i32_0 = arith.constant 0 : i32
    %c0_i32_1 = arith.constant 0 : i32
    return %c0_i32, %c0_i32_0 : i32, i32
  }
}

</mosaic_0001>

<bundles_post_ra>
// kernel: eq.15
= control target key start
LH: loop header
LB: loop body
LE: loop exit
PB: predicated region body
PF: predicated region fallthrough
CT: control target
= control target key end

     0   :  { %vm7_vm0 = vcmask 64512   ;;  %vm13_vm1 = vcmask 130112   ;;  %s39_s0 = inlined_call_operand.vmem [shape: s32[2,8], index: 0, kind: input, shape index: {}]   ;;  %s40_s1 = inlined_call_operand.vmem [shape: s32[16], index: 1, kind: output, shape index: {}]  }
   0x1   :  { %v4_v0 = vld [vmem:[%s39_s0] sm:$0x3]  ;;  %s22_s0 = smov 8  }
   0x2   :  { %5 = vst [vmem:[#allocation1] sm:$0x3] %v4_v0 }
   0x9   :  { %v10_v1 = vld [vmem:[#allocation1 + $0x1] sm:$0x1]   ;;  %v6_v2 = vld [vmem:[#allocation1] sm:$0x1]  }
   0xa   :  { %11 = vrot.lane.b32.xlu0 %v10_v1, %s22_s0  ;;  %8 = vst.msk [vmem:[#allocation0] sm:$0x1] %vm7_vm0, %v6_v2  }
  0x7c   :  { %v12_v3 = vpop.permute.xlu0 %11  }
  0x7d   :  { %14 = vst.msk [vmem:[#allocation0] sm:$0x1] %vm13_vm1, %v12_v3  }
  0x84   :  { %v17_v4 = vld [vmem:[#allocation0] sm:$0x1] }
  0x85   :  { %20 = vst [vmem:[%s40_s1] sm:$0x1] %v17_v4 }

// kernel: t5_novel_forward.1
= control target key start
LH: loop header
LB: loop body
LE: loop exit
PB: predicated region body
PF: predicated region fallthrough
CT: control target
= control target key end

     0   :  { %15 = vsyncpa [#allocation3], 0  ;;  %s5448_s0 = inlined_call_operand.vmem [shape: f32[16,128], index: 0, kind: input, shape index: {}]   ;;  %s5449_s1 = inlined_call_operand.vmem [shape: f32[16,128], index: 1, kind: input, shape index: {}]   ;;  %s5450_s2 = inlined_call_operand.vmem [shape: f32[16,128], index: 2, kind: input, shape index: {}]   ;;  %s5451_s3 = inlined_call_operand.vmem [shape: f32[8,32], index: 3, kind: input, shape index: {}]   ;;  %s5452_s4 = inlined_call_operand.vmem [shape: f32[8,32], index: 4, kind: input, shape index: {}]   ;;  %s5453_s5 = inlined_call_operand.vmem [shape: f32[1056,128], index: 5, kind: input, shape index: {}]   ;;  %s5454_s6 = inlined_call_operand.vmem [shape: f32[192,384], index: 6, kind: input, shape index: {}]   ;;  %s5455_s7 = inlined_call_operand.vmem [shape: f32[16,128], index: 7, kind: output, shape index: {0}]   ;;  %s5456_s8 = inlined_call_operand.hbm [shape: f32[2,128], index: 8, kind: output, shape index: {1}]   ;;  %s5457_s9 = inlined_call_operand.hbm [shape: f32[1,1], index: 9, kind: output, shape index: {2}]  }
   0x1   :  { %v3894_v0 = vld [vmem:[%s5453_s5 + $0x78] sm:$0xff]  ;;  %v3899_v1 = vld [vmem:[%s5453_s5 + $0x70] sm:$0xff]  ;;  %v3905_v2 = vld [vmem:[%s5453_s5 + $0x68] sm:$0xff] }
   0x2   :  { %51 = vmatpush.msra.mxu0 %v3894_v0  ;;  %v3911_v3 = vld [vmem:[%s5453_s5 + $0x60] sm:$0xff]  ;;  %v3917_v4 = vld [vmem:[%s5453_s5 + $0x58] sm:$0xff]  ;;  %v3922_v5 = vld [vmem:[%s5453_s5 + $0x50] sm:$0xff] }
   0x3   :  { %v3929_v6 = vld [vmem:[%s5453_s5 + $0x48] sm:$0xff] }
   0x4   :  { %52 = vmatpush.msra.mxu0 %v3899_v1 }
   0x6   :  { %53 = vmatpush.msra.mxu0 %v3905_v2 }
   0x8   :  { %54 = vmatpush.msra.mxu0 %v3911_v3 }
   0xa   :  { %55 = vmatpush.msra.mxu0 %v3917_v4 }
   0xb   :  { %16 = vsyncpa [#allocation5], 0  ;;  %v3935_v7 = vld [vmem:[%s5453_s5 + $0x40] sm:$0xff]  ;;  %v3941_v8 = vld [vmem:[%s5453_s5 + $0x38] sm:$0xff]  ;;  %vm77_vm0 = vcmask 261120   ;;  %v3831_v24 = vmov 32.0   ;;  %v157_v32 = vlaneseq }
   0xc   :  { %56 = vmatpush.msra.mxu0 %v3922_v5  ;;  %v3947_v9 = vld [vmem:[%s5453_s5 + $0x30] sm:$0xff]  ;;  %v3953_v10 = vld [vmem:[%s5453_s5 + $0x28] sm:$0xff]  ;;  %v3959_v11 = vld [vmem:[%s5453_s5 + $0x20] sm:$0xff]  ;;  %3647 = vrcp.f32 %v3831_v24  ;;  %v3832_v37 = vmov 0.0   ;;  %s3833_s10 = smov 32   ;;  %s3834_s13 = smov 96  }
   0xd   :  { %v3965_v12 = vld [vmem:[%s5453_s5 + $0x18] sm:$0xff]  ;;  %v3971_v13 = vld [vmem:[%s5453_s5 + $0x10] sm:$0xff]  ;;  %v3977_v14 = vld [vmem:[%s5453_s5 + $0x8] sm:$0xff]  ;;  %v4016_v34 = vand.u32 127, %v157_v32  ;;  %s3835_s14 = smov 64   ;;  %s3838_s20 = smov [#allocation2]  }
   0xe   :  { %57 = vmatpush.msra.mxu0 %v3929_v6  ;;  %v3983_v15 = vld [vmem:[%s5453_s5] sm:$0xff]  ;;  %v50_v17 = vld [vmem:[%s5448_s0 + $0x8] sm:$0xff]  ;;  %v121_v31 = vld [vmem:[%s5453_s5 + $0x98] sm:$0xff]  ;;  %s3258_s21 = sshll.u32 %s3838_s20, 4  ;;  %s3260_s23 = sshll.u32 %s5456_s8, 4  ;;  %s3259_s21 = int_to_ptr.vmem [resolvable:$true] %s3258_s21  ;;  %s3261_s23 = int_to_ptr.hbm [resolvable:$true] %s3260_s23 }
   0xf   :  { %v49_v16 = vld [vmem:[%s5448_s0] sm:$0xff]  ;;  %v123_v28 = vld [vmem:[%s5453_s5 + $0xa8] sm:$0xff]  ;;  %v120_v33 = vld [vmem:[%s5453_s5 + $0x90] sm:$0xff]  ;;  %vm174_vm2 = vcmp.ge.s32.totalorder %v4016_v34, 24  ;;  %vm175_vm3 = vcmp.lt.s32.totalorder %v4016_v34, 32  ;;  %vm169_vm5 = vcmp.ge.s32.totalorder %v4016_v34, 16 }
  0x10   :  { %58 = vmatpush.msra.mxu0 %v3935_v7  ;;  %146 = vmatpush.msra.mxu1 %v123_v28  ;;  %v122_v29 = vld [vmem:[%s5453_s5 + $0xa0] sm:$0xff]  ;;  %vm4020_vm4 = vmand %vm174_vm2, %vm175_vm3  ;;  %vm170_vm6 = vcmp.lt.s32.totalorder %v4016_v34, 24  ;;  %vm164_vm7 = vcmp.ge.s32.totalorder %v4016_v34, 8  ;;  %vm165_vm9 = vcmp.lt.s32.totalorder %v4016_v34, 16  ;;  %vm160_vm11 = vcmp.lt.s32.totalorder %v4016_v34, 8  ;;  %v3764_v36 = vld [vmem:[%s5453_s5 + $0x70] sm:$0xff] }
  0x11   :  { %v4027_v38 = vsel %vm4020_vm4, 1.0, %v3832_v37  ;;  %vm4036_vm8 = vmand %vm169_vm5, %vm170_vm6  ;;  %v4062_v52 = vsel %vm160_vm11, 1.0, %v3832_v37  ;;  %v3635_v59 = vld [vmem:[%s5453_s5 + $0x80] ss:$0 sm:$0xff]  ;;  %v3765_v43 = vld [vmem:[%s5453_s5 + $0x68] sm:$0xff]  ;;  %s3271_s24 = sshll.u32 %s5457_s9, 4  ;;  %s3272_s24 = int_to_ptr.hbm [resolvable:$true] %s3271_s24 }
  0x12   :  { %59 = vmatpush.msra.mxu0 %v3941_v8  ;;  %v3648_v25 = vpop.eup %3647  ;;  %147 = vmatpush.msra.mxu1 %v122_v29  ;;  %v4044_v44 = vsel %vm4036_vm8, 1.0, %v3832_v37  ;;  %vm4046_vm10 = vmand %vm164_vm7, %vm165_vm9  ;;  %v3766_v45 = vld [vmem:[%s5453_s5 + $0x60] sm:$0xff] }
  0x13   :  { %v85_v26 = vmul.f32 32.0, %v3648_v25  ;;  %vm89_vm1 = vweird.f32 %v3648_v25  ;;  %195 = vrot.lane.b32.xlu1 %v4027_v38, %s3833_s10  ;;  %v4054_v46 = vsel %vm4046_vm10, 1.0, %v3832_v37 }
  0x14   :  { %60 = vmatpush.msra.mxu0 %v3947_v9  ;;  %148 = vmatpush.msra.mxu1 %v121_v31 }
  0x15   :  { %v86_v27 = vsub.f32 1.0, %v85_v26  ;;  %185 = vrot.lane.b32.xlu2 %v4054_v46, %s3833_s10 }
  0x16   :  { %61 = vmatpush.msra.mxu0 %v3953_v10  ;;  %149 = vmatpush.msra.mxu1 %v120_v33 }
  0x17   :  { %v87_v30 = vmul.f32 %v3648_v25, %v86_v27 }
  0x18   :  { %62 = vmatpush.msra.mxu0 %v3959_v11 }
  0x19   :  { %v88_v35 = vadd.f32 %v3648_v25, %v87_v30 }
  0x1a   :  { %63 = vmatpush.msra.mxu0 %v3965_v12 }
  0x1b   :  { %v4029_v39 = vsel %vm89_vm1, %v3648_v25, %v88_v35  ;;  %190 = vrot.lane.b32.xlu1 %v4044_v44, %s3833_s10 }
  0x1c   :  { %64 = vmatpush.msra.mxu0 %v3971_v13 }
  0x1d   :  { %180 = vrot.lane.b32.xlu2 %v4062_v52, %s3833_s10 }
  0x1e   :  { %65 = vmatpush.msra.mxu0 %v3977_v14 }
  0x20   :  { %66 = vmatpush.msra.mxu0 %v3983_v15 }
  0x21   :  { %67 = vmatmul.f32.vlgmr.msra.gmra.mxu0 %v49_v16 }
  0x29   :  { %70 = vmatmul.f32.gmra.mxu0 %v50_v17 }
  0x6f   :  { %v4074_v25 = vpop.permute.xlu2 %185 }
  0x77   :  { %v4084_v31 = vpop.permute.xlu2 %180 }
  0x85   :  { %v4072_v24 = vpop.permute.xlu1 %195 }
  0x8d   :  { %v4076_v26 = vpop.permute.xlu1 %190 }
  0x9e   :  { %v3993_v18 = vpop.f32.mrf.mxu0 }
  0x9f   :  { %v75_v19 = vmul.f32 %v3993_v18, %v3993_v18 }
  0xa1   :  { %v78_v20 = vsel %vm77_vm0, %v75_v19, 0.0 }
  0xa2   :  { %79 = vadd.xlane.f32.xlu0 %v78_v20 }
  0xa6   :  { %v3998_v21 = vpop.f32.mrf.mxu0 }
  0xa7   :  { %v76_v22 = vmul.f32 %v3998_v21, %v3998_v21 }
  0xa9   :  { %v81_v23 = vsel %vm77_vm0, %v76_v22, 0.0 }
  0xaa   :  { %82 = vadd.xlane.f32.xlu0 %v81_v23 }
 0x115   :  { %v80_v40 = vpop.xlane.xlu0 %79 }
 0x116   :  { %v91_v41 = vmul.f32 %v4029_v39, %v80_v40 }
 0x118   :  { %v93_v42 = vadd.f32 1e-06, %v91_v41 }
 0x11a   :  { %3649 = vrsqrt.f32 %v93_v42  ;;  %vm101_vm13 = vweird.f32 %v93_v42 }
 0x11d   :  { %v83_v47 = vpop.xlane.xlu0 %82 }
 0x11e   :  { %v92_v48 = vmul.f32 %v4029_v39, %v83_v47 }
 0x120   :  { %v3650_v49 = vpop.eup %3649  ;;  %v94_v50 = vadd.f32 1e-06, %v92_v48  ;;  %v3505_v48 = vpack.i.bf16 %v4044_v44, %v4027_v38 }
 0x121   :  { %v96_v51 = vmul.f32 %v3650_v49, %v93_v42  ;;  %vm102_vm12 = vweird.f32 %v3650_v49 }
 0x122   :  { %3651 = vrsqrt.f32 %v94_v50  ;;  %vm103_vm14 = vmor %vm101_vm13, %vm102_vm12  ;;  %vm111_vm15 = vweird.f32 %v94_v50  ;;  %vm555_vm13 = vcmask 523264  }
 0x123   :  { %v97_v53 = vmul.f32 %v3650_v49, %v96_v51 }
 0x125   :  { %v98_v54 = vmul.f32 0.5, %v97_v53 }
 0x127   :  { %v99_v55 = vsub.f32 1.5, %v98_v54 }
 0x128   :  { %v3652_v56 = vpop.eup %3651 }
 0x129   :  { %v100_v57 = vmul.f32 %v3650_v49, %v99_v55  ;;  %v106_v58 = vmul.f32 %v3652_v56, %v94_v50  ;;  %vm112_vm1 = vweird.f32 %v3652_v56 }
 0x12a   :  { %vm113_vm2 = vmor %vm111_vm15, %vm112_vm1 }
 0x12b   :  { %v107_v60 = vmul.f32 %v3652_v56, %v106_v58  ;;  %v104_v61 = vsel %vm103_vm14, %v3650_v49, %v100_v57  ;;  %v3510_v49 = vpack.i.bf16 %v4062_v52, %v4054_v46 }
 0x12c   :  { %v115_v62 = vmul.f32 %v104_v61, %v3993_v18 }
 0x12d   :  { %v108_v63 = vmul.f32 0.5, %v107_v60 }
 0x12e   :  { %v118_v16 = vmul.f32 %v3635_v59, %v115_v62 }
 0x12f   :  { %v109_v17 = vsub.f32 1.5, %v108_v63 }
 0x130   :  { %3287 = vmatmul.msk.f32.vlgmr.msra.gmra.mxu1 %vm77_vm0, %v118_v16 }
 0x131   :  { %v110_v19 = vmul.f32 %v3652_v56, %v109_v17 }
 0x133   :  { %v114_v20 = vsel %vm113_vm2, %v3652_v56, %v110_v19 }
 0x134   :  { %v116_v22 = vmul.f32 %v114_v20, %v3998_v21 }
 0x136   :  { %v119_v23 = vmul.f32 %v3635_v59, %v116_v22 }
 0x138   :  { %3288 = vmatmul.msk.f32.gmra.mxu1 %vm77_vm0, %v119_v23 }
 0x1ad   :  { %v151_v27 = vpop.f32.mrf.mxu1 }
 0x1ae   :  { %v193_v28 = vmul.f32 %v4076_v26, %v151_v27  ;;  %v188_v29 = vmul.f32 %v4074_v25, %v151_v27  ;;  %v198_v30 = vmul.f32 %v4072_v24, %v151_v27  ;;  %v183_v35 = vmul.f32 %v4084_v31, %v151_v27 }
 0x1b0   :  { %223 = vrot.lane.b32.xlu1 %v193_v28, %s3834_s13  ;;  %221 = vrot.lane.b32.xlu2 %v188_v29, %s3834_s13 }
 0x1b1   :  { %225 = vrot.lane.b32.xlu0 %v198_v30, %s3834_s13 }
 0x1b5   :  { %v154_v33 = vpop.f32.mrf.mxu1 }
 0x1b6   :  { %v328_v40 = vmul.f32 %v4072_v24, %v154_v33  ;;  %v325_v41 = vmul.f32 %v4084_v31, %v154_v33  ;;  %v327_v42 = vmul.f32 %v4076_v26, %v154_v33  ;;  %v326_v47 = vmul.f32 %v4074_v25, %v154_v33 }
 0x1b8   :  { %219 = vrot.lane.b32.xlu1 %v183_v35, %s3834_s13  ;;  %343 = vrot.lane.b32.xlu2 %v328_v40, %s3834_s13 }
 0x1b9   :  { %337 = vrot.lane.b32.xlu0 %v325_v41, %s3834_s13 }
 0x1c0   :  { %341 = vrot.lane.b32.xlu1 %v327_v42, %s3834_s13  ;;  %339 = vrot.lane.b32.xlu2 %v326_v47, %s3834_s13  ;;  %v4135_v47 = vld [vmem:[%s5451_s3] sm:$0xff] }
 0x1c8   :  { %3506 = vrot.lane.b32.xlu1 %v3505_v48, %s3835_s14  ;;  %3511 = vrot.lane.b32.xlu2 %v3510_v49, %s3835_s14 }
 0x20a   :  { %v222_v50 = vpop.permute.xlu2 %221 }
 0x212   :  { %v344_v51 = vpop.permute.xlu2 %343 }
 0x213   :  { %3304 = vmatpush.xpose.msk.msrb.mxu0 %vm77_vm0, %v344_v51 }
 0x21a   :  { %v340_v53 = vpop.permute.xlu2 %339 }
 0x222   :  { %v224_v54 = vpop.permute.xlu1 %223  ;;  %v3512_v55 = vpop.permute.xlu2 %3511 }
 0x223   :  { %v4103_v56 = vunpack.i.h.bf16 %v3512_v55  ;;  %v4105_v57 = vunpack.i.l.bf16 %v3512_v55  ;;  %v226_v58 = vpop.permute.xlu0 %225 }
 0x224   :  { %3293 = vmatpush.xpose.msk.msra.mxu2 %vm77_vm0, %v226_v58 }
 0x225   :  { %v202_v59 = vmul.f32 %v4103_v56, %v151_v27  ;;  %v206_v60 = vmul.f32 %v4105_v57, %v151_v27  ;;  %v329_v40 = vmul.f32 %v4103_v56, %v154_v33  ;;  %v330_v41 = vmul.f32 %v4105_v57, %v154_v33 }
 0x227   :  { %v3520_v61 = vpack.i.bf16 %v202_v59, %v206_v60  ;;  %v3530_v42 = vpack.i.bf16 %v329_v40, %v330_v41 }
 0x228   :  { %3294 = vmatpush.xpose.msk.msra.mxu2 %vm77_vm0, %v224_v54 }
 0x229   :  { %3521 = vrot.lane.b32.xlu2 %v3520_v61, %s3835_s14  ;;  %v3836_v61 = vmov 1.0  }
 0x22a   :  { %v220_v62 = vpop.permute.xlu1 %219 }
 0x22b   :  { %v338_v16 = vpop.permute.xlu0 %337 }
 0x22c   :  { %3295 = vmatpush.xpose.msk.msra.mxu2 %vm77_vm0, %v222_v50 }
 0x230   :  { %3296 = vmatpush.xpose.msk.msra.mxu2 %vm77_vm0, %v220_v62 }
 0x232   :  { %v342_v63 = vpop.permute.xlu1 %341 }
 0x233   :  { %3297 = vmatmul.msk.f32.vlgmr.msra.gmra.mxu2 %vm77_vm0, %v151_v27  ;;  %3305 = vmatpush.xpose.msk.msrb.mxu0 %vm77_vm0, %v342_v63 }
 0x237   :  { %3306 = vmatpush.xpose.msk.msrb.mxu0 %vm77_vm0, %v340_v53 }
 0x23a   :  { %v3507_v17 = vpop.permute.xlu1 %3506 }
 0x23b   :  { %v4117_v19 = vunpack.i.h.bf16 %v3507_v17  ;;  %v4119_v20 = vunpack.i.l.bf16 %v3507_v17  ;;  %3307 = vmatpush.xpose.msk.msrb.mxu0 %vm77_vm0, %v338_v16 }
 0x23d   :  { %v210_v22 = vmul.f32 %v4117_v19, %v151_v27  ;;  %v214_v23 = vmul.f32 %v4119_v20, %v151_v27  ;;  %v331_v28 = vmul.f32 %v4117_v19, %v154_v33  ;;  %v332_v29 = vmul.f32 %v4119_v20, %v154_v33 }
 0x23e   :  { %3308 = vmatmul.msk.f32.vlgmr.msrb.gmra.mxu0 %vm77_vm0, %v154_v33 }
 0x23f   :  { %v3515_v30 = vpack.i.bf16 %v210_v22, %v214_v23  ;;  %v3525_v35 = vpack.i.bf16 %v331_v28, %v332_v29 }
 0x241   :  { %3516 = vrot.lane.b32.xlu1 %v3515_v30, %s3835_s14  ;;  %3526 = vrot.lane.b32.xlu2 %v3525_v35, %s3835_s14 }
 0x249   :  { %3531 = vrot.lane.b32.xlu2 %v3530_v42, %s3835_s14 }
 0x283   :  { %v3522_v49 = vpop.permute.xlu2 %3521 }
 0x284   :  { %v3523_v54 = vunpack.i.l.bf16 %v3522_v49  ;;  %v3524_v55 = vunpack.i.h.bf16 %v3522_v49  ;;  %v126_v49 = vld [vmem:[%s5453_s5 + $0xc0] sm:$0xff] }
 0x29b   :  { %v3527_v16 = vpop.permute.xlu2 %3526 }
 0x29c   :  { %v3528_v28 = vunpack.i.l.bf16 %v3527_v16  ;;  %v3529_v30 = vunpack.i.h.bf16 %v3527_v16 }
 0x2a3   :  { %v3532_v29 = vpop.permute.xlu2 %3531 }
 0x2a4   :  { %v3533_v40 = vunpack.i.l.bf16 %v3532_v29  ;;  %v3534_v41 = vunpack.i.h.bf16 %v3532_v29 }
 0x2b3   :  { %v3517_v27 = vpop.permute.xlu1 %3516 }
 0x2b4   :  { %v3518_v48 = vunpack.i.l.bf16 %v3517_v27  ;;  %v3519_v51 = vunpack.i.h.bf16 %v3517_v27 }
 0x2b6   :  { %v255_v50 = vpop.f32.mrf.mxu2  ;;  %295 = vmatpush.msra.mxu3 %v3518_v48  ;;  %v127_v48 = vld [vmem:[%s5453_s5 + $0xc8] sm:$0xff] }
 0x2b7   :  { %v256_v53 = vadd.f32 %v255_v50, %v4135_v47  ;;  %461 = vmatpush.msrb.mxu1 %v127_v48  ;;  %v125_v50 = vld [vmem:[%s5453_s5 + $0xb8] sm:$0xff] }
 0x2b8   :  { %296 = vmatpush.msra.mxu3 %v3519_v51  ;;  %v124_v51 = vld [vmem:[%s5453_s5 + $0xb0] sm:$0xff] }
 0x2b9   :  { %v258_v33 = vsel %vm77_vm0, %v256_v53, -inf  ;;  %462 = vmatpush.msrb.mxu1 %v126_v49  ;;  %v523_v49 = vld [vmem:[%s5453_s5 + $0x128] sm:$0xff] }
 0x2ba   :  { %259 = vmax.xlane.f32.xlu0 %v258_v33  ;;  %297 = vmatpush.msra.mxu3 %v3523_v54 }
 0x2bb   :  { %v373_v58 = vpop.f32.mrf.mxu0  ;;  %463 = vmatpush.msrb.mxu1 %v125_v50  ;;  %v522_v50 = vld [vmem:[%s5453_s5 + $0x120] sm:$0xff] }
 0x2bc   :  { %v374_v59 = vadd.f32 %v373_v58, %v4135_v47  ;;  %298 = vmatpush.msra.mxu3 %v3524_v55 }
 0x2bd   :  { %464 = vmatpush.msrb.mxu1 %v124_v51 }
 0x2be   :  { %v376_v60 = vsel %vm77_vm0, %v374_v59, -inf  ;;  %3299 = vmatpush.msk.msrb.mxu3 %vm4020_vm4, %v3836_v61 }
 0x2bf   :  { %377 = vmax.xlane.f32.xlu1 %v376_v60 }
 0x2c0   :  { %3300 = vmatpush.msk.msrb.mxu3 %vm4036_vm8, %v3836_v61 }
 0x2c2   :  { %3301 = vmatpush.msk.msrb.mxu3 %vm4046_vm10, %v3836_v61 }
 0x2c4   :  { %3302 = vmatpush.msk.msrb.mxu3 %vm160_vm11, %v3836_v61 }
 0x32d   :  { %v260_v62 = vpop.xlane.xlu0 %259 }
 0x32e   :  { %v261_v63 = vsub.f32 %v256_v53, %v260_v62 }
 0x330   :  { %v262_v17 = vmul.f32 1.442695, %v261_v63 }
 0x332   :  { %3653 = vpow2.f32 %v262_v17  ;;  %v378_v22 = vpop.xlane.xlu1 %377 }
 0x333   :  { %v379_v35 = vsub.f32 %v374_v59, %v378_v22 }
 0x335   :  { %v380_v42 = vmul.f32 1.442695, %v379_v35  ;;  %v514_v35 = vld [vmem:[%s5453_s5 + $0xe0] sm:$0xff] }
 0x337   :  { %3655 = vpow2.f32 %v380_v42 }
 0x338   :  { %v3654_v23 = vpop.eup %3653 }
 0x339   :  { %3298 = vmatmul.msk.f32.vlgmr.msra.gmra.mxu3 %vm77_vm0, %v3654_v23 }
 0x33a   :  { %413 = vmatpush.msra.mxu3 %v3528_v28 }
 0x33c   :  { %414 = vmatpush.msra.mxu3 %v3529_v30 }
 0x33d   :  { %v3656_v27 = vpop.eup %3655 }
 0x33e   :  { %415 = vmatpush.msra.mxu3 %v3533_v40  ;;  %v512_v40 = vld [vmem:[%s5453_s5 + $0xd0] sm:$0xff] }
 0x340   :  { %416 = vmatpush.msra.mxu3 %v3534_v41 }
 0x341   :  { %3303 = vmatmul.msk.f32.vlgmr.msrb.gmra.mxu3 %vm77_vm0, %v3654_v23 }
 0x342   :  { %3310 = vmatpush.msk.msrb.mxu3 %vm4020_vm4, %v3836_v61 }
 0x344   :  { %3311 = vmatpush.msk.msrb.mxu3 %vm4036_vm8, %v3836_v61 }
 0x346   :  { %3312 = vmatpush.msk.msrb.mxu3 %vm4046_vm10, %v3836_v61 }
 0x348   :  { %3313 = vmatpush.msk.msrb.mxu3 %vm160_vm11, %v3836_v61 }
 0x349   :  { %3309 = vmatmul.msk.f32.vlgmr.msra.gmra.mxu3 %vm77_vm0, %v3656_v27 }
 0x34a   :  { %570 = vmatpush.msra.mxu3 %v523_v49 }
 0x34c   :  { %571 = vmatpush.msra.mxu3 %v522_v50 }
 0x351   :  { %3314 = vmatmul.msk.f32.vlgmr.msrb.gmra.mxu3 %vm77_vm0, %v3656_v27 }
 0x3bc   :  { %v300_v53 = vpop.f32.mrf.mxu3 }
 0x3c4   :  { %v320_v54 = vpop.f32.mrf.mxu3 }
 0x3c5   :  { %3657 = vrcp.f32 %v320_v54 }
 0x3cb   :  { %v3658_v33 = vpop.eup %3657 }
 0x3cc   :  { %v418_v55 = vpop.f32.mrf.mxu3  ;;  %v324_v58 = vmul.f32 %v3658_v33, %v300_v53  ;;  %v521_v53 = vld [vmem:[%s5453_s5 + $0x118] sm:$0xff]  ;;  %v520_v33 = vld [vmem:[%s5453_s5 + $0x110] sm:$0xff] }
 0x3cd   :  { %572 = vmatpush.msra.mxu3 %v521_v53  ;;  %v516_v53 = vld [vmem:[%s5453_s5 + $0xf0] sm:$0xff] }
 0x3ce   :  { %3315 = vmatmul.msk.f32.vlgmr.msrb.gmra.mxu1 %vm77_vm0, %v324_v58 }
 0x3cf   :  { %573 = vmatpush.msra.mxu3 %v520_v33 }
 0x3d4   :  { %v438_v59 = vpop.f32.mrf.mxu3 }
 0x3d5   :  { %3659 = vrcp.f32 %v438_v59 }
 0x3db   :  { %v3660_v60 = vpop.eup %3659 }
 0x3dc   :  { %v442_v62 = vmul.f32 %v3660_v60, %v418_v55  ;;  %v519_v60 = vld [vmem:[%s5453_s5 + $0x108] sm:$0xff] }
 0x3dd   :  { %574 = vmatpush.msra.mxu3 %v519_v60 }
 0x3de   :  { %3316 = vmatmul.msk.f32.gmra.mxu1 %vm77_vm0, %v442_v62 }
 0x44b   :  { %v466_v63 = vpop.f32.mrf.mxu1 }
 0x44c   :  { %v4184_v16 = vadd.f32 %v466_v63, %v3993_v18  ;;  %v515_v18 = vld [vmem:[%s5453_s5 + $0xe8] sm:$0xff] }
 0x44d   :  { %542 = vmatpush.msrb.mxu2 %v515_v18 }
 0x44e   :  { %v475_v17 = vmul.f32 %v4184_v16, %v4184_v16 }
 0x44f   :  { %543 = vmatpush.msrb.mxu2 %v514_v35 }
 0x450   :  { %v477_v22 = vsel %vm77_vm0, %v475_v17, 0.0  ;;  %v518_v17 = vld [vmem:[%s5453_s5 + $0x100] sm:$0xff] }
 0x451   :  { %478 = vadd.xlane.f32.xlu2 %v477_v22  ;;  %575 = vmatpush.msra.mxu3 %v518_v17 }
 0x45b   :  { %v469_v23 = vpop.f32.mrf.mxu1 }
 0x45c   :  { %v4190_v28 = vadd.f32 %v469_v23, %v3998_v21  ;;  %v513_v21 = vld [vmem:[%s5453_s5 + $0xd8] sm:$0xff]  ;;  %v3636_v23 = vld [vmem:[%s5453_s5 + $0x88] ss:$0 sm:$0xff] }
 0x45d   :  { %544 = vmatpush.msrb.mxu2 %v513_v21 }
 0x45e   :  { %v476_v29 = vmul.f32 %v4190_v28, %v4190_v28 }
 0x45f   :  { %545 = vmatpush.msrb.mxu2 %v512_v40 }
 0x460   :  { %v480_v30 = vsel %vm77_vm0, %v476_v29, 0.0 }
 0x461   :  { %481 = vadd.xlane.f32.xlu0 %v480_v30 }
 0x4c4   :  { %v479_v41 = vpop.xlane.xlu2 %478 }
 0x4c5   :  { %v483_v42 = vmul.f32 %v479_v41, %v4029_v39 }
 0x4c7   :  { %v485_v27 = vadd.f32 1e-06, %v483_v42 }
 0x4c9   :  { %3661 = vrsqrt.f32 %v485_v27  ;;  %vm493_vm5 = vweird.f32 %v485_v27 }
 0x4cf   :  { %v3662_v48 = vpop.eup %3661 }
 0x4d0   :  { %v488_v51 = vmul.f32 %v3662_v48, %v485_v27  ;;  %vm494_vm3 = vweird.f32 %v3662_v48 }
 0x4d1   :  { %vm495_vm6 = vmor %vm493_vm5, %vm494_vm3 }
 0x4d2   :  { %v489_v54 = vmul.f32 %v3662_v48, %v488_v51 }
 0x4d4   :  { %v490_v55 = vmul.f32 0.5, %v489_v54  ;;  %v482_v58 = vpop.xlane.xlu0 %481 }
 0x4d5   :  { %v484_v59 = vmul.f32 %v482_v58, %v4029_v39 }
 0x4d6   :  { %v491_v62 = vsub.f32 1.5, %v490_v55 }
 0x4d7   :  { %v486_v63 = vadd.f32 1e-06, %v484_v59 }
 0x4d8   :  { %v492_v22 = vmul.f32 %v3662_v48, %v491_v62 }
 0x4d9   :  { %3663 = vrsqrt.f32 %v486_v63  ;;  %vm503_vm9 = vweird.f32 %v486_v63 }
 0x4da   :  { %v496_v29 = vsel %vm495_vm6, %v3662_v48, %v492_v22  ;;  %v517_v48 = vld [vmem:[%s5453_s5 + $0xf8] sm:$0xff] }
 0x4db   :  { %v507_v30 = vmul.f32 %v496_v29, %v4184_v16  ;;  %576 = vmatpush.msra.mxu3 %v517_v48 }
 0x4dd   :  { %v510_v18 = vmul.f32 %v3636_v23, %v507_v30  ;;  %577 = vmatpush.msra.mxu3 %v516_v53  ;;  %v627_v30 = vld [vmem:[%s5453_s5 + $0x150] sm:$0xff] }
 0x4df   :  { %v3664_v35 = vpop.eup %3663  ;;  %3317 = vmatmul.msk.f32.vlgmr.msrb.gmra.mxu2 %vm77_vm0, %v510_v18  ;;  %v625_v18 = vld [vmem:[%s5453_s5 + $0x140] sm:$0xff] }
 0x4e0   :  { %v498_v21 = vmul.f32 %v3664_v35, %v486_v63  ;;  %vm504_vm7 = vweird.f32 %v3664_v35 }
 0x4e1   :  { %vm505_vm12 = vmor %vm503_vm9, %vm504_vm7 }
 0x4e2   :  { %v499_v40 = vmul.f32 %v3664_v35, %v498_v21 }
 0x4e4   :  { %v500_v41 = vmul.f32 0.5, %v499_v40 }
 0x4e6   :  { %v501_v42 = vsub.f32 1.5, %v500_v41 }
 0x4e8   :  { %v502_v27 = vmul.f32 %v3664_v35, %v501_v42 }
 0x4ea   :  { %v506_v49 = vsel %vm505_vm12, %v3664_v35, %v502_v27 }
 0x4eb   :  { %v508_v50 = vmul.f32 %v506_v49, %v4190_v28 }
 0x4ed   :  { %v511_v51 = vmul.f32 %v3636_v23, %v508_v50 }
 0x4ef   :  { %3318 = vmatmul.msk.f32.gmra.mxu2 %vm77_vm0, %v511_v51 }
 0x562   :  { %v547_v54 = vpop.f32.mrf.mxu2 }
 0x563   :  { %v553_v33 = vmax.f32 %v547_v54, 0.0 }
 0x565   :  { %3319 = vmatmul.msk.f32.vlgmr.msra.gmra.mxu3 %vm555_vm13, %v553_v33  ;;  %v3637_v33 = vld [vmem:[%s5453_s5 + $0x130] ss:$0 sm:$0xff] }
 0x572   :  { %v550_v55 = vpop.f32.mrf.mxu2 }
 0x573   :  { %v554_v58 = vmax.f32 %v550_v55, 0.0 }
 0x575   :  { %3320 = vmatmul.msk.f32.gmra.mxu3 %vm555_vm13, %v554_v58 }
 0x5e8   :  { %v579_v59 = vpop.f32.mrf.mxu3 }
 0x5e9   :  { %v4243_v60 = vadd.f32 %v579_v59, %v4184_v16  ;;  %v628_v16 = vld [vmem:[%s5453_s5 + $0x158] sm:$0xff] }
 0x5ea   :  { %651 = vmatpush.msra.mxu0 %v628_v16 }
 0x5eb   :  { %v588_v62 = vmul.f32 %v4243_v60, %v4243_v60 }
 0x5ec   :  { %652 = vmatpush.msra.mxu0 %v627_v30 }
 0x5ed   :  { %v590_v63 = vsel %vm77_vm0, %v588_v62, 0.0 }
 0x5ee   :  { %591 = vadd.xlane.f32.xlu0 %v590_v63 }
 0x5f8   :  { %v582_v17 = vpop.f32.mrf.mxu3 }
 0x5f9   :  { %v4249_v22 = vadd.f32 %v582_v17, %v4190_v28  ;;  %v626_v28 = vld [vmem:[%s5453_s5 + $0x148] sm:$0xff] }
 0x5fa   :  { %653 = vmatpush.msra.mxu0 %v626_v28 }
 0x5fb   :  { %v589_v23 = vmul.f32 %v4249_v22, %v4249_v22 }
 0x5fc   :  { %654 = vmatpush.msra.mxu0 %v625_v18 }
 0x5fd   :  { %v593_v29 = vsel %vm77_vm0, %v589_v23, 0.0 }
 0x5fe   :  { %594 = vadd.xlane.f32.xlu1 %v593_v29  ;;  %3340 = vmatpush.msk.msrb.mxu0 %vm4020_vm4, %v3836_v61 }
 0x600   :  { %3341 = vmatpush.msk.msrb.mxu0 %vm4036_vm8, %v3836_v61 }
 0x602   :  { %3342 = vmatpush.msk.msrb.mxu0 %vm4046_vm10, %v3836_v61 }
 0x604   :  { %3343 = vmatpush.msk.msrb.mxu0 %vm160_vm11, %v3836_v61 }
 0x661   :  { %v592_v35 = vpop.xlane.xlu0 %591 }
 0x662   :  { %v596_v21 = vmul.f32 %v592_v35, %v4029_v39 }
 0x664   :  { %v598_v40 = vadd.f32 1e-06, %v596_v21 }
 0x666   :  { %3665 = vrsqrt.f32 %v598_v40  ;;  %vm606_vm15 = vweird.f32 %v598_v40 }
 0x66c   :  { %v3666_v41 = vpop.eup %3665 }
 0x66d   :  { %v601_v42 = vmul.f32 %v3666_v41, %v598_v40  ;;  %vm607_vm14 = vweird.f32 %v3666_v41 }
 0x66e   :  { %vm608_vm1 = vmor %vm606_vm15, %vm607_vm14 }
 0x66f   :  { %v602_v27 = vmul.f32 %v3666_v41, %v601_v42 }
 0x671   :  { %v603_v49 = vmul.f32 0.5, %v602_v27  ;;  %v595_v50 = vpop.xlane.xlu1 %594 }
 0x672   :  { %v597_v51 = vmul.f32 %v595_v50, %v4029_v39 }
 0x673   :  { %v604_v48 = vsub.f32 1.5, %v603_v49 }
 0x674   :  { %v599_v53 = vadd.f32 1e-06, %v597_v51 }
 0x675   :  { %v605_v54 = vmul.f32 %v3666_v41, %v604_v48 }
 0x676   :  { %3667 = vrsqrt.f32 %v599_v53  ;;  %vm616_vm3 = vweird.f32 %v599_v53 }
 0x677   :  { %v609_v55 = vsel %vm608_vm1, %v3666_v41, %v605_v54 }
 0x678   :  { %v620_v58 = vmul.f32 %v609_v55, %v4243_v60 }
 0x67a   :  { %v623_v59 = vmul.f32 %v3637_v33, %v620_v58 }
 0x67c   :  { %v3668_v62 = vpop.eup %3667  ;;  %3321 = vmatmul.msk.f32.vlgmr.msra.gmra.mxu0 %vm77_vm0, %v623_v59 }
 0x67d   :  { %v611_v63 = vmul.f32 %v3668_v62, %v599_v53  ;;  %1081 = vmatpush.msra.mxu0 %v3894_v0  ;;  %vm617_vm2 = vweird.f32 %v3668_v62 }
 0x67e   :  { %vm618_vm5 = vmor %vm616_vm3, %vm617_vm2 }
 0x67f   :  { %v612_v17 = vmul.f32 %v3668_v62, %v611_v63  ;;  %1082 = vmatpush.msra.mxu0 %v3899_v1 }
 0x681   :  { %v613_v23 = vmul.f32 0.5, %v612_v17  ;;  %1083 = vmatpush.msra.mxu0 %v3905_v2 }
 0x683   :  { %v614_v29 = vsub.f32 1.5, %v613_v23  ;;  %1084 = vmatpush.msra.mxu0 %v3911_v3 }
 0x685   :  { %v615_v16 = vmul.f32 %v3668_v62, %v614_v29  ;;  %1085 = vmatpush.msra.mxu0 %v3917_v4 }
 0x687   :  { %v619_v30 = vsel %vm618_vm5, %v3668_v62, %v615_v16  ;;  %1086 = vmatpush.msra.mxu0 %v3922_v5 }
 0x688   :  { %v621_v0 = vmul.f32 %v619_v30, %v4249_v22 }
 0x689   :  { %1087 = vmatpush.msra.mxu0 %v3929_v6 }
 0x68a   :  { %v624_v1 = vmul.f32 %v3637_v33, %v621_v0 }
 0x68b   :  { %1088 = vmatpush.msra.mxu0 %v3935_v7 }
 0x68c   :  { %3322 = vmatmul.msk.f32.gmra.mxu0 %vm77_vm0, %v624_v1 }
 0x68d   :  { %1089 = vmatpush.msra.mxu0 %v3941_v8 }
 0x68f   :  { %1090 = vmatpush.msra.mxu0 %v3947_v9 }
 0x691   :  { %1091 = vmatpush.msra.mxu0 %v3953_v10 }
 0x693   :  { %1092 = vmatpush.msra.mxu0 %v3959_v11 }
 0x695   :  { %1093 = vmatpush.msra.mxu0 %v3965_v12 }
 0x697   :  { %1094 = vmatpush.msra.mxu0 %v3971_v13 }
 0x699   :  { %1095 = vmatpush.msra.mxu0 %v3977_v14 }
 0x69b   :  { %1096 = vmatpush.msra.mxu0 %v3983_v15 }
 0x6f9   :  { %v656_v2 = vpop.f32.mrf.mxu0 }
 0x6fa   :  { %v664_v7 = vmul.f32 %v656_v2, %v4076_v26  ;;  %v663_v9 = vmul.f32 %v656_v2, %v4074_v25  ;;  %v665_v10 = vmul.f32 %v656_v2, %v4072_v24  ;;  %v662_v11 = vmul.f32 %v656_v2, %v4084_v31 }
 0x6fb   :  { %v668_v12 = vmul.f32 %v4117_v19, %v656_v2  ;;  %v669_v13 = vmul.f32 %v4119_v20, %v656_v2  ;;  %v666_v15 = vmul.f32 %v4103_v56, %v656_v2  ;;  %v667_v28 = vmul.f32 %v4105_v57, %v656_v2 }
 0x6fd   :  { %v3535_v14 = vpack.i.bf16 %v668_v12, %v669_v13  ;;  %v3540_v18 = vpack.i.bf16 %v666_v15, %v667_v28  ;;  %v1079_v28 = vld [vmem:[%s5449_s1] sm:$0xff] }
 0x709   :  { %v659_v3 = vpop.f32.mrf.mxu0 }
 0x70a   :  { %v783_v4 = vmul.f32 %v659_v3, %v4072_v24  ;;  %v782_v5 = vmul.f32 %v659_v3, %v4076_v26  ;;  %v781_v6 = vmul.f32 %v659_v3, %v4074_v25  ;;  %v780_v8 = vmul.f32 %v659_v3, %v4084_v31 }
 0x70b   :  { %v786_v35 = vmul.f32 %v4117_v19, %v659_v3  ;;  %v787_v21 = vmul.f32 %v4119_v20, %v659_v3  ;;  %v784_v41 = vmul.f32 %v4103_v56, %v659_v3  ;;  %v785_v42 = vmul.f32 %v4105_v57, %v659_v3 }
 0x70c   :  { %798 = vrot.lane.b32.xlu0 %v783_v4, %s3834_s13  ;;  %796 = vrot.lane.b32.xlu1 %v782_v5, %s3834_s13 }
 0x70d   :  { %794 = vrot.lane.b32.xlu2 %v781_v6, %s3834_s13  ;;  %v3545_v40 = vpack.i.bf16 %v786_v35, %v787_v21  ;;  %v3550_v27 = vpack.i.bf16 %v784_v41, %v785_v42  ;;  %v632_v35 = vld [vmem:[%s5453_s5 + $0x178] sm:$0xff]  ;;  %v631_v21 = vld [vmem:[%s5453_s5 + $0x170] sm:$0xff]  ;;  %v629_v41 = vld [vmem:[%s5453_s5 + $0x160] sm:$0xff] }
 0x714   :  { %678 = vrot.lane.b32.xlu1 %v664_v7, %s3834_s13  ;;  %792 = vrot.lane.b32.xlu0 %v780_v8, %s3834_s13 }
 0x715   :  { %676 = vrot.lane.b32.xlu2 %v663_v9, %s3834_s13 }
 0x71c   :  { %680 = vrot.lane.b32.xlu0 %v665_v10, %s3834_s13 }
 0x724   :  { %674 = vrot.lane.b32.xlu0 %v662_v11, %s3834_s13 }
 0x72c   :  { %3536 = vrot.lane.b32.xlu0 %v3535_v14, %s3835_s14 }
 0x734   :  { %3541 = vrot.lane.b32.xlu0 %v3540_v18, %s3835_s14  ;;  %v1080_v18 = vld [vmem:[%s5449_s1 + $0x8] sm:$0xff] }
 0x73c   :  { %3546 = vrot.lane.b32.xlu0 %v3545_v40, %s3835_s14  ;;  %v630_v40 = vld [vmem:[%s5453_s5 + $0x168] sm:$0xff] }
 0x744   :  { %3551 = vrot.lane.b32.xlu0 %v3550_v27, %s3835_s14 }
 0x767   :  { %v795_v51 = vpop.permute.xlu2 %794 }
 0x76f   :  { %v677_v33 = vpop.permute.xlu2 %676 }
 0x77e   :  { %v799_v49 = vpop.permute.xlu0 %798  ;;  %v797_v50 = vpop.permute.xlu1 %796 }
 0x77f   :  { %3334 = vmatpush.xpose.msk.msrb.mxu3 %vm77_vm0, %v799_v49 }
 0x783   :  { %3335 = vmatpush.xpose.msk.msrb.mxu3 %vm77_vm0, %v797_v50 }
 0x786   :  { %v793_v48 = vpop.permute.xlu0 %792  ;;  %v679_v54 = vpop.permute.xlu1 %678 }
 0x787   :  { %3336 = vmatpush.xpose.msk.msrb.mxu3 %vm77_vm0, %v795_v51 }
 0x78b   :  { %3337 = vmatpush.xpose.msk.msrb.mxu3 %vm77_vm0, %v793_v48 }
 0x78e   :  { %3338 = vmatmul.msk.f32.vlgmr.msrb.gmra.mxu3 %vm77_vm0, %v659_v3  ;;  %v681_v53 = vpop.permute.xlu0 %680 }
 0x78f   :  { %3323 = vmatpush.xpose.msk.msra.mxu1 %vm77_vm0, %v681_v53 }
 0x793   :  { %3324 = vmatpush.xpose.msk.msra.mxu1 %vm77_vm0, %v679_v54 }
 0x796   :  { %v675_v55 = vpop.permute.xlu0 %674 }
 0x797   :  { %3325 = vmatpush.xpose.msk.msra.mxu1 %vm77_vm0, %v677_v33 }
 0x79b   :  { %3326 = vmatpush.xpose.msk.msra.mxu1 %vm77_vm0, %v675_v55 }
 0x79e   :  { %3327 = vmatmul.msk.f32.vlgmr.msra.gmra.mxu1 %vm77_vm0, %v656_v2  ;;  %v3537_v58 = vpop.permute.xlu0 %3536 }
 0x79f   :  { %3329 = vmatpush.msk.msrb.mxu1 %vm4020_vm4, %v3836_v61  ;;  %v3538_v59 = vunpack.i.l.bf16 %v3537_v58  ;;  %v3539_v62 = vunpack.i.h.bf16 %v3537_v58 }
 0x7a1   :  { %3330 = vmatpush.msk.msrb.mxu1 %vm4036_vm8, %v3836_v61  ;;  %750 = vmatpush.msra.mxu2 %v3538_v59 }
 0x7a3   :  { %3331 = vmatpush.msk.msrb.mxu1 %vm4046_vm10, %v3836_v61  ;;  %751 = vmatpush.msra.mxu2 %v3539_v62 }
 0x7a5   :  { %3332 = vmatpush.msk.msrb.mxu1 %vm160_vm11, %v3836_v61 }
 0x7a6   :  { %v3542_v63 = vpop.permute.xlu0 %3541 }
 0x7a7   :  { %v3543_v17 = vunpack.i.l.bf16 %v3542_v63  ;;  %v3544_v23 = vunpack.i.h.bf16 %v3542_v63  ;;  %916 = vmatpush.msra.mxu1 %v632_v35 }
 0x7a9   :  { %752 = vmatpush.msra.mxu2 %v3543_v17  ;;  %917 = vmatpush.msra.mxu1 %v631_v21  ;;  %v1145_v17 = vld [vmem:[%s5453_s5 + $0x218] sm:$0xff] }
 0x7ab   :  { %753 = vmatpush.msra.mxu2 %v3544_v23  ;;  %918 = vmatpush.msra.mxu1 %v630_v40  ;;  %v1144_v23 = vld [vmem:[%s5453_s5 + $0x210] sm:$0xff] }
 0x7ad   :  { %919 = vmatpush.msra.mxu1 %v629_v41 }
 0x7ae   :  { %v3547_v29 = vpop.permute.xlu0 %3546 }
 0x7af   :  { %v3548_v16 = vunpack.i.l.bf16 %v3547_v29  ;;  %v3549_v30 = vunpack.i.h.bf16 %v3547_v29  ;;  %v1143_v29 = vld [vmem:[%s5453_s5 + $0x208] sm:$0xff] }
 0x7b1   :  { %868 = vmatpush.msrb.mxu2 %v3548_v16  ;;  %v1142_v16 = vld [vmem:[%s5453_s5 + $0x200] sm:$0xff] }
 0x7b3   :  { %869 = vmatpush.msrb.mxu2 %v3549_v30 }
 0x7b6   :  { %v3552_v0 = vpop.permute.xlu0 %3551 }
 0x7b7   :  { %v3553_v1 = vunpack.i.l.bf16 %v3552_v0  ;;  %v3554_v2 = vunpack.i.h.bf16 %v3552_v0 }
 0x7b9   :  { %870 = vmatpush.msrb.mxu2 %v3553_v1 }
 0x7bb   :  { %871 = vmatpush.msrb.mxu2 %v3554_v2 }
 0x811   :  { %v828_v3 = vpop.f32.mrf.mxu3 }
 0x812   :  { %v829_v4 = vadd.f32 %v828_v3, %v4135_v47 }
 0x814   :  { %v831_v5 = vsel %vm77_vm0, %v829_v4, -inf }
 0x815   :  { %832 = vmax.xlane.f32.xlu1 %v831_v5 }
 0x81b   :  { %v710_v6 = vpop.f32.mrf.mxu1 }
 0x81c   :  { %v711_v7 = vadd.f32 %v710_v6, %v4135_v47 }
 0x81e   :  { %v713_v8 = vsel %vm77_vm0, %v711_v7, -inf }
 0x81f   :  { %714 = vmax.xlane.f32.xlu2 %v713_v8 }
 0x888   :  { %v833_v9 = vpop.xlane.xlu1 %832 }
 0x889   :  { %v834_v10 = vsub.f32 %v829_v4, %v833_v9 }
 0x88b   :  { %v835_v11 = vmul.f32 1.442695, %v834_v10 }
 0x88d   :  { %3669 = vpow2.f32 %v835_v11 }
 0x892   :  { %v715_v12 = vpop.xlane.xlu2 %714 }
 0x893   :  { %v3670_v13 = vpop.eup %3669  ;;  %v716_v14 = vsub.f32 %v711_v7, %v715_v12 }
 0x894   :  { %3344 = vmatmul.msk.f32.vlgmr.msrb.gmra.mxu0 %vm77_vm0, %v3670_v13 }
 0x895   :  { %v717_v15 = vmul.f32 1.442695, %v716_v14 }
 0x897   :  { %3671 = vpow2.f32 %v717_v15  ;;  %v3638_v15 = vld [vmem:[%s5453_s5 + $0x1e8] ss:$0 sm:$0xff] }
 0x89c   :  { %1097 = vmatmul.f32.vlgmr.msra.gmra.mxu0 %v1079_v28 }
 0x89d   :  { %v3672_v47 = vpop.eup %3671 }
 0x89e   :  { %3328 = vmatmul.msk.f32.vlgmr.msra.gmra.mxu2 %vm77_vm0, %v3672_v47  ;;  %3333 = vmatmul.msk.f32.vlgmr.msrb.gmra.mxu1 %vm77_vm0, %v3672_v47 }
 0x89f   :  { %1168 = vmatpush.msrb.mxu1 %v1145_v17 }
 0x8a1   :  { %1169 = vmatpush.msrb.mxu1 %v1144_v23 }
 0x8a3   :  { %1170 = vmatpush.msrb.mxu1 %v1143_v29 }
 0x8a4   :  { %1100 = vmatmul.f32.gmra.mxu0 %v1080_v18 }
 0x8a5   :  { %1171 = vmatpush.msrb.mxu1 %v1142_v16 }
 0x8a6   :  { %3339 = vmatmul.msk.f32.vlgmr.msrb.gmra.mxu2 %vm77_vm0, %v3670_v13 }
 0x911   :  { %v893_v42 = vpop.f32.mrf.mxu0 }
 0x919   :  { %v4379_v27 = vpop.f32.mrf.mxu0 }
 0x91a   :  { %v1105_v49 = vmul.f32 %v4379_v27, %v4379_v27 }
 0x91b   :  { %v775_v50 = vpop.f32.mrf.mxu1 }
 0x91c   :  { %3673 = vrcp.f32 %v775_v50  ;;  %v1107_v51 = vsel %vm77_vm0, %v1105_v49, 0.0 }
 0x91d   :  { %1108 = vadd.xlane.f32.xlu0 %v1107_v51  ;;  %3675 = vrcp.f32 %v893_v42 }
 0x921   :  { %v755_v48 = vpop.f32.mrf.mxu2  ;;  %v4384_v53 = vpop.f32.mrf.mxu0 }
 0x922   :  { %v3674_v54 = vpop.eup %3673  ;;  %v1106_v33 = vmul.f32 %v4384_v53, %v4384_v53 }
 0x923   :  { %v779_v55 = vmul.f32 %v3674_v54, %v755_v48  ;;  %v3676_v59 = vpop.eup %3675 }
 0x924   :  { %v1110_v58 = vsel %vm77_vm0, %v1106_v33, 0.0 }
 0x925   :  { %1111 = vadd.xlane.f32.xlu1 %v1110_v58  ;;  %3345 = vmatmul.msk.f32.vlgmr.msra.gmra.mxu1 %vm77_vm0, %v779_v55  ;;  %v969_v58 = vld [vmem:[%s5453_s5 + $0x190] sm:$0xff] }
 0x929   :  { %v873_v62 = vpop.f32.mrf.mxu2 }
 0x92a   :  { %v897_v63 = vmul.f32 %v3676_v59, %v873_v62  ;;  %v968_v59 = vld [vmem:[%s5453_s5 + $0x188] sm:$0xff]  ;;  %v967_v62 = vld [vmem:[%s5453_s5 + $0x180] sm:$0xff] }
 0x92d   :  { %3346 = vmatmul.msk.f32.gmra.mxu1 %vm77_vm0, %v897_v63 }
 0x990   :  { %v1109_v30 = vpop.xlane.xlu0 %1108 }
 0x991   :  { %v1113_v0 = vmul.f32 %v1109_v30, %v4029_v39 }
 0x993   :  { %v1115_v1 = vadd.f32 1e-06, %v1113_v0 }
 0x995   :  { %3677 = vrsqrt.f32 %v1115_v1  ;;  %vm1123_vm7 = vweird.f32 %v1115_v1 }
 0x998   :  { %v1112_v2 = vpop.xlane.xlu1 %1111 }
 0x999   :  { %v1114_v3 = vmul.f32 %v1112_v2, %v4029_v39 }
 0x99b   :  { %v3678_v4 = vpop.eup %3677  ;;  %v1116_v5 = vadd.f32 1e-06, %v1114_v3 }
 0x99c   :  { %v1118_v6 = vmul.f32 %v3678_v4, %v1115_v1  ;;  %vm1124_vm6 = vweird.f32 %v3678_v4 }
 0x99d   :  { %3679 = vrsqrt.f32 %v1116_v5  ;;  %vm1125_vm9 = vmor %vm1123_vm7, %vm1124_vm6  ;;  %vm1133_vm14 = vweird.f32 %v1116_v5 }
 0x99e   :  { %v1119_v7 = vmul.f32 %v3678_v4, %v1118_v6 }
 0x9a0   :  { %v1120_v8 = vmul.f32 0.5, %v1119_v7 }
 0x9a2   :  { %v1121_v9 = vsub.f32 1.5, %v1120_v8  ;;  %v921_v10 = vpop.f32.mrf.mxu1 }
 0x9a3   :  { %v3680_v11 = vpop.eup %3679  ;;  %v4406_v12 = vadd.f32 %v921_v10, %v4243_v60 }
 0x9a4   :  { %v1122_v13 = vmul.f32 %v3678_v4, %v1121_v9  ;;  %v1128_v14 = vmul.f32 %v3680_v11, %v1116_v5  ;;  %vm1134_vm12 = vweird.f32 %v3680_v11 }
 0x9a5   :  { %v930_v28 = vmul.f32 %v4406_v12, %v4406_v12  ;;  %vm1135_vm15 = vmor %vm1133_vm14, %vm1134_vm12 }
 0x9a6   :  { %v1126_v47 = vsel %vm1125_vm9, %v3678_v4, %v1122_v13  ;;  %v1129_v18 = vmul.f32 %v3680_v11, %v1128_v14  ;;  %v3639_v13 = vld [vmem:[%s5453_s5 + $0x138] ss:$0 sm:$0xff] }
 0x9a7   :  { %v1137_v35 = vmul.f32 %v1126_v47, %v4379_v27  ;;  %v932_v21 = vsel %vm77_vm0, %v930_v28, 0.0 }
 0x9a8   :  { %v1130_v40 = vmul.f32 0.5, %v1129_v18  ;;  %933 = vadd.xlane.f32.xlu2 %v932_v21 }
 0x9a9   :  { %v1140_v60 = vmul.f32 %v3638_v15, %v1137_v35 }
 0x9aa   :  { %v1131_v41 = vsub.f32 1.5, %v1130_v40  ;;  %v924_v42 = vpop.f32.mrf.mxu1 }
 0x9ab   :  { %v4416_v49 = vadd.f32 %v924_v42, %v4249_v22  ;;  %3351 = vmatmul.msk.f32.vlgmr.msrb.gmra.mxu1 %vm77_vm0, %v1140_v60  ;;  %v970_v22 = vld [vmem:[%s5453_s5 + $0x198] sm:$0xff] }
 0x9ac   :  { %v1132_v50 = vmul.f32 %v3680_v11, %v1131_v41  ;;  %997 = vmatpush.msra.mxu2 %v970_v22 }
 0x9ad   :  { %v931_v51 = vmul.f32 %v4416_v49, %v4416_v49 }
 0x9ae   :  { %v1136_v48 = vsel %vm1135_vm15, %v3680_v11, %v1132_v50  ;;  %998 = vmatpush.msra.mxu2 %v969_v58 }
 0x9af   :  { %v935_v54 = vsel %vm77_vm0, %v931_v51, 0.0  ;;  %v1138_v33 = vmul.f32 %v1136_v48, %v4384_v53 }
 0x9b0   :  { %936 = vadd.xlane.f32.xlu1 %v935_v54  ;;  %999 = vmatpush.msra.mxu2 %v968_v59 }
 0x9b1   :  { %v1141_v55 = vmul.f32 %v3638_v15, %v1138_v33 }
 0x9b2   :  { %1000 = vmatpush.msra.mxu2 %v967_v62 }
 0x9b3   :  { %3352 = vmatmul.msk.f32.gmra.mxu1 %vm77_vm0, %v1141_v55 }
 0xa1b   :  { %v934_v63 = vpop.xlane.xlu2 %933 }
 0xa1c   :  { %v938_v17 = vmul.f32 %v934_v63, %v4029_v39 }
 0xa1e   :  { %v940_v23 = vadd.f32 1e-06, %v938_v17 }
 0xa20   :  { %3681 = vrsqrt.f32 %v940_v23  ;;  %vm948_vm2 = vweird.f32 %v940_v23 }
 0xa23   :  { %v937_v29 = vpop.xlane.xlu1 %936 }
 0xa24   :  { %v939_v16 = vmul.f32 %v937_v29, %v4029_v39 }
 0xa26   :  { %v3682_v30 = vpop.eup %3681  ;;  %v941_v0 = vadd.f32 1e-06, %v939_v16 }
 0xa27   :  { %v943_v1 = vmul.f32 %v3682_v30, %v940_v23  ;;  %vm949_vm1 = vweird.f32 %v3682_v30 }
 0xa28   :  { %3683 = vrsqrt.f32 %v941_v0  ;;  %v4438_v2 = vpop.f32.mrf.mxu1  ;;  %vm950_vm3 = vmor %vm948_vm2, %vm949_vm1  ;;  %vm958_vm6 = vweird.f32 %v941_v0 }
 0xa29   :  { %v944_v3 = vmul.f32 %v3682_v30, %v943_v1  ;;  %v1182_v4 = vmul.f32 %v4438_v2, %v4072_v24  ;;  %v1179_v5 = vmul.f32 %v4438_v2, %v4084_v31  ;;  %v1181_v6 = vmul.f32 %v4438_v2, %v4076_v26 }
 0xa2a   :  { %v1180_v47 = vmul.f32 %v4438_v2, %v4074_v25  ;;  %v1185_v55 = vmul.f32 %v4117_v19, %v4438_v2  ;;  %v1186_v22 = vmul.f32 %v4119_v20, %v4438_v2  ;;  %v1183_v59 = vmul.f32 %v4103_v56, %v4438_v2 }
 0xa2b   :  { %v945_v7 = vmul.f32 0.5, %v944_v3  ;;  %1197 = vrot.lane.b32.xlu2 %v1182_v4, %s3834_s13  ;;  %1191 = vrot.lane.b32.xlu0 %v1179_v5, %s3834_s13  ;;  %v1184_v62 = vmul.f32 %v4105_v57, %v4438_v2  ;;  %v978_v3 = vld [vmem:[%s5453_s5 + $0x1d8] sm:$0xff]  ;;  %v977_v5 = vld [vmem:[%s5453_s5 + $0x1d0] sm:$0xff] }
 0xa2c   :  { %1195 = vrot.lane.b32.xlu1 %v1181_v6, %s3834_s13  ;;  %v3555_v58 = vpack.i.bf16 %v1185_v55, %v1186_v22  ;;  %1024 = vmatpush.msra.mxu3 %v978_v3  ;;  %v976_v6 = vld [vmem:[%s5453_s5 + $0x1c8] sm:$0xff] }
 0xa2d   :  { %v946_v8 = vsub.f32 1.5, %v945_v7  ;;  %v3560_v63 = vpack.i.bf16 %v1183_v59, %v1184_v62  ;;  %v975_v7 = vld [vmem:[%s5453_s5 + $0x1c0] sm:$0xff] }
 0xa2e   :  { %v3684_v9 = vpop.eup %3683  ;;  %1025 = vmatpush.msra.mxu3 %v977_v5  ;;  %v4558_v62 = vld [vmem:[%s5452_s4] sm:$0xff] }
 0xa2f   :  { %v947_v10 = vmul.f32 %v3682_v30, %v946_v8  ;;  %v953_v11 = vmul.f32 %v3684_v9, %v941_v0  ;;  %vm959_vm5 = vweird.f32 %v3684_v9  ;;  %v974_v8 = vld [vmem:[%s5453_s5 + $0x1b8] sm:$0xff] }
 0xa30   :  { %v4452_v14 = vpop.f32.mrf.mxu1  ;;  %vm960_vm7 = vmor %vm958_vm6, %vm959_vm5  ;;  %1026 = vmatpush.msra.mxu3 %v976_v6 }
 0xa31   :  { %v951_v15 = vsel %vm950_vm3, %v3682_v30, %v947_v10  ;;  %v954_v28 = vmul.f32 %v3684_v9, %v953_v11  ;;  %v1300_v18 = vmul.f32 %v4452_v14, %v4072_v24  ;;  %v1299_v42 = vmul.f32 %v4452_v14, %v4076_v26  ;;  %v973_v10 = vld [vmem:[%s5453_s5 + $0x1b0] sm:$0xff]  ;;  %v972_v11 = vld [vmem:[%s5453_s5 + $0x1a8] sm:$0xff] }
 0xa32   :  { %v962_v35 = vmul.f32 %v951_v15, %v4406_v12  ;;  %v1298_v51 = vmul.f32 %v4452_v14, %v4074_v25  ;;  %v1297_v33 = vmul.f32 %v4452_v14, %v4084_v31  ;;  %v1303_v17 = vmul.f32 %v4117_v19, %v4452_v14  ;;  %1027 = vmatpush.msra.mxu3 %v975_v7 }
 0xa33   :  { %v955_v21 = vmul.f32 0.5, %v954_v28  ;;  %1193 = vrot.lane.b32.xlu2 %v1180_v47, %s3834_s13  ;;  %v1304_v23 = vmul.f32 %v4119_v20, %v4452_v14  ;;  %v1301_v16 = vmul.f32 %v4103_v56, %v4452_v14  ;;  %v1302_v30 = vmul.f32 %v4105_v57, %v4452_v14 }
 0xa34   :  { %v965_v40 = vmul.f32 %v3639_v13, %v962_v35  ;;  %1315 = vrot.lane.b32.xlu1 %v1300_v18, %s3834_s13  ;;  %1028 = vmatpush.msra.mxu3 %v974_v8 }
 0xa35   :  { %v956_v60 = vsub.f32 1.5, %v955_v21  ;;  %v3565_v29 = vpack.i.bf16 %v1303_v17, %v1304_v23  ;;  %v3570_v0 = vpack.i.bf16 %v1301_v16, %v1302_v30 }
 0xa36   :  { %3347 = vmatmul.msk.f32.vlgmr.msra.gmra.mxu2 %vm77_vm0, %v965_v40  ;;  %1029 = vmatpush.msra.mxu3 %v973_v10 }
 0xa37   :  { %v957_v41 = vmul.f32 %v3684_v9, %v956_v60 }
 0xa38   :  { %1030 = vmatpush.msra.mxu3 %v972_v11 }
 0xa39   :  { %v961_v50 = vsel %vm960_vm7, %v3684_v9, %v957_v41 }
 0xa3a   :  { %v963_v48 = vmul.f32 %v961_v50, %v4416_v49 }
 0xa3b   :  { %1313 = vrot.lane.b32.xlu2 %v1299_v42, %s3834_s13 }
 0xa3c   :  { %1311 = vrot.lane.b32.xlu1 %v1298_v51, %s3834_s13  ;;  %v966_v54 = vmul.f32 %v3639_v13, %v963_v48  ;;  %v971_v13 = vld [vmem:[%s5453_s5 + $0x1a0] sm:$0xff] }
 0xa3d   :  { %1031 = vmatpush.msra.mxu3 %v971_v13 }
 0xa3e   :  { %3348 = vmatmul.msk.f32.gmra.mxu2 %vm77_vm0, %v966_v54 }
 0xa3f   :  { %3359 = vmatpush.msk.msrb.mxu3 %vm4020_vm4, %v3836_v61 }
 0xa41   :  { %3360 = vmatpush.msk.msrb.mxu3 %vm4036_vm8, %v3836_v61 }
 0xa43   :  { %1309 = vrot.lane.b32.xlu2 %v1297_v33, %s3834_s13  ;;  %3361 = vmatpush.msk.msrb.mxu3 %vm4046_vm10, %v3836_v61 }
 0xa45   :  { %3362 = vmatpush.msk.msrb.mxu3 %vm160_vm11, %v3836_v61 }
 0xa4b   :  { %3556 = vrot.lane.b32.xlu2 %v3555_v58, %s3835_s14 }
 0xa53   :  { %3561 = vrot.lane.b32.xlu2 %v3560_v63, %s3835_s14 }
 0xa5b   :  { %3566 = vrot.lane.b32.xlu2 %v3565_v29, %s3835_s14 }
 0xa63   :  { %3571 = vrot.lane.b32.xlu2 %v3570_v0, %s3835_s14 }
 0xa85   :  { %v1198_v1 = vpop.permute.xlu2 %1197 }
 0xa86   :  { %3353 = vmatpush.xpose.msk.msrb.mxu2 %vm77_vm0, %v1198_v1 }
 0xa8d   :  { %v1194_v4 = vpop.permute.xlu2 %1193 }
 0xa95   :  { %v1314_v9 = vpop.permute.xlu2 %1313 }
 0xa9d   :  { %v1310_v15 = vpop.permute.xlu2 %1309  ;;  %v1192_v18 = vpop.permute.xlu0 %1191 }
 0xa9e   :  { %v1196_v28 = vpop.permute.xlu1 %1195 }
 0xa9f   :  { %3354 = vmatpush.xpose.msk.msrb.mxu2 %vm77_vm0, %v1196_v28 }
 0xaa3   :  { %3355 = vmatpush.xpose.msk.msrb.mxu2 %vm77_vm0, %v1194_v4 }
 0xaa5   :  { %v3557_v47 = vpop.permute.xlu2 %3556 }
 0xaa6   :  { %v3558_v35 = vunpack.i.l.bf16 %v3557_v47  ;;  %v1316_v21 = vpop.permute.xlu1 %1315  ;;  %v3559_v40 = vunpack.i.h.bf16 %v3557_v47 }
 0xaa7   :  { %3356 = vmatpush.xpose.msk.msrb.mxu2 %vm77_vm0, %v1192_v18  ;;  %3364 = vmatpush.xpose.msk.msra.mxu1 %vm77_vm0, %v1316_v21  ;;  %v1489_v18 = vld [vmem:[%s5453_s5 + $0x268] sm:$0xff] }
 0xaaa   :  { %3357 = vmatmul.msk.f32.vlgmr.msrb.gmra.mxu2 %vm77_vm0, %v4438_v2 }
 0xaab   :  { %1267 = vmatpush.msra.mxu2 %v3558_v35  ;;  %3365 = vmatpush.xpose.msk.msra.mxu1 %vm77_vm0, %v1314_v9  ;;  %v1488_v35 = vld [vmem:[%s5453_s5 + $0x260] sm:$0xff] }
 0xaad   :  { %1268 = vmatpush.msra.mxu2 %v3559_v40  ;;  %v3562_v60 = vpop.permute.xlu2 %3561 }
 0xaae   :  { %v3563_v41 = vunpack.i.l.bf16 %v3562_v60  ;;  %v1312_v42 = vpop.permute.xlu1 %1311  ;;  %v3564_v50 = vunpack.i.h.bf16 %v3562_v60 }
 0xaaf   :  { %3366 = vmatpush.xpose.msk.msra.mxu1 %vm77_vm0, %v1312_v42 }
 0xab0   :  { %1269 = vmatpush.msra.mxu2 %v3563_v41 }
 0xab2   :  { %1270 = vmatpush.msra.mxu2 %v3564_v50 }
 0xab3   :  { %3367 = vmatpush.xpose.msk.msra.mxu1 %vm77_vm0, %v1310_v15 }
 0xab5   :  { %v3567_v51 = vpop.permute.xlu2 %3566 }
 0xab6   :  { %v3568_v48 = vunpack.i.l.bf16 %v3567_v51  ;;  %3368 = vmatmul.msk.f32.vlgmr.msra.gmra.mxu1 %vm77_vm0, %v4452_v14  ;;  %v3569_v54 = vunpack.i.h.bf16 %v3567_v51 }
 0xab8   :  { %1385 = vmatpush.msrb.mxu2 %v3568_v48 }
 0xab9   :  { %v1002_v2 = vpop.f32.mrf.mxu2 }
 0xaba   :  { %v1008_v33 = vmax.f32 %v1002_v2, 0.0  ;;  %1386 = vmatpush.msrb.mxu2 %v3569_v54 }
 0xabc   :  { %3349 = vmatmul.msk.f32.vlgmr.msra.gmra.mxu3 %vm555_vm13, %v1008_v33 }
 0xabd   :  { %v3572_v55 = vpop.permute.xlu2 %3571  ;;  %3370 = vmatpush.msk.msra.mxu3 %vm4020_vm4, %v3836_v61 }
 0xabe   :  { %v3573_v22 = vunpack.i.l.bf16 %v3572_v55  ;;  %v3574_v58 = vunpack.i.h.bf16 %v3572_v55 }
 0xabf   :  { %3371 = vmatpush.msk.msra.mxu3 %vm4036_vm8, %v3836_v61 }
 0xac0   :  { %1387 = vmatpush.msrb.mxu2 %v3573_v22 }
 0xac1   :  { %v1005_v14 = vpop.f32.mrf.mxu2  ;;  %3372 = vmatpush.msk.msra.mxu3 %vm4046_vm10, %v3836_v61 }
 0xac2   :  { %v1009_v59 = vmax.f32 %v1005_v14, 0.0  ;;  %1388 = vmatpush.msrb.mxu2 %v3574_v58 }
 0xac3   :  { %3373 = vmatpush.msk.msra.mxu3 %vm160_vm11, %v3836_v61 }
 0xac4   :  { %3350 = vmatmul.msk.f32.gmra.mxu3 %vm555_vm13, %v1009_v59  ;;  %v3640_v59 = vld [vmem:[%s5453_s5 + $0x1e0] ss:$0 sm:$0xff] }
 0xb2d   :  { %v1227_v63 = vpop.f32.mrf.mxu2 }
 0xb2e   :  { %v1228_v17 = vadd.f32 %v1227_v63, %v4558_v62 }
 0xb30   :  { %v1230_v23 = vsel %vm77_vm0, %v1228_v17, -inf }
 0xb31   :  { %1231 = vmax.xlane.f32.xlu1 %v1230_v23 }
 0xb33   :  { %v1345_v29 = vpop.f32.mrf.mxu1 }
 0xb34   :  { %v1346_v16 = vadd.f32 %v1345_v29, %v4558_v62 }
 0xb36   :  { %v1348_v30 = vsel %vm77_vm0, %v1346_v16, -inf }
 0xb37   :  { %1349 = vmax.xlane.f32.xlu0 %v1348_v30 }
 0xb3f   :  { %v1033_v0 = vpop.f32.mrf.mxu3 }
 0xb40   :  { %v1039_v1 = vadd.f32 %v1033_v0, %v4406_v12  ;;  %v1491_v12 = vld [vmem:[%s5453_s5 + $0x278] sm:$0xff] }
 0xb42   :  { %v1042_v3 = vmul.f32 %v1039_v1, %v1039_v1 }
 0xb44   :  { %v1044_v4 = vsel %vm77_vm0, %v1042_v3, 0.0 }
 0xb45   :  { %1045 = vadd.xlane.f32.xlu2 %v1044_v4 }
 0xb47   :  { %v1036_v5 = vpop.f32.mrf.mxu3 }
 0xb48   :  { %v1040_v6 = vadd.f32 %v1036_v5, %v4416_v49  ;;  %v1490_v49 = vld [vmem:[%s5453_s5 + $0x270] sm:$0xff] }
 0xb4a   :  { %v1043_v7 = vmul.f32 %v1040_v6, %v1040_v6 }
 0xb4c   :  { %v1047_v8 = vsel %vm77_vm0, %v1043_v7, 0.0  ;;  %v1148_v7 = vld [vmem:[%s5453_s5 + $0x230] sm:$0xff] }
 0xb4d   :  { %1048 = vadd.xlane.f32.xlu1 %v1047_v8  ;;  %v1147_v8 = vld [vmem:[%s5453_s5 + $0x228] sm:$0xff] }
 0xba4   :  { %v1232_v9 = vpop.xlane.xlu1 %1231 }
 0xba5   :  { %v1233_v10 = vsub.f32 %v1228_v17, %v1232_v9 }
 0xba7   :  { %v1234_v11 = vmul.f32 1.442695, %v1233_v10 }
 0xba9   :  { %3685 = vpow2.f32 %v1234_v11  ;;  %v1487_v11 = vld [vmem:[%s5453_s5 + $0x258] sm:$0xff] }
 0xbaa   :  { %v1350_v13 = vpop.xlane.xlu0 %1349 }
 0xbab   :  { %v1351_v15 = vsub.f32 %v1346_v16, %v1350_v13  ;;  %v1486_v13 = vld [vmem:[%s5453_s5 + $0x250] sm:$0xff] }
 0xbad   :  { %v1352_v28 = vmul.f32 1.442695, %v1351_v15 }
 0xbaf   :  { %v3686_v47 = vpop.eup %3685  ;;  %3687 = vpow2.f32 %v1352_v28 }
 0xbb0   :  { %3358 = vmatmul.msk.f32.vlgmr.msra.gmra.mxu2 %vm77_vm0, %v3686_v47  ;;  %3363 = vmatmul.msk.f32.vlgmr.msrb.gmra.mxu3 %vm77_vm0, %v3686_v47  ;;  %v1485_v47 = vld [vmem:[%s5453_s5 + $0x248] sm:$0xff] }
 0xbb1   :  { %1543 = vmatpush.msrb.mxu3 %v1491_v12  ;;  %1514 = vmatpush.msra.mxu2 %v1487_v11 }
 0xbb3   :  { %1544 = vmatpush.msrb.mxu3 %v1490_v49  ;;  %1515 = vmatpush.msra.mxu2 %v1486_v13  ;;  %v1484_v49 = vld [vmem:[%s5453_s5 + $0x240] sm:$0xff] }
 0xbb5   :  { %1545 = vmatpush.msrb.mxu3 %v1489_v18  ;;  %v3688_v21 = vpop.eup %3687  ;;  %1516 = vmatpush.msra.mxu2 %v1485_v47 }
 0xbb7   :  { %1546 = vmatpush.msrb.mxu3 %v1488_v35  ;;  %1517 = vmatpush.msra.mxu2 %v1484_v49 }
 0xbb8   :  { %3369 = vmatmul.msk.f32.vlgmr.msrb.gmra.mxu2 %vm77_vm0, %v3688_v21  ;;  %3374 = vmatmul.msk.f32.vlgmr.msra.gmra.mxu3 %vm77_vm0, %v3688_v21  ;;  %v1046_v40 = vpop.xlane.xlu2 %1045 }
 0xbb9   :  { %v1050_v60 = vmul.f32 %v1046_v40, %v4029_v39 }
 0xbbb   :  { %v1052_v41 = vadd.f32 1e-06, %v1050_v60 }
 0xbbd   :  { %3689 = vrsqrt.f32 %v1052_v41  ;;  %vm1060_vm12 = vweird.f32 %v1052_v41 }
 0xbc0   :  { %v1049_v42 = vpop.xlane.xlu1 %1048 }
 0xbc1   :  { %v1051_v50 = vmul.f32 %v1049_v42, %v4029_v39 }
 0xbc3   :  { %v3690_v51 = vpop.eup %3689  ;;  %v1053_v48 = vadd.f32 1e-06, %v1051_v50 }
 0xbc4   :  { %v1055_v54 = vmul.f32 %v3690_v51, %v1052_v41  ;;  %vm1061_vm9 = vweird.f32 %v3690_v51 }
 0xbc5   :  { %3691 = vrsqrt.f32 %v1053_v48  ;;  %vm1062_vm14 = vmor %vm1060_vm12, %vm1061_vm9  ;;  %vm1070_vm1 = vweird.f32 %v1053_v48 }
 0xbc6   :  { %v1056_v2 = vmul.f32 %v3690_v51, %v1055_v54 }
 0xbc8   :  { %v1057_v33 = vmul.f32 0.5, %v1056_v2 }
 0xbca   :  { %v1058_v55 = vsub.f32 1.5, %v1057_v33 }
 0xbcb   :  { %v3692_v22 = vpop.eup %3691 }
 0xbcc   :  { %v1059_v58 = vmul.f32 %v3690_v51, %v1058_v55  ;;  %v1065_v14 = vmul.f32 %v3692_v22, %v1053_v48  ;;  %vm1071_vm15 = vweird.f32 %v3692_v22 }
 0xbcd   :  { %vm1072_vm2 = vmor %vm1070_vm1, %vm1071_vm15 }
 0xbce   :  { %v1063_v63 = vsel %vm1062_vm14, %v3690_v51, %v1059_v58  ;;  %v1066_v17 = vmul.f32 %v3692_v22, %v1065_v14 }
 0xbcf   :  { %v1074_v23 = vmul.f32 %v1063_v63, %v1039_v1  ;;  %v1149_v1 = vld [vmem:[%s5453_s5 + $0x238] sm:$0xff] }
 0xbd0   :  { %v1067_v29 = vmul.f32 0.5, %v1066_v17  ;;  %1433 = vmatpush.msrb.mxu1 %v1149_v1 }
 0xbd1   :  { %v4589_v16 = vmul.f32 %v3640_v59, %v1074_v23 }
 0xbd2   :  { %v1068_v30 = vsub.f32 1.5, %v1067_v29  ;;  %1434 = vmatpush.msrb.mxu1 %v1148_v7 }
 0xbd3   :  { %3379 = vmatmul.msk.f32.vlgmr.msrb.gmra.mxu3 %vm77_vm0, %v4589_v16 }
 0xbd4   :  { %v1069_v0 = vmul.f32 %v3692_v22, %v1068_v30  ;;  %1435 = vmatpush.msrb.mxu1 %v1147_v8 }
 0xbd6   :  { %v1073_v3 = vsel %vm1072_vm2, %v3692_v22, %v1069_v0 }
 0xbd7   :  { %v1075_v4 = vmul.f32 %v1073_v3, %v1040_v6  ;;  %v1146_v6 = vld [vmem:[%s5453_s5 + $0x220] sm:$0xff] }
 0xbd8   :  { %1436 = vmatpush.msrb.mxu1 %v1146_v6 }
 0xbd9   :  { %v4593_v5 = vmul.f32 %v3640_v59, %v1075_v4 }
 0xbda   :  { %3387 = vmatpush.msk.msra.mxu1 %vm4020_vm4, %v3836_v61 }
 0xbdb   :  { %3380 = vmatmul.msk.f32.gmra.mxu3 %vm77_vm0, %v4593_v5 }
 0xbdc   :  { %3388 = vmatpush.msk.msra.mxu1 %vm4036_vm8, %v3836_v61 }
 0xbde   :  { %3389 = vmatpush.msk.msra.mxu1 %vm4046_vm10, %v3836_v61 }
 0xbe0   :  { %3390 = vmatpush.msk.msra.mxu1 %vm160_vm11, %v3836_v61 }
 0xc33   :  { %v1292_v9 = vpop.f32.mrf.mxu3  ;;  %v1272_v10 = vpop.f32.mrf.mxu2 }
 0xc34   :  { %3693 = vrcp.f32 %v1292_v9 }
 0xc3a   :  { %v3694_v15 = vpop.eup %3693 }
 0xc3b   :  { %v1296_v28 = vmul.f32 %v3694_v15, %v1272_v10  ;;  %v1410_v12 = vpop.f32.mrf.mxu3  ;;  %v1390_v35 = vpop.f32.mrf.mxu2 }
 0xc3c   :  { %3695 = vrcp.f32 %v1410_v12 }
 0xc3d   :  { %3375 = vmatmul.msk.f32.vlgmr.msrb.gmra.mxu1 %vm77_vm0, %v1296_v28 }
 0xc42   :  { %v3696_v18 = vpop.eup %3695 }
 0xc43   :  { %v1414_v21 = vmul.f32 %v3696_v18, %v1390_v35 }
 0xc45   :  { %3376 = vmatmul.msk.f32.gmra.mxu1 %vm77_vm0, %v1414_v21 }
 0xc56   :  { %v4635_v40 = vpop.f32.mrf.mxu3 }
 0xc57   :  { %v1557_v60 = vmul.f32 %v4027_v38, %v4635_v40  ;;  %v1556_v41 = vmul.f32 %v4044_v44, %v4635_v40  ;;  %v1555_v50 = vmul.f32 %v4054_v46, %v4635_v40  ;;  %v1554_v33 = vmul.f32 %v4062_v52, %v4635_v40 }
 0xc58   :  { %v1560_v1 = vmul.f32 %v4635_v40, %v4076_v26  ;;  %v1561_v7 = vmul.f32 %v4635_v40, %v4072_v24 }
 0xc59   :  { %3381 = vmatpush.xpose.msk.msrb.mxu0 %vm77_vm0, %v1557_v60 }
 0xc5a   :  { %v3575_v8 = vpack.i.bf16 %v1560_v1, %v1561_v7 }
 0xc5d   :  { %3382 = vmatpush.xpose.msk.msrb.mxu0 %vm77_vm0, %v1556_v41 }
 0xc5e   :  { %v1551_v42 = vpop.f32.mrf.mxu3 }
 0xc5f   :  { %v1667_v51 = vmul.f32 %v4027_v38, %v1551_v42  ;;  %v1670_v48 = vmul.f32 %v1551_v42, %v4076_v26  ;;  %v1671_v54 = vmul.f32 %v1551_v42, %v4072_v24  ;;  %v1666_v55 = vmul.f32 %v4044_v44, %v1551_v42 }
 0xc60   :  { %v1665_v22 = vmul.f32 %v4054_v46, %v1551_v42  ;;  %v1664_v58 = vmul.f32 %v4062_v52, %v1551_v42  ;;  %v1668_v6 = vmul.f32 %v1551_v42, %v4084_v31 }
 0xc61   :  { %3383 = vmatpush.xpose.msk.msrb.mxu0 %vm77_vm0, %v1555_v50  ;;  %3392 = vmatpush.xpose.msk.msrb.mxu2 %vm77_vm0, %v1667_v51  ;;  %v3585_v2 = vpack.i.bf16 %v1670_v48, %v1671_v54  ;;  %v3641_v50 = vld [vmem:[%s5453_s5 + $0x1f0] ss:$0 sm:$0xff] }
 0xc63   :  { %3586 = vrot.lane.b32.xlu2 %v3585_v2, %s3834_s13 }
 0xc65   :  { %3384 = vmatpush.xpose.msk.msrb.mxu0 %vm77_vm0, %v1554_v33  ;;  %3393 = vmatpush.xpose.msk.msrb.mxu2 %vm77_vm0, %v1666_v55 }
 0xc69   :  { %3394 = vmatpush.xpose.msk.msrb.mxu2 %vm77_vm0, %v1665_v22 }
 0xc6d   :  { %3395 = vmatpush.xpose.msk.msrb.mxu2 %vm77_vm0, %v1664_v58 }
 0xcba   :  { %v1438_v14 = vpop.f32.mrf.mxu1 }
 0xcbb   :  { %v4661_v59 = vadd.f32 %v1438_v14, %v4379_v27 }
 0xcbd   :  { %v3587_v63 = vpop.permute.xlu2 %3586  ;;  %v1447_v17 = vmul.f32 %v4661_v59, %v4661_v59 }
 0xcbe   :  { %v3588_v23 = vunpack.i.l.bf16 %v3587_v63  ;;  %v3589_v30 = vunpack.i.h.bf16 %v3587_v63 }
 0xcbf   :  { %v1449_v29 = vsel %vm77_vm0, %v1447_v17, 0.0 }
 0xcc0   :  { %1450 = vadd.xlane.f32.xlu0 %v1449_v29  ;;  %1744 = vmatpush.msra.mxu3 %v3588_v23 }
 0xcc2   :  { %v1441_v0 = vpop.f32.mrf.mxu1  ;;  %1745 = vmatpush.msra.mxu3 %v3589_v30 }
 0xcc3   :  { %v4667_v3 = vadd.f32 %v1441_v0, %v4384_v53  ;;  %v1669_v53 = vmul.f32 %v1551_v42, %v4074_v25 }
 0xcc5   :  { %v1448_v4 = vmul.f32 %v4667_v3, %v4667_v3  ;;  %v3590_v9 = vpack.i.bf16 %v1668_v6, %v1669_v53 }
 0xcc7   :  { %v1452_v27 = vsel %vm77_vm0, %v1448_v4, 0.0 }
 0xcc8   :  { %1453 = vadd.xlane.f32.xlu1 %v1452_v27 }
 0xce1   :  { %3576 = vrot.lane.b32.xlu1 %v3575_v8, %s3834_s13 }
 0xce9   :  { %3591 = vrot.lane.b32.xlu1 %v3590_v9, %s3834_s13  ;;  %v1558_v9 = vmul.f32 %v4635_v40, %v4084_v31 }
 0xd33   :  { %v1451_v10 = vpop.xlane.xlu0 %1450 }
 0xd34   :  { %v1455_v11 = vmul.f32 %v1451_v10, %v4029_v39  ;;  %v1559_v10 = vmul.f32 %v4635_v40, %v4074_v25 }
 0xd36   :  { %v1457_v13 = vadd.f32 1e-06, %v1455_v11  ;;  %v3580_v11 = vpack.i.bf16 %v1558_v9, %v1559_v10  ;;  %v1854_v9 = vld [vmem:[%s5453_s5 + $0x2f8] sm:$0xff]  ;;  %v1853_v10 = vld [vmem:[%s5453_s5 + $0x2f0] sm:$0xff] }
 0xd38   :  { %3697 = vrsqrt.f32 %v1457_v13  ;;  %vm1465_vm5 = vweird.f32 %v1457_v13 }
 0xd3b   :  { %v1454_v15 = vpop.xlane.xlu1 %1453 }
 0xd3c   :  { %v1456_v28 = vmul.f32 %v1454_v15, %v4029_v39 }
 0xd3e   :  { %v3698_v12 = vpop.eup %3697  ;;  %v1458_v47 = vadd.f32 1e-06, %v1456_v28 }
 0xd3f   :  { %v1460_v49 = vmul.f32 %v3698_v12, %v1457_v13  ;;  %vm1466_vm3 = vweird.f32 %v3698_v12 }
 0xd40   :  { %3699 = vrsqrt.f32 %v1458_v47  ;;  %vm1467_vm6 = vmor %vm1465_vm5, %vm1466_vm3  ;;  %vm1475_vm9 = vweird.f32 %v1458_v47 }
 0xd41   :  { %v1461_v18 = vmul.f32 %v3698_v12, %v1460_v49 }
 0xd43   :  { %v1462_v35 = vmul.f32 0.5, %v1461_v18 }
 0xd45   :  { %v1463_v21 = vsub.f32 1.5, %v1462_v35 }
 0xd46   :  { %v3700_v60 = vpop.eup %3699 }
 0xd47   :  { %v1464_v41 = vmul.f32 %v3698_v12, %v1463_v21  ;;  %v1470_v42 = vmul.f32 %v3700_v60, %v1458_v47  ;;  %vm1476_vm7 = vweird.f32 %v3700_v60 }
 0xd48   :  { %vm1477_vm12 = vmor %vm1475_vm9, %vm1476_vm7 }
 0xd49   :  { %v1468_v51 = vsel %vm1467_vm6, %v3698_v12, %v1464_v41  ;;  %v1471_v48 = vmul.f32 %v3700_v60, %v1470_v42  ;;  %v1495_v41 = vld [vmem:[%s5453_s5 + $0x298] sm:$0xff]  ;;  %v1494_v42 = vld [vmem:[%s5453_s5 + $0x290] sm:$0xff] }
 0xd4a   :  { %v1479_v54 = vmul.f32 %v1468_v51, %v4661_v59  ;;  %1792 = vmatpush.msrb.mxu1 %v1495_v41  ;;  %v1492_v51 = vld [vmem:[%s5453_s5 + $0x280] sm:$0xff] }
 0xd4b   :  { %v1472_v2 = vmul.f32 0.5, %v1471_v48 }
 0xd4c   :  { %v1482_v33 = vmul.f32 %v3641_v50, %v1479_v54  ;;  %1793 = vmatpush.msrb.mxu1 %v1494_v42  ;;  %v3642_v42 = vld [vmem:[%s5453_s5 + $0x1f8] ss:$0 sm:$0xff] }
 0xd4d   :  { %v1473_v55 = vsub.f32 1.5, %v1472_v2 }
 0xd4e   :  { %3377 = vmatmul.msk.f32.vlgmr.msra.gmra.mxu2 %vm77_vm0, %v1482_v33 }
 0xd4f   :  { %v1474_v22 = vmul.f32 %v3700_v60, %v1473_v55 }
 0xd51   :  { %v1478_v58 = vsel %vm1477_vm12, %v3700_v60, %v1474_v22 }
 0xd52   :  { %v1480_v14 = vmul.f32 %v1478_v58, %v4667_v3 }
 0xd53   :  { %v3577_v63 = vpop.permute.xlu1 %3576 }
 0xd54   :  { %v3578_v17 = vunpack.i.l.bf16 %v3577_v63  ;;  %v1483_v23 = vmul.f32 %v3641_v50, %v1480_v14  ;;  %v3579_v29 = vunpack.i.h.bf16 %v3577_v63  ;;  %v1493_v50 = vld [vmem:[%s5453_s5 + $0x288] sm:$0xff] }
 0xd55   :  { %1794 = vmatpush.msrb.mxu1 %v1493_v50 }
 0xd56   :  { %3378 = vmatmul.msk.f32.gmra.mxu2 %vm77_vm0, %v1483_v23  ;;  %1634 = vmatpush.msra.mxu0 %v3578_v17 }
 0xd57   :  { %1795 = vmatpush.msrb.mxu1 %v1492_v51 }
 0xd58   :  { %1635 = vmatpush.msra.mxu0 %v3579_v29 }
 0xd5b   :  { %v3592_v30 = vpop.permute.xlu1 %3591 }
 0xd5c   :  { %v3593_v0 = vunpack.i.l.bf16 %v3592_v30  ;;  %v3594_v4 = vunpack.i.h.bf16 %v3592_v30 }
 0xd5e   :  { %1746 = vmatpush.msra.mxu3 %v3593_v0 }
 0xd60   :  { %1747 = vmatpush.msra.mxu3 %v3594_v4 }
 0xd62   :  { %1900 = vmatpush.msrb.mxu3 %v1854_v9 }
 0xd64   :  { %1901 = vmatpush.msrb.mxu3 %v1853_v10 }
 0xdd1   :  { %v1519_v27 = vpop.f32.mrf.mxu2 }
 0xdd2   :  { %3385 = vmatmul.msk.f32.vlgmr.msrb.gmra.mxu0 %vm77_vm0, %v1519_v27 }
 0xdd9   :  { %v1522_v1 = vpop.f32.mrf.mxu2 }
 0xdda   :  { %3396 = vmatmul.msk.f32.vlgmr.msrb.gmra.mxu2 %vm77_vm0, %v1522_v1  ;;  %v1845_v1 = vld [vmem:[%s5453_s5 + $0x2b0] sm:$0xff] }
 0xe4f   :  { %v1594_v7 = vpop.f32.mrf.mxu0 }
 0xe50   :  { %v1597_v8 = vsel %vm77_vm0, %v1594_v7, -inf }
 0xe51   :  { %1598 = vmax.xlane.f32.xlu0 %v1597_v8 }
 0xe5d   :  { %v1704_v6 = vpop.f32.mrf.mxu2 }
 0xe5e   :  { %v1707_v53 = vsel %vm77_vm0, %v1704_v6, -inf }
 0xe5f   :  { %1708 = vmax.xlane.f32.xlu0 %v1707_v53 }
 0xe73   :  { %3581 = vrot.lane.b32.xlu0 %v3580_v11, %s3834_s13 }
 0xec4   :  { %v1599_v13 = vpop.xlane.xlu0 %1598 }
 0xec5   :  { %v1600_v15 = vsub.f32 %v1594_v7, %v1599_v13  ;;  %v1843_v7 = vld [vmem:[%s5453_s5 + $0x2a0] sm:$0xff] }
 0xec7   :  { %v1601_v28 = vmul.f32 1.442695, %v1600_v15  ;;  %v1852_v15 = vld [vmem:[%s5453_s5 + $0x2e8] sm:$0xff] }
 0xec8   :  { %1902 = vmatpush.msrb.mxu3 %v1852_v15  ;;  %v1955_v15 = vld [vmem:[%s5453_s5 + $0x318] sm:$0xff] }
 0xec9   :  { %3701 = vpow2.f32 %v1601_v28 }
 0xecf   :  { %v3702_v12 = vpop.eup %3701 }
 0xed0   :  { %3391 = vmatmul.msk.f32.vlgmr.msra.gmra.mxu1 %vm77_vm0, %v3702_v12 }
 0xed2   :  { %v1709_v47 = vpop.xlane.xlu0 %1708 }
 0xed3   :  { %v1710_v49 = vsub.f32 %v1704_v6, %v1709_v47 }
 0xed5   :  { %v1711_v18 = vmul.f32 1.442695, %v1710_v49 }
 0xed7   :  { %3703 = vpow2.f32 %v1711_v18 }
 0xedd   :  { %v3704_v35 = vpop.eup %3703 }
 0xede   :  { %3397 = vmatmul.msk.f32.vlgmr.msra.gmra.mxu3 %vm77_vm0, %v3704_v35 }
 0xee5   :  { %v3582_v21 = vpop.permute.xlu0 %3581 }
 0xee6   :  { %v3583_v60 = vunpack.i.l.bf16 %v3582_v21  ;;  %v3584_v40 = vunpack.i.h.bf16 %v3582_v21 }
 0xee8   :  { %1636 = vmatpush.msra.mxu0 %v3583_v60 }
 0xeea   :  { %1637 = vmatpush.msra.mxu0 %v3584_v40  ;;  %v1849_v40 = vld [vmem:[%s5453_s5 + $0x2d0] sm:$0xff] }
 0xeeb   :  { %3386 = vmatmul.msk.f32.vlgmr.msra.gmra.mxu0 %vm77_vm0, %v3702_v12  ;;  %v1851_v12 = vld [vmem:[%s5453_s5 + $0x2e0] sm:$0xff] }
 0xeec   :  { %3398 = vmatpush.msk.msrb.mxu0 %vm4020_vm4, %v3836_v61  ;;  %1903 = vmatpush.msrb.mxu3 %v1851_v12 }
 0xeee   :  { %3399 = vmatpush.msk.msrb.mxu0 %vm4036_vm8, %v3836_v61 }
 0xef0   :  { %3400 = vmatpush.msk.msrb.mxu0 %vm4046_vm10, %v3836_v61 }
 0xef2   :  { %3401 = vmatpush.msk.msrb.mxu0 %vm160_vm11, %v3836_v61 }
 0xef3   :  { %3402 = vmatmul.msk.f32.vlgmr.msrb.gmra.mxu0 %vm77_vm0, %v3704_v35  ;;  %v1850_v35 = vld [vmem:[%s5453_s5 + $0x2d8] sm:$0xff] }
 0xef4   :  { %1904 = vmatpush.msrb.mxu3 %v1850_v35 }
 0xef6   :  { %1905 = vmatpush.msrb.mxu3 %v1849_v40 }
 0xf4d   :  { %v1659_v48 = vpop.f32.mrf.mxu1 }
 0xf4e   :  { %3705 = vrcp.f32 %v1659_v48 }
 0xf54   :  { %v3706_v54 = vpop.eup %3705 }
 0xf61   :  { %v1749_v58 = vpop.f32.mrf.mxu3 }
 0xf68   :  { %v1639_v2 = vpop.f32.mrf.mxu0 }
 0xf69   :  { %v1663_v33 = vmul.f32 %v3706_v54, %v1639_v2 }
 0xf6b   :  { %3403 = vmatmul.msk.f32.vlgmr.msrb.gmra.mxu1 %vm77_vm0, %v1663_v33 }
 0xf70   :  { %v1769_v55 = vpop.f32.mrf.mxu0 }
 0xf71   :  { %3707 = vrcp.f32 %v1769_v55 }
 0xf77   :  { %v3708_v22 = vpop.eup %3707 }
 0xf78   :  { %v1773_v14 = vmul.f32 %v3708_v22, %v1749_v58 }
 0xf7a   :  { %3404 = vmatmul.msk.f32.gmra.mxu1 %vm77_vm0, %v1773_v14 }
 0xfe8   :  { %v1797_v63 = vpop.f32.mrf.mxu1 }
 0xfe9   :  { %v4729_v17 = vadd.f32 %v1797_v63, %v4661_v59  ;;  %v1846_v59 = vld [vmem:[%s5453_s5 + $0x2b8] sm:$0xff] }
 0xfea   :  { %1873 = vmatpush.msra.mxu2 %v1846_v59 }
 0xfeb   :  { %v1806_v23 = vmul.f32 %v4729_v17, %v4729_v17 }
 0xfec   :  { %1874 = vmatpush.msra.mxu2 %v1845_v1 }
 0xfed   :  { %v1808_v29 = vsel %vm77_vm0, %v1806_v23, 0.0 }
 0xfee   :  { %1809 = vadd.xlane.f32.xlu0 %v1808_v29  ;;  %v1848_v29 = vld [vmem:[%s5453_s5 + $0x2c8] sm:$0xff] }
 0xfef   :  { %1906 = vmatpush.msrb.mxu3 %v1848_v29 }
 0xff7   :  { %v1800_v30 = vpop.f32.mrf.mxu1 }
 0xff8   :  { %v4735_v0 = vadd.f32 %v1800_v30, %v4667_v3  ;;  %v1844_v3 = vld [vmem:[%s5453_s5 + $0x2a8] sm:$0xff]  ;;  %v1847_v30 = vld [vmem:[%s5453_s5 + $0x2c0] sm:$0xff] }
 0xff9   :  { %1875 = vmatpush.msra.mxu2 %v1844_v3  ;;  %1907 = vmatpush.msrb.mxu3 %v1847_v30 }
 0xffa   :  { %v1807_v4 = vmul.f32 %v4735_v0, %v4735_v0 }
 0xffb   :  { %1876 = vmatpush.msra.mxu2 %v1843_v7 }
 0xffc   :  { %v1811_v27 = vsel %vm77_vm0, %v1807_v4, 0.0 }
 0xffd   :  { %1812 = vadd.xlane.f32.xlu1 %v1811_v27 }
0x1061   :  { %v1810_v8 = vpop.xlane.xlu0 %1809 }
0x1062   :  { %v1814_v6 = vmul.f32 %v1810_v8, %v4029_v39 }
0x1064   :  { %v1816_v53 = vadd.f32 1e-06, %v1814_v6 }
0x1066   :  { %3709 = vrsqrt.f32 %v1816_v53  ;;  %vm1824_vm15 = vweird.f32 %v1816_v53 }
0x106c   :  { %v3710_v11 = vpop.eup %3709 }
0x106d   :  { %v1819_v13 = vmul.f32 %v3710_v11, %v1816_v53  ;;  %vm1825_vm14 = vweird.f32 %v3710_v11 }
0x106e   :  { %vm1826_vm1 = vmor %vm1824_vm15, %vm1825_vm14 }
0x106f   :  { %v1820_v28 = vmul.f32 %v3710_v11, %v1819_v13  ;;  %v1957_v13 = vld [vmem:[%s5453_s5 + $0x328] sm:$0xff] }
0x1070   :  { %v1813_v47 = vpop.xlane.xlu1 %1812 }
0x1071   :  { %v1821_v49 = vmul.f32 0.5, %v1820_v28  ;;  %v1815_v18 = vmul.f32 %v1813_v47, %v4029_v39 }
0x1073   :  { %v1822_v21 = vsub.f32 1.5, %v1821_v49  ;;  %v1817_v60 = vadd.f32 1e-06, %v1815_v18 }
0x1075   :  { %v1823_v41 = vmul.f32 %v3710_v11, %v1822_v21  ;;  %3711 = vrsqrt.f32 %v1817_v60  ;;  %vm1834_vm3 = vweird.f32 %v1817_v60 }
0x1077   :  { %v1827_v50 = vsel %vm1826_vm1, %v3710_v11, %v1823_v41 }
0x1078   :  { %v1838_v51 = vmul.f32 %v1827_v50, %v4729_v17 }
0x107a   :  { %v1841_v48 = vmul.f32 %v3642_v42, %v1838_v51  ;;  %v3643_v51 = vld [vmem:[%s5453_s5 + $0x300] ss:$0 sm:$0xff] }
0x107b   :  { %v3712_v54 = vpop.eup %3711 }
0x107c   :  { %v1829_v2 = vmul.f32 %v3712_v54, %v1817_v60  ;;  %3405 = vmatmul.msk.f32.vlgmr.msra.gmra.mxu2 %vm77_vm0, %v1841_v48  ;;  %vm1835_vm2 = vweird.f32 %v3712_v54 }
0x107d   :  { %vm1836_vm5 = vmor %vm1834_vm3, %vm1835_vm2 }
0x107e   :  { %v1830_v33 = vmul.f32 %v3712_v54, %v1829_v2 }
0x1080   :  { %v1831_v55 = vmul.f32 0.5, %v1830_v33 }
0x1082   :  { %v1832_v22 = vsub.f32 1.5, %v1831_v55 }
0x1084   :  { %v1833_v58 = vmul.f32 %v3712_v54, %v1832_v22 }
0x1086   :  { %v1837_v14 = vsel %vm1836_vm5, %v3712_v54, %v1833_v58 }
0x1087   :  { %v1839_v63 = vmul.f32 %v1837_v14, %v4735_v0 }
0x1089   :  { %v1842_v23 = vmul.f32 %v3642_v42, %v1839_v63 }
0x108b   :  { %3406 = vmatmul.msk.f32.gmra.mxu2 %vm77_vm0, %v1842_v23 }
0x10ff   :  { %v1878_v4 = vpop.f32.mrf.mxu2 }
0x1100   :  { %v1884_v27 = vmax.f32 %v1878_v4, 0.0 }
0x1102   :  { %3407 = vmatmul.msk.f32.vlgmr.msrb.gmra.mxu3 %vm555_vm13, %v1884_v27 }
0x110e   :  { %v1881_v59 = vpop.f32.mrf.mxu2 }
0x110f   :  { %v1885_v1 = vmax.f32 %v1881_v59, 0.0 }
0x1111   :  { %3408 = vmatmul.msk.f32.gmra.mxu3 %vm555_vm13, %v1885_v1 }
0x1185   :  { %v1909_v3 = vpop.f32.mrf.mxu3 }
0x1186   :  { %v4788_v7 = vadd.f32 %v1909_v3, %v4729_v17  ;;  %v1958_v17 = vld [vmem:[%s5453_s5 + $0x330] sm:$0xff] }
0x1187   :  { %1981 = vmatpush.msra.mxu0 %v1958_v17 }
0x1188   :  { %v1918_v8 = vmul.f32 %v4788_v7, %v4788_v7 }
0x1189   :  { %1982 = vmatpush.msra.mxu0 %v1957_v13 }
0x118a   :  { %v1920_v6 = vsel %vm77_vm0, %v1918_v8, 0.0 }
0x118b   :  { %1921 = vadd.xlane.f32.xlu2 %v1920_v6 }
0x1194   :  { %v1912_v53 = vpop.f32.mrf.mxu3 }
0x1195   :  { %v4794_v9 = vadd.f32 %v1912_v53, %v4735_v0  ;;  %v1956_v0 = vld [vmem:[%s5453_s5 + $0x320] sm:$0xff] }
0x1196   :  { %1983 = vmatpush.msra.mxu0 %v1956_v0 }
0x1197   :  { %v1919_v10 = vmul.f32 %v4794_v9, %v4794_v9 }
0x1198   :  { %1984 = vmatpush.msra.mxu0 %v1955_v15 }
0x1199   :  { %v1923_v11 = vsel %vm77_vm0, %v1919_v10, 0.0 }
0x119a   :  { %1924 = vadd.xlane.f32.xlu0 %v1923_v11  ;;  %3417 = vmatpush.msk.msrb.mxu0 %vm4020_vm4, %v3836_v61 }
0x119c   :  { %3418 = vmatpush.msk.msrb.mxu0 %vm4036_vm8, %v3836_v61 }
0x119e   :  { %3419 = vmatpush.msk.msrb.mxu0 %vm4046_vm10, %v3836_v61 }
0x11a0   :  { %3420 = vmatpush.msk.msrb.mxu0 %vm160_vm11, %v3836_v61 }
0x11fe   :  { %v1922_v28 = vpop.xlane.xlu2 %1921 }
0x11ff   :  { %v1926_v12 = vmul.f32 %v1922_v28, %v4029_v39 }
0x1201   :  { %v1928_v47 = vadd.f32 1e-06, %v1926_v12 }
0x1203   :  { %3713 = vrsqrt.f32 %v1928_v47  ;;  %vm1936_vm7 = vweird.f32 %v1928_v47 }
0x1209   :  { %v3714_v49 = vpop.eup %3713 }
0x120a   :  { %v1931_v18 = vmul.f32 %v3714_v49, %v1928_v47  ;;  %vm1937_vm6 = vweird.f32 %v3714_v49 }
0x120b   :  { %vm1938_vm9 = vmor %vm1936_vm7, %vm1937_vm6 }
0x120c   :  { %v1932_v35 = vmul.f32 %v3714_v49, %v1931_v18 }
0x120d   :  { %v1925_v21 = vpop.xlane.xlu0 %1924 }
0x120e   :  { %v1933_v60 = vmul.f32 0.5, %v1932_v35  ;;  %v1927_v40 = vmul.f32 %v1925_v21, %v4029_v39 }
0x1210   :  { %v1934_v41 = vsub.f32 1.5, %v1933_v60  ;;  %v1929_v42 = vadd.f32 1e-06, %v1927_v40 }
0x1212   :  { %v1935_v50 = vmul.f32 %v3714_v49, %v1934_v41  ;;  %3715 = vrsqrt.f32 %v1929_v42  ;;  %vm1946_vm14 = vweird.f32 %v1929_v42 }
0x1214   :  { %v1939_v48 = vsel %vm1938_vm9, %v3714_v49, %v1935_v50 }
0x1215   :  { %v1950_v54 = vmul.f32 %v1939_v48, %v4788_v7 }
0x1217   :  { %v1953_v2 = vmul.f32 %v3643_v51, %v1950_v54 }
0x1218   :  { %v3716_v33 = vpop.eup %3715 }
0x1219   :  { %v1941_v55 = vmul.f32 %v3716_v33, %v1929_v42  ;;  %3409 = vmatmul.msk.f32.vlgmr.msra.gmra.mxu0 %vm77_vm0, %v1953_v2  ;;  %vm1947_vm12 = vweird.f32 %v3716_v33 }
0x121a   :  { %vm1948_vm15 = vmor %vm1946_vm14, %vm1947_vm12  ;;  %vm2908_vm14 = vcmask 130048  }
0x121b   :  { %v1942_v22 = vmul.f32 %v3716_v33, %v1941_v55 }
0x121d   :  { %v1943_v58 = vmul.f32 0.5, %v1942_v22 }
0x121f   :  { %v1944_v14 = vsub.f32 1.5, %v1943_v58 }
0x1221   :  { %v1945_v63 = vmul.f32 %v3716_v33, %v1944_v14 }
0x1223   :  { %v1949_v23 = vsel %vm1948_vm15, %v3716_v33, %v1945_v63 }
0x1224   :  { %v1951_v29 = vmul.f32 %v1949_v23, %v4794_v9 }
0x1226   :  { %v1954_v30 = vmul.f32 %v3643_v51, %v1951_v29 }
0x1228   :  { %3410 = vmatmul.msk.f32.gmra.mxu0 %vm77_vm0, %v1954_v30 }
0x1296   :  { %v1986_v4 = vpop.f32.mrf.mxu0 }
0x1297   :  { %v1994_v27 = vmul.f32 %v1986_v4, %v4076_v26  ;;  %v1995_v59 = vmul.f32 %v1986_v4, %v4072_v24  ;;  %v1993_v1 = vmul.f32 %v1986_v4, %v4074_v25  ;;  %v1992_v53 = vmul.f32 %v1986_v4, %v4084_v31 }
0x1298   :  { %v1998_v10 = vmul.f32 %v4117_v19, %v1986_v4  ;;  %v1999_v11 = vmul.f32 %v4119_v20, %v1986_v4  ;;  %v1996_v0 = vmul.f32 %v4103_v56, %v1986_v4  ;;  %v1997_v15 = vmul.f32 %v4105_v57, %v1986_v4 }
0x1299   :  { %2008 = vrot.lane.b32.xlu2 %v1994_v27, %s3834_s13  ;;  %2010 = vrot.lane.b32.xlu1 %v1995_v59, %s3834_s13 }
0x129a   :  { %v3595_v13 = vpack.i.bf16 %v1998_v10, %v1999_v11  ;;  %v3600_v12 = vpack.i.bf16 %v1996_v0, %v1997_v15  ;;  %v2304_v10 = vld [vmem:[%s5453_s5 + $0x390] sm:$0xff] }
0x12a1   :  { %2006 = vrot.lane.b32.xlu1 %v1993_v1, %s3834_s13 }
0x12a5   :  { %v1989_v3 = vpop.f32.mrf.mxu0 }
0x12a6   :  { %v2113_v8 = vmul.f32 %v1989_v3, %v4072_v24  ;;  %v2110_v6 = vmul.f32 %v1989_v3, %v4084_v31  ;;  %v2112_v17 = vmul.f32 %v1989_v3, %v4076_v26  ;;  %v2111_v28 = vmul.f32 %v1989_v3, %v4074_v25 }
0x12a7   :  { %v2116_v47 = vmul.f32 %v4117_v19, %v1989_v3  ;;  %v2117_v49 = vmul.f32 %v4119_v20, %v1989_v3  ;;  %v2114_v35 = vmul.f32 %v4103_v56, %v1989_v3  ;;  %v2115_v21 = vmul.f32 %v4105_v57, %v1989_v3 }
0x12a8   :  { %2128 = vrot.lane.b32.xlu0 %v2113_v8, %s3834_s13  ;;  %2122 = vrot.lane.b32.xlu2 %v2110_v6, %s3834_s13 }
0x12a9   :  { %2004 = vrot.lane.b32.xlu1 %v1992_v53, %s3834_s13  ;;  %v3605_v18 = vpack.i.bf16 %v2116_v47, %v2117_v49  ;;  %v3610_v60 = vpack.i.bf16 %v2114_v35, %v2115_v21  ;;  %v1962_v47 = vld [vmem:[%s5453_s5 + $0x350] sm:$0xff]  ;;  %v1961_v49 = vld [vmem:[%s5453_s5 + $0x348] sm:$0xff]  ;;  %v1959_v35 = vld [vmem:[%s5453_s5 + $0x338] sm:$0xff] }
0x12aa   :  { %2246 = vmatpush.msra.mxu0 %v1962_v47  ;;  %v3644_v47 = vld [vmem:[%s5453_s5 + $0x308] ss:$0 sm:$0xff] }
0x12ac   :  { %2247 = vmatpush.msra.mxu0 %v1961_v49 }
0x12b0   :  { %2126 = vrot.lane.b32.xlu0 %v2112_v17, %s3834_s13  ;;  %v2302_v17 = vld [vmem:[%s5453_s5 + $0x380] sm:$0xff] }
0x12b1   :  { %3596 = vrot.lane.b32.xlu1 %v3595_v13, %s3835_s14  ;;  %v2301_v13 = vld [vmem:[%s5453_s5 + $0x378] sm:$0xff] }
0x12b8   :  { %2124 = vrot.lane.b32.xlu0 %v2111_v28, %s3834_s13 }
0x12b9   :  { %3601 = vrot.lane.b32.xlu1 %v3600_v12, %s3835_s14 }
0x12c1   :  { %3606 = vrot.lane.b32.xlu1 %v3605_v18, %s3835_s14  ;;  %v1960_v18 = vld [vmem:[%s5453_s5 + $0x340] sm:$0xff] }
0x12c2   :  { %2248 = vmatpush.msra.mxu0 %v1960_v18 }
0x12c4   :  { %2249 = vmatpush.msra.mxu0 %v1959_v35 }
0x12c9   :  { %3611 = vrot.lane.b32.xlu1 %v3610_v60, %s3835_s14 }
0x12f3   :  { %v2009_v41 = vpop.permute.xlu2 %2008 }
0x1302   :  { %v2123_v33 = vpop.permute.xlu2 %2122 }
0x130b   :  { %v2011_v40 = vpop.permute.xlu1 %2010 }
0x130c   :  { %3411 = vmatpush.xpose.msk.msra.mxu1 %vm77_vm0, %v2011_v40 }
0x1310   :  { %3412 = vmatpush.xpose.msk.msra.mxu1 %vm77_vm0, %v2009_v41 }
0x1313   :  { %v2007_v42 = vpop.permute.xlu1 %2006 }
0x1314   :  { %3413 = vmatpush.xpose.msk.msra.mxu1 %vm77_vm0, %v2007_v42 }
0x131a   :  { %v2129_v19 = vpop.permute.xlu0 %2128 }
0x131b   :  { %3422 = vmatpush.xpose.msk.msra.mxu3 %vm77_vm0, %v2129_v19  ;;  %v2005_v20 = vpop.permute.xlu1 %2004 }
0x131c   :  { %3414 = vmatpush.xpose.msk.msra.mxu1 %vm77_vm0, %v2005_v20 }
0x131f   :  { %3415 = vmatmul.msk.f32.vlgmr.msra.gmra.mxu1 %vm77_vm0, %v1986_v4 }
0x1322   :  { %v2127_v56 = vpop.permute.xlu0 %2126 }
0x1323   :  { %3423 = vmatpush.xpose.msk.msra.mxu3 %vm77_vm0, %v2127_v56  ;;  %v3597_v57 = vpop.permute.xlu1 %3596 }
0x1324   :  { %v3598_v50 = vunpack.i.l.bf16 %v3597_v57  ;;  %v3599_v51 = vunpack.i.h.bf16 %v3597_v57 }
0x1326   :  { %2080 = vmatpush.msrb.mxu2 %v3598_v50 }
0x1328   :  { %2081 = vmatpush.msrb.mxu2 %v3599_v51 }
0x132a   :  { %v2125_v48 = vpop.permute.xlu0 %2124 }
0x132b   :  { %3424 = vmatpush.xpose.msk.msra.mxu3 %vm77_vm0, %v2125_v48  ;;  %v3602_v54 = vpop.permute.xlu1 %3601 }
0x132c   :  { %v3603_v2 = vunpack.i.l.bf16 %v3602_v54  ;;  %v3604_v55 = vunpack.i.h.bf16 %v3602_v54 }
0x132e   :  { %2082 = vmatpush.msrb.mxu2 %v3603_v2 }
0x132f   :  { %3425 = vmatpush.xpose.msk.msra.mxu3 %vm77_vm0, %v2123_v33 }
0x1330   :  { %2083 = vmatpush.msrb.mxu2 %v3604_v55 }
0x1332   :  { %3428 = vmatpush.msk.msra.mxu2 %vm4020_vm4, %v3836_v61  ;;  %3426 = vmatmul.msk.f32.vlgmr.msra.gmra.mxu3 %vm77_vm0, %v1989_v3 }
0x1333   :  { %v3607_v22 = vpop.permute.xlu1 %3606 }
0x1334   :  { %3429 = vmatpush.msk.msra.mxu2 %vm4036_vm8, %v3836_v61  ;;  %v3608_v58 = vunpack.i.l.bf16 %v3607_v22  ;;  %v3609_v14 = vunpack.i.h.bf16 %v3607_v22 }
0x1336   :  { %3430 = vmatpush.msk.msra.mxu2 %vm4046_vm10, %v3836_v61  ;;  %2198 = vmatpush.msrb.mxu1 %v3608_v58 }
0x1338   :  { %3431 = vmatpush.msk.msra.mxu2 %vm160_vm11, %v3836_v61  ;;  %2199 = vmatpush.msrb.mxu1 %v3609_v14 }
0x133b   :  { %v3612_v63 = vpop.permute.xlu1 %3611 }
0x133c   :  { %v3613_v23 = vunpack.i.l.bf16 %v3612_v63  ;;  %v3614_v29 = vunpack.i.h.bf16 %v3612_v63 }
0x133e   :  { %2200 = vmatpush.msrb.mxu1 %v3613_v23 }
0x1340   :  { %2201 = vmatpush.msrb.mxu1 %v3614_v29 }
0x139c   :  { %v2040_v30 = vpop.f32.mrf.mxu1 }
0x139d   :  { %v2041_v4 = vadd.f32 %v2040_v30, %v4558_v62 }
0x139f   :  { %v2043_v27 = vsel %vm77_vm0, %v2041_v4, -inf }
0x13a0   :  { %2044 = vmax.xlane.f32.xlu0 %v2043_v27 }
0x13b5   :  { %v2158_v59 = vpop.f32.mrf.mxu3 }
0x13b6   :  { %v2159_v1 = vadd.f32 %v2158_v59, %v4558_v62  ;;  %v2303_v62 = vld [vmem:[%s5453_s5 + $0x388] sm:$0xff] }
0x13b8   :  { %v2161_v3 = vsel %vm77_vm0, %v2159_v1, -inf }
0x13b9   :  { %2162 = vmax.xlane.f32.xlu2 %v2161_v3 }
0x1413   :  { %v2045_v8 = vpop.xlane.xlu0 %2044 }
0x1414   :  { %v2046_v6 = vsub.f32 %v2041_v4, %v2045_v8 }
0x1416   :  { %v2047_v53 = vmul.f32 1.442695, %v2046_v6  ;;  %v2300_v6 = vld [vmem:[%s5453_s5 + $0x370] sm:$0xff] }
0x1417   :  { %2327 = vmatpush.msra.mxu1 %v2300_v6  ;;  %v2306_v6 = vld [vmem:[%s5453_s5 + $0x3a0] sm:$0xff] }
0x1418   :  { %3717 = vpow2.f32 %v2047_v53  ;;  %v2299_v53 = vld [vmem:[%s5453_s5 + $0x368] sm:$0xff] }
0x1419   :  { %2328 = vmatpush.msra.mxu1 %v2299_v53 }
0x141e   :  { %v3718_v11 = vpop.eup %3717 }
0x141f   :  { %3416 = vmatmul.msk.f32.vlgmr.msrb.gmra.mxu2 %vm77_vm0, %v3718_v11  ;;  %3421 = vmatmul.msk.f32.vlgmr.msrb.gmra.mxu0 %vm77_vm0, %v3718_v11 }
0x1420   :  { %2350 = vmatpush.msrb.mxu2 %v2304_v10  ;;  %v2298_v10 = vld [vmem:[%s5453_s5 + $0x360] sm:$0xff] }
0x1421   :  { %2329 = vmatpush.msra.mxu1 %v2298_v10 }
0x1422   :  { %2351 = vmatpush.msrb.mxu2 %v2303_v62 }
0x1424   :  { %2352 = vmatpush.msrb.mxu2 %v2302_v17 }
0x1426   :  { %2353 = vmatpush.msrb.mxu2 %v2301_v13 }
0x142c   :  { %v2163_v0 = vpop.xlane.xlu2 %2162 }
0x142d   :  { %v2164_v15 = vsub.f32 %v2159_v1, %v2163_v0 }
0x142f   :  { %v2165_v28 = vmul.f32 1.442695, %v2164_v15 }
0x1431   :  { %3719 = vpow2.f32 %v2165_v28 }
0x1437   :  { %v3720_v12 = vpop.eup %3719 }
0x1438   :  { %3427 = vmatmul.msk.f32.vlgmr.msrb.gmra.mxu1 %vm77_vm0, %v3720_v12  ;;  %3432 = vmatmul.msk.f32.vlgmr.msra.gmra.mxu2 %vm77_vm0, %v3720_v12 }
0x1440   :  { %3437 = vmatmul.msk.f32.vlgmr.msrb.gmra.mxu2 %vm77_vm0, %v4589_v16 }
0x1448   :  { %3438 = vmatmul.msk.f32.gmra.mxu2 %vm77_vm0, %v4593_v5 }
0x149c   :  { %v2105_v21 = vpop.f32.mrf.mxu0 }
0x149d   :  { %3721 = vrcp.f32 %v2105_v21 }
0x14a2   :  { %v2085_v60 = vpop.f32.mrf.mxu2 }
0x14a3   :  { %v3722_v40 = vpop.eup %3721 }
0x14a4   :  { %v2109_v41 = vmul.f32 %v3722_v40, %v2085_v60 }
0x14a6   :  { %3433 = vmatmul.msk.f32.vlgmr.msra.gmra.mxu0 %vm77_vm0, %v2109_v41 }
0x14b5   :  { %v2203_v20 = vpop.f32.mrf.mxu1 }
0x14bb   :  { %v2223_v42 = vpop.f32.mrf.mxu2 }
0x14bc   :  { %3723 = vrcp.f32 %v2223_v42 }
0x14c2   :  { %v3724_v19 = vpop.eup %3723 }
0x14c3   :  { %v4919_v56 = vpop.f32.mrf.mxu2  ;;  %v2227_v57 = vmul.f32 %v3724_v19, %v2203_v20 }
0x14c4   :  { %v2364_v50 = vmul.f32 %v4027_v38, %v4919_v56  ;;  %v2363_v51 = vmul.f32 %v4044_v44, %v4919_v56  ;;  %v2362_v54 = vmul.f32 %v4054_v46, %v4919_v56  ;;  %v2361_v33 = vmul.f32 %v4062_v52, %v4919_v56 }
0x14c5   :  { %3434 = vmatmul.msk.f32.gmra.mxu0 %vm77_vm0, %v2227_v57  ;;  %v2367_v27 = vmul.f32 %v4919_v56, %v4076_v26  ;;  %v2368_v59 = vmul.f32 %v4919_v56, %v4072_v24 }
0x14c6   :  { %3439 = vmatpush.xpose.msk.msrb.mxu3 %vm77_vm0, %v2364_v50 }
0x14c7   :  { %v3615_v1 = vpack.i.bf16 %v2367_v27, %v2368_v59  ;;  %v2365_v59 = vmul.f32 %v4919_v56, %v4084_v31 }
0x14ca   :  { %3440 = vmatpush.xpose.msk.msrb.mxu3 %vm77_vm0, %v2363_v51 }
0x14cb   :  { %v2358_v48 = vpop.f32.mrf.mxu2 }
0x14cc   :  { %v2474_v2 = vmul.f32 %v4027_v38, %v2358_v48  ;;  %v2473_v55 = vmul.f32 %v4044_v44, %v2358_v48  ;;  %v2472_v22 = vmul.f32 %v4054_v46, %v2358_v48  ;;  %v2471_v58 = vmul.f32 %v4062_v52, %v2358_v48 }
0x14cd   :  { %v2475_v23 = vmul.f32 %v2358_v48, %v4084_v31  ;;  %v2476_v46 = vmul.f32 %v2358_v48, %v4074_v25  ;;  %v2477_v3 = vmul.f32 %v2358_v48, %v4076_v26 }
0x14ce   :  { %3441 = vmatpush.xpose.msk.msrb.mxu3 %vm77_vm0, %v2362_v54  ;;  %3450 = vmatpush.xpose.msk.msra.mxu2 %vm77_vm0, %v2474_v2 }
0x14cf   :  { %v3630_v29 = vpack.i.bf16 %v2475_v23, %v2476_v46 }
0x14d2   :  { %3442 = vmatpush.xpose.msk.msrb.mxu3 %vm77_vm0, %v2361_v33  ;;  %3451 = vmatpush.xpose.msk.msra.mxu2 %vm77_vm0, %v2473_v55 }
0x14d6   :  { %3452 = vmatpush.xpose.msk.msra.mxu2 %vm77_vm0, %v2472_v22 }
0x14da   :  { %3453 = vmatpush.xpose.msk.msra.mxu2 %vm77_vm0, %v2471_v58 }
0x1523   :  { %v2251_v38 = vpop.f32.mrf.mxu0 }
0x1524   :  { %v4943_v14 = vadd.f32 %v2251_v38, %v4788_v7 }
0x1526   :  { %v2260_v63 = vmul.f32 %v4943_v14, %v4943_v14 }
0x1528   :  { %v2262_v44 = vsel %vm77_vm0, %v2260_v63, 0.0 }
0x1529   :  { %2263 = vadd.xlane.f32.xlu1 %v2262_v44 }
0x1542   :  { %3631 = vrot.lane.b32.xlu1 %v3630_v29, %s3834_s13  ;;  %v2254_v52 = vpop.f32.mrf.mxu0 }
0x1543   :  { %v4952_v30 = vadd.f32 %v2254_v52, %v4794_v9  ;;  %v2478_v9 = vmul.f32 %v2358_v48, %v4072_v24  ;;  %v2297_v24 = vld [vmem:[%s5453_s5 + $0x358] sm:$0xff] }
0x1544   :  { %2330 = vmatpush.msra.mxu1 %v2297_v24 }
0x1545   :  { %v2261_v7 = vmul.f32 %v4952_v30, %v4952_v30  ;;  %v3625_v8 = vpack.i.bf16 %v2477_v3, %v2478_v9  ;;  %v2308_v9 = vld [vmem:[%s5453_s5 + $0x3b0] sm:$0xff] }
0x1546   :  { %3445 = vmatpush.msk.msrb.mxu1 %vm4020_vm4, %v3836_v61 }
0x1547   :  { %v2265_v4 = vsel %vm77_vm0, %v2261_v7, 0.0 }
0x1548   :  { %2266 = vadd.xlane.f32.xlu2 %v2265_v4  ;;  %3446 = vmatpush.msk.msrb.mxu1 %vm4036_vm8, %v3836_v61 }
0x154a   :  { %3447 = vmatpush.msk.msrb.mxu1 %vm4046_vm10, %v3836_v61 }
0x154c   :  { %3448 = vmatpush.msk.msrb.mxu1 %vm160_vm11, %v3836_v61 }
0x1560   :  { %3616 = vrot.lane.b32.xlu2 %v3615_v1, %s3834_s13  ;;  %v2366_v1 = vmul.f32 %v4919_v56, %v4074_v25  ;;  %v2305_v25 = vld [vmem:[%s5453_s5 + $0x398] sm:$0xff] }
0x1562   :  { %v3620_v3 = vpack.i.bf16 %v2365_v59, %v2366_v1  ;;  %v2659_v1 = vld [vmem:[%s5453_s5 + $0x400] sm:$0xff] }
0x1568   :  { %3626 = vrot.lane.b32.xlu2 %v3625_v8, %s3834_s13  ;;  %v2307_v8 = vld [vmem:[%s5453_s5 + $0x3a8] sm:$0xff] }
0x159c   :  { %v2264_v26 = vpop.xlane.xlu1 %2263 }
0x159d   :  { %v2268_v11 = vmul.f32 %v2264_v26, %v4029_v39 }
0x159f   :  { %v2270_v62 = vadd.f32 1e-06, %v2268_v11 }
0x15a1   :  { %3725 = vrsqrt.f32 %v2270_v62  ;;  %vm2278_vm2 = vweird.f32 %v2270_v62 }
0x15a7   :  { %v3726_v17 = vpop.eup %3725 }
0x15a8   :  { %v2273_v13 = vmul.f32 %v3726_v17, %v2270_v62  ;;  %vm2279_vm1 = vweird.f32 %v3726_v17 }
0x15a9   :  { %vm2280_vm3 = vmor %vm2278_vm2, %vm2279_vm1 }
0x15aa   :  { %v2274_v0 = vmul.f32 %v3726_v17, %v2273_v13 }
0x15ac   :  { %v2275_v15 = vmul.f32 0.5, %v2274_v0 }
0x15ae   :  { %v2276_v28 = vsub.f32 1.5, %v2275_v15  ;;  %v3769_v15 = vld [vmem:[%s5453_s5 + $0x48] sm:$0xff] }
0x15b0   :  { %v2277_v12 = vmul.f32 %v3726_v17, %v2276_v28  ;;  %v3770_v28 = vld [vmem:[%s5453_s5 + $0x40] sm:$0xff] }
0x15b2   :  { %v2281_v49 = vsel %vm2280_vm3, %v3726_v17, %v2277_v12  ;;  %v3771_v12 = vld [vmem:[%s5453_s5 + $0x38] sm:$0xff] }
0x15b3   :  { %v2292_v18 = vmul.f32 %v2281_v49, %v4943_v14  ;;  %v3773_v49 = vld [vmem:[%s5453_s5 + $0x28] sm:$0xff] }
0x15b4   :  { %v3632_v2 = vpop.permute.xlu1 %3631 }
0x15b5   :  { %v2295_v35 = vmul.f32 %v3644_v47, %v2292_v18  ;;  %v3633_v58 = vunpack.i.l.bf16 %v3632_v2  ;;  %v3634_v63 = vunpack.i.h.bf16 %v3632_v2  ;;  %v3774_v18 = vld [vmem:[%s5453_s5 + $0x20] sm:$0xff] }
0x15b7   :  { %3435 = vmatmul.msk.f32.vlgmr.msra.gmra.mxu1 %vm77_vm0, %v2295_v35  ;;  %v3775_v35 = vld [vmem:[%s5453_s5 + $0x18] sm:$0xff] }
0x15b8   :  { %2599 = vmatpush.msra.mxu1 %v2308_v9  ;;  %v2658_v9 = vld [vmem:[%s5453_s5 + $0x3f8] sm:$0xff] }
0x15ba   :  { %2600 = vmatpush.msra.mxu1 %v2307_v8 }
0x15bb   :  { %v2267_v21 = vpop.xlane.xlu2 %2266 }
0x15bc   :  { %v2269_v60 = vmul.f32 %v2267_v21, %v4029_v39  ;;  %2601 = vmatpush.msra.mxu1 %v2306_v6  ;;  %v3776_v21 = vld [vmem:[%s5453_s5 + $0x10] sm:$0xff] }
0x15be   :  { %v2271_v40 = vadd.f32 1e-06, %v2269_v60  ;;  %2602 = vmatpush.msra.mxu1 %v2305_v25  ;;  %v3777_v60 = vld [vmem:[%s5453_s5 + $0x8] sm:$0xff] }
0x15c0   :  { %3727 = vrsqrt.f32 %v2271_v40  ;;  %vm2288_vm6 = vweird.f32 %v2271_v40 }
0x15c3   :  { %v3617_v41 = vpop.permute.xlu2 %3616 }
0x15c4   :  { %v3618_v42 = vunpack.i.l.bf16 %v3617_v41  ;;  %v3619_v20 = vunpack.i.h.bf16 %v3617_v41 }
0x15c6   :  { %v3728_v19 = vpop.eup %3727  ;;  %2441 = vmatpush.msrb.mxu0 %v3618_v42 }
0x15c7   :  { %v2283_v57 = vmul.f32 %v3728_v19, %v2271_v40  ;;  %vm2289_vm5 = vweird.f32 %v3728_v19  ;;  %v3778_v40 = vld [vmem:[%s5453_s5] sm:$0xff] }
0x15c8   :  { %2442 = vmatpush.msrb.mxu0 %v3619_v20  ;;  %vm2290_vm7 = vmor %vm2288_vm6, %vm2289_vm5 }
0x15c9   :  { %v2284_v50 = vmul.f32 %v3728_v19, %v2283_v57 }
0x15cb   :  { %v2285_v51 = vmul.f32 0.5, %v2284_v50  ;;  %v3627_v48 = vpop.permute.xlu2 %3626 }
0x15cc   :  { %v3628_v54 = vunpack.i.l.bf16 %v3627_v48  ;;  %v3629_v55 = vunpack.i.h.bf16 %v3627_v48 }
0x15cd   :  { %v2286_v33 = vsub.f32 1.5, %v2285_v51 }
0x15ce   :  { %2551 = vmatpush.msra.mxu3 %v3628_v54 }
0x15cf   :  { %v2287_v22 = vmul.f32 %v3728_v19, %v2286_v33 }
0x15d0   :  { %2552 = vmatpush.msra.mxu3 %v3629_v55 }
0x15d1   :  { %v2291_v38 = vsel %vm2290_vm7, %v3728_v19, %v2287_v22 }
0x15d2   :  { %2553 = vmatpush.msra.mxu3 %v3633_v58  ;;  %v2293_v44 = vmul.f32 %v2291_v38, %v4952_v30 }
0x15d4   :  { %2554 = vmatpush.msra.mxu3 %v3634_v63  ;;  %v2296_v23 = vmul.f32 %v3644_v47, %v2293_v44  ;;  %v3772_v47 = vld [vmem:[%s5453_s5 + $0x30] sm:$0xff]  ;;  %v2652_v44 = vld [vmem:[%s5453_s5 + $0x3c8] sm:$0xff] }
0x15d6   :  { %3436 = vmatmul.msk.f32.gmra.mxu1 %vm77_vm0, %v2296_v23  ;;  %v2650_v23 = vld [vmem:[%s5453_s5 + $0x3b8] sm:$0xff] }
0x1634   :  { %v2332_v46 = vpop.f32.mrf.mxu1 }
0x1635   :  { %3443 = vmatmul.msk.f32.vlgmr.msrb.gmra.mxu3 %vm77_vm0, %v2332_v46 }
0x1653   :  { %v2335_v29 = vpop.f32.mrf.mxu1 }
0x1654   :  { %3454 = vmatmul.msk.f32.vlgmr.msra.gmra.mxu2 %vm77_vm0, %v2335_v29 }
0x16b8   :  { %v2401_v52 = vpop.f32.mrf.mxu3 }
0x16b9   :  { %v2404_v7 = vsel %vm77_vm0, %v2401_v52, -inf }
0x16ba   :  { %2405 = vmax.xlane.f32.xlu0 %v2404_v7  ;;  %v2661_v7 = vld [vmem:[%s5453_s5 + $0x410] sm:$0xff] }
0x16bb   :  { %2707 = vmatpush.msrb.mxu3 %v2661_v7 }
0x16d7   :  { %v2511_v4 = vpop.f32.mrf.mxu2 }
0x16d8   :  { %v2514_v27 = vsel %vm77_vm0, %v2511_v4, -inf }
0x16d9   :  { %2515 = vmax.xlane.f32.xlu0 %v2514_v27 }
0x16ed   :  { %3621 = vrot.lane.b32.xlu0 %v3620_v3, %s3834_s13 }
0x172d   :  { %v2406_v31 = vpop.xlane.xlu0 %2405 }
0x172e   :  { %v2407_v56 = vsub.f32 %v2401_v52, %v2406_v31  ;;  %v2657_v31 = vld [vmem:[%s5453_s5 + $0x3f0] sm:$0xff] }
0x1730   :  { %v2408_v53 = vmul.f32 1.442695, %v2407_v56 }
0x1732   :  { %3729 = vpow2.f32 %v2408_v53 }
0x1738   :  { %v3730_v10 = vpop.eup %3729 }
0x1739   :  { %3449 = vmatmul.msk.f32.vlgmr.msrb.gmra.mxu1 %vm77_vm0, %v3730_v10 }
0x173a   :  { %2926 = vmatpush.msrb.mxu1 %v4593_v5  ;;  %v3768_v5 = vld [vmem:[%s5453_s5 + $0x50] sm:$0xff] }
0x173c   :  { %2927 = vmatpush.msrb.mxu1 %v4589_v16  ;;  %v3763_v16 = vld [vmem:[%s5453_s5 + $0x78] sm:$0xff] }
0x174c   :  { %v2516_v24 = vpop.xlane.xlu0 %2515 }
0x174d   :  { %v2517_v26 = vsub.f32 %v2511_v4, %v2516_v24  ;;  %v2660_v4 = vld [vmem:[%s5453_s5 + $0x408] sm:$0xff] }
0x174e   :  { %2708 = vmatpush.msrb.mxu3 %v2660_v4 }
0x174f   :  { %v2518_v11 = vmul.f32 1.442695, %v2517_v26  ;;  %v3645_v26 = vld [vmem:[%s5453_s5 + $0x310] ss:$0 sm:$0xff] }
0x1750   :  { %2709 = vmatpush.msrb.mxu3 %v2659_v1 }
0x1751   :  { %3731 = vpow2.f32 %v2518_v11 }
0x1752   :  { %2710 = vmatpush.msrb.mxu3 %v2658_v9 }
0x1754   :  { %2711 = vmatpush.msrb.mxu3 %v2657_v31  ;;  %v2938_v31 = vld [vmem:[%s5454_s6 + $0x30] sm:$0xff] }
0x1757   :  { %v3732_v62 = vpop.eup %3731 }
0x1758   :  { %3455 = vmatmul.msk.f32.vlgmr.msra.gmra.mxu3 %vm77_vm0, %v3732_v62 }
0x175f   :  { %v3622_v17 = vpop.permute.xlu0 %3621 }
0x1760   :  { %v3623_v13 = vunpack.i.l.bf16 %v3622_v17  ;;  %v3624_v0 = vunpack.i.h.bf16 %v3622_v17 }
0x1762   :  { %2443 = vmatpush.msrb.mxu0 %v3623_v13 }
0x1764   :  { %2444 = vmatpush.msrb.mxu0 %v3624_v0 }
0x1765   :  { %3444 = vmatmul.msk.f32.vlgmr.msrb.gmra.mxu0 %vm77_vm0, %v3730_v10  ;;  %v2656_v10 = vld [vmem:[%s5453_s5 + $0x3e8] sm:$0xff] }
0x1766   :  { %3456 = vmatpush.msk.msra.mxu0 %vm4020_vm4, %v3836_v61  ;;  %2712 = vmatpush.msrb.mxu3 %v2656_v10  ;;  %v2939_v10 = vld [vmem:[%s5454_s6 + $0x38] sm:$0xff] }
0x1768   :  { %3457 = vmatpush.msk.msra.mxu0 %vm4036_vm8, %v3836_v61 }
0x176a   :  { %3458 = vmatpush.msk.msra.mxu0 %vm4046_vm10, %v3836_v61 }
0x176c   :  { %3459 = vmatpush.msk.msra.mxu0 %vm160_vm11, %v3836_v61  ;;  %v3767_v61 = vld [vmem:[%s5453_s5 + $0x58] sm:$0xff] }
0x176d   :  { %3460 = vmatmul.msk.f32.vlgmr.msra.gmra.mxu0 %vm77_vm0, %v3732_v62 }
0x176e   :  { %3467 = vmatpush.xpose.msk.msrb.mxu0 %vm77_vm0, %v3763_v16 }
0x1772   :  { %3468 = vmatpush.xpose.msk.msrb.mxu0 %vm77_vm0, %v3764_v36 }
0x1776   :  { %3469 = vmatpush.xpose.msk.msrb.mxu0 %vm77_vm0, %v3765_v43 }
0x177a   :  { %3470 = vmatpush.xpose.msk.msrb.mxu0 %vm77_vm0, %v3766_v45 }
0x177e   :  { %3471 = vmatpush.xpose.msk.msrb.mxu0 %vm77_vm0, %v3767_v61 }
0x1782   :  { %3472 = vmatpush.xpose.msk.msrb.mxu0 %vm77_vm0, %v3768_v5 }
0x1786   :  { %3473 = vmatpush.xpose.msk.msrb.mxu0 %vm77_vm0, %v3769_v15 }
0x178a   :  { %3474 = vmatpush.xpose.msk.msrb.mxu0 %vm77_vm0, %v3770_v28  ;;  %v2655_v28 = vld [vmem:[%s5453_s5 + $0x3e0] sm:$0xff] }
0x178b   :  { %2713 = vmatpush.msrb.mxu3 %v2655_v28  ;;  %v3837_v28 = vmov 2.0  }
0x178e   :  { %3475 = vmatpush.xpose.msk.msrb.mxu0 %vm77_vm0, %v3771_v12  ;;  %v2654_v12 = vld [vmem:[%s5453_s5 + $0x3d8] sm:$0xff] }
0x178f   :  { %2714 = vmatpush.msrb.mxu3 %v2654_v12 }
0x1792   :  { %3476 = vmatpush.xpose.msk.msrb.mxu0 %vm77_vm0, %v3772_v47 }
0x1796   :  { %3477 = vmatpush.xpose.msk.msrb.mxu0 %vm77_vm0, %v3773_v49 }
0x179a   :  { %3478 = vmatpush.xpose.msk.msrb.mxu0 %vm77_vm0, %v3774_v18 }
0x179e   :  { %3479 = vmatpush.xpose.msk.msrb.mxu0 %vm77_vm0, %v3775_v35 }
0x17a2   :  { %3480 = vmatpush.xpose.msk.msrb.mxu0 %vm77_vm0, %v3776_v21 }
0x17a6   :  { %3481 = vmatpush.xpose.msk.msrb.mxu0 %vm77_vm0, %v3777_v60 }
0x17aa   :  { %3482 = vmatpush.xpose.msk.msrb.mxu0 %vm77_vm0, %v3778_v40 }
0x17b6   :  { %v2466_v41 = vpop.f32.mrf.mxu1 }
0x17b7   :  { %3733 = vrcp.f32 %v2466_v41 }
0x17bd   :  { %v3734_v42 = vpop.eup %3733 }
0x17db   :  { %v2556_v51 = vpop.f32.mrf.mxu3 }
0x17e2   :  { %v2446_v19 = vpop.f32.mrf.mxu0 }
0x17e3   :  { %v2470_v20 = vmul.f32 %v3734_v42, %v2446_v19 }
0x17e5   :  { %3461 = vmatmul.msk.f32.vlgmr.msra.gmra.mxu1 %vm77_vm0, %v2470_v20 }
0x17ea   :  { %v2576_v57 = vpop.f32.mrf.mxu0 }
0x17eb   :  { %3735 = vrcp.f32 %v2576_v57 }
0x17f1   :  { %v3736_v50 = vpop.eup %3735 }
0x17f2   :  { %v2580_v48 = vmul.f32 %v3736_v50, %v2556_v51 }
0x17f4   :  { %3462 = vmatmul.msk.f32.gmra.mxu1 %vm77_vm0, %v2580_v48 }
0x1862   :  { %v2604_v54 = vpop.f32.mrf.mxu1 }
0x1863   :  { %v5104_v2 = vadd.f32 %v2604_v54, %v4943_v14  ;;  %v2653_v14 = vld [vmem:[%s5453_s5 + $0x3d0] sm:$0xff] }
0x1864   :  { %2680 = vmatpush.msrb.mxu2 %v2653_v14 }
0x1865   :  { %v2613_v33 = vmul.f32 %v5104_v2, %v5104_v2 }
0x1866   :  { %2681 = vmatpush.msrb.mxu2 %v2652_v44 }
0x1867   :  { %v2615_v55 = vsel %vm77_vm0, %v2613_v33, 0.0 }
0x1868   :  { %2616 = vadd.xlane.f32.xlu0 %v2615_v55 }
0x1871   :  { %v2607_v22 = vpop.f32.mrf.mxu1 }
0x1872   :  { %v5110_v58 = vadd.f32 %v2607_v22, %v4952_v30  ;;  %v2651_v30 = vld [vmem:[%s5453_s5 + $0x3c0] sm:$0xff] }
0x1873   :  { %2682 = vmatpush.msrb.mxu2 %v2651_v30 }
0x1874   :  { %v2614_v38 = vmul.f32 %v5110_v58, %v5110_v58 }
0x1875   :  { %2683 = vmatpush.msrb.mxu2 %v2650_v23 }
0x1876   :  { %v2618_v63 = vsel %vm77_vm0, %v2614_v38, 0.0 }
0x1877   :  { %2619 = vadd.xlane.f32.xlu2 %v2618_v63 }
0x18db   :  { %v2617_v46 = vpop.xlane.xlu0 %2616 }
0x18dc   :  { %v2621_v29 = vmul.f32 %v2617_v46, %v4029_v39 }
0x18de   :  { %v2623_v52 = vadd.f32 1e-06, %v2621_v29 }
0x18e0   :  { %3737 = vrsqrt.f32 %v2623_v52  ;;  %vm2631_vm8 = vweird.f32 %v2623_v52 }
0x18e6   :  { %v3738_v27 = vpop.eup %3737 }
0x18e7   :  { %v2626_v59 = vmul.f32 %v3738_v27, %v2623_v52  ;;  %vm2632_vm4 = vweird.f32 %v3738_v27 }
0x18e8   :  { %vm2633_vm10 = vmor %vm2631_vm8, %vm2632_vm4 }
0x18e9   :  { %v2627_v3 = vmul.f32 %v3738_v27, %v2626_v59 }
0x18ea   :  { %v2620_v8 = vpop.xlane.xlu2 %2619 }
0x18eb   :  { %v2628_v6 = vmul.f32 0.5, %v2627_v3  ;;  %v2622_v25 = vmul.f32 %v2620_v8, %v4029_v39 }
0x18ed   :  { %v2629_v56 = vsub.f32 1.5, %v2628_v6  ;;  %v2624_v53 = vadd.f32 1e-06, %v2622_v25  ;;  %v2941_v25 = vld [vmem:[%s5454_s6 + $0x48] sm:$0xff] }
0x18ee   :  { %2968 = vmatpush.msra.mxu2 %v2941_v25 }
0x18ef   :  { %v2630_v24 = vmul.f32 %v3738_v27, %v2629_v56  ;;  %3739 = vrsqrt.f32 %v2624_v53  ;;  %vm2641_vm9 = vweird.f32 %v2624_v53  ;;  %v2935_v56 = vld [vmem:[%s5454_s6 + $0x18] sm:$0xff] }
0x18f0   :  { %2969 = vmatpush.msra.mxu2 %v2938_v31  ;;  %v3184_v31 = vld [vmem:[%s5454_s6 + $0x1f8] sm:$0xff] }
0x18f1   :  { %v2634_v11 = vsel %vm2633_vm10, %v3738_v27, %v2630_v24  ;;  %v2932_v24 = vld [vmem:[%s5454_s6] sm:$0xff] }
0x18f2   :  { %v2645_v62 = vmul.f32 %v2634_v11, %v5104_v2  ;;  %2970 = vmatpush.msra.mxu2 %v2935_v56  ;;  %v3189_v56 = vld [vmem:[%s5454_s6 + $0x220] sm:$0xff] }
0x18f4   :  { %v2648_v17 = vmul.f32 %v3645_v26, %v2645_v62  ;;  %v2943_v62 = vld [vmem:[%s5454_s6 + $0x58] sm:$0xff]  ;;  %2971 = vmatpush.msra.mxu2 %v2932_v24 }
0x18f5   :  { %v3740_v13 = vpop.eup %3739 }
0x18f6   :  { %v2636_v0 = vmul.f32 %v3740_v13, %v2624_v53  ;;  %3463 = vmatmul.msk.f32.vlgmr.msrb.gmra.mxu2 %vm77_vm0, %v2648_v17  ;;  %vm2642_vm11 = vweird.f32 %v3740_v13  ;;  %v2942_v53 = vld [vmem:[%s5454_s6 + $0x50] sm:$0xff]  ;;  %v2933_v17 = vld [vmem:[%s5454_s6 + $0x8] sm:$0xff] }
0x18f7   :  { %vm2643_vm12 = vmor %vm2641_vm9, %vm2642_vm11  ;;  %2988 = vmatpush.msra.mxu1 %v2942_v53  ;;  %3008 = vmatpush.msrb.mxu2 %v2943_v62 }
0x18f8   :  { %v2637_v16 = vmul.f32 %v3740_v13, %v2636_v0  ;;  %v2937_v0 = vld [vmem:[%s5454_s6 + $0x28] sm:$0xff] }
0x18f9   :  { %2989 = vmatpush.msra.mxu1 %v2939_v10 }
0x18fa   :  { %v2638_v36 = vmul.f32 0.5, %v2637_v16  ;;  %v2934_v16 = vld [vmem:[%s5454_s6 + $0x10] sm:$0xff] }
0x18fc   :  { %v2639_v43 = vsub.f32 1.5, %v2638_v36 }
0x18fe   :  { %v2640_v45 = vmul.f32 %v3740_v13, %v2639_v43 }
0x1900   :  { %v2644_v61 = vsel %vm2643_vm12, %v3740_v13, %v2640_v45  ;;  %v2940_v13 = vld [vmem:[%s5454_s6 + $0x40] sm:$0xff]  ;;  %v2868_v45 = vld [vmem:[%s5450_s2 + $0x8] sm:$0xff] }
0x1901   :  { %v2646_v5 = vmul.f32 %v2644_v61, %v5110_v58  ;;  %3009 = vmatpush.msrb.mxu2 %v2940_v13  ;;  %v3188_v13 = vld [vmem:[%s5454_s6 + $0x218] sm:$0xff] }
0x1903   :  { %v2649_v15 = vmul.f32 %v3645_v26, %v2646_v5  ;;  %v2936_v26 = vld [vmem:[%s5454_s6 + $0x20] sm:$0xff]  ;;  %3010 = vmatpush.msrb.mxu2 %v2937_v0  ;;  %v3186_v0 = vld [vmem:[%s5454_s6 + $0x208] sm:$0xff] }
0x1904   :  { %2990 = vmatpush.msra.mxu1 %v2936_v26 }
0x1905   :  { %3464 = vmatmul.msk.f32.gmra.mxu2 %vm77_vm0, %v2649_v15 }
0x1906   :  { %2991 = vmatpush.msra.mxu1 %v2933_v17  ;;  %3011 = vmatpush.msrb.mxu2 %v2934_v16  ;;  %v3181_v17 = vld [vmem:[%s5454_s6 + $0x1e0] sm:$0xff] }
0x1979   :  { %v2685_v47 = vpop.f32.mrf.mxu2 }
0x197a   :  { %v2691_v49 = vmax.f32 %v2685_v47, 0.0 }
0x197c   :  { %3465 = vmatmul.msk.f32.vlgmr.msrb.gmra.mxu3 %vm555_vm13, %v2691_v49  ;;  %v3487_v49 = vld [vmem:[%s5454_s6 + $0x60] ss:$8 sm:$0x7] }
0x197d   :  { %v2948_v10 = vperm.slane %v3487_v49, 1 }
0x1988   :  { %v2688_v18 = vpop.f32.mrf.mxu2 }
0x1989   :  { %v2692_v35 = vmax.f32 %v2688_v18, 0.0 }
0x198b   :  { %3466 = vmatmul.msk.f32.gmra.mxu3 %vm555_vm13, %v2692_v35 }
0x19ff   :  { %v2716_v21 = vpop.f32.mrf.mxu3 }
0x1a00   :  { %v2722_v60 = vadd.f32 %v2716_v21, %v5104_v2  ;;  %v2902_v2 = vshrl.u32 %v157_v32, 7  ;;  %v3646_v32 = vld [vmem:[%s5453_s5 + $0x418] ss:$0 sm:$0xff]  ;;  %v2947_v21 = vperm.slane %v3487_v49, 0 }
0x1a02   :  { %v2725_v40 = vmul.f32 %v2722_v60, %v2722_v60  ;;  %v2903_v22 = vmul.u32 8, %v2902_v2  ;;  %v2867_v2 = vld [vmem:[%s5450_s2] sm:$0xff] }
0x1a04   :  { %v2727_v41 = vsel %vm77_vm0, %v2725_v40, 0.0 }
0x1a05   :  { %2728 = vadd.xlane.f32.xlu1 %v2727_v41 }
0x1a0e   :  { %v2719_v42 = vpop.f32.mrf.mxu3 }
0x1a0f   :  { %v2723_v19 = vadd.f32 %v2719_v42, %v5110_v58  ;;  %v2904_v58 = vadd.s32 7, %v2903_v22 }
0x1a11   :  { %v2726_v20 = vmul.f32 %v2723_v19, %v2723_v19  ;;  %vm2905_vm1 = vcmp.eq.s32.totalorder %v4016_v34, %v2904_v58 }
0x1a12   :  { %v3485_v23 = vsel %vm2905_vm1, 1.0, %v3832_v37 }
0x1a13   :  { %v2730_v57 = vsel %vm77_vm0, %v2726_v20, 0.0  ;;  %3486 = vmatmul.msk.f32.vlgmr.msrb.gmra.mxu1 %vm2908_vm14, %v3485_v23 }
0x1a14   :  { %2731 = vadd.xlane.f32.xlu0 %v2730_v57  ;;  %3210 = vmatpush.xpose.msrb.mxu1 %v3188_v13  ;;  %v3164_v13 = vld [vmem:[%s5454_s6 + $0x158] sm:$0xff] }
0x1a78   :  { %v2729_v50 = vpop.xlane.xlu1 %2728 }
0x1a79   :  { %v2733_v51 = vmul.f32 %v2729_v50, %v4029_v39 }
0x1a7b   :  { %v2735_v48 = vadd.f32 1e-06, %v2733_v51 }
0x1a7d   :  { %3741 = vrsqrt.f32 %v2735_v48  ;;  %vm2743_vm2 = vweird.f32 %v2735_v48 }
0x1a83   :  { %v3742_v54 = vpop.eup %3741 }
0x1a84   :  { %v2738_v33 = vmul.f32 %v3742_v54, %v2735_v48  ;;  %vm2744_vm15 = vweird.f32 %v3742_v54 }
0x1a85   :  { %vm2745_vm3 = vmor %vm2743_vm2, %vm2744_vm15  ;;  %vm2877_vm2 = vcmask 7168  }
0x1a86   :  { %v2739_v55 = vmul.f32 %v3742_v54, %v2738_v33 }
0x1a87   :  { %v2732_v38 = vpop.xlane.xlu0 %2731 }
0x1a88   :  { %v2740_v63 = vmul.f32 0.5, %v2739_v55  ;;  %v2734_v14 = vmul.f32 %v2732_v38, %v4029_v39 }
0x1a8a   :  { %v2741_v44 = vsub.f32 1.5, %v2740_v63  ;;  %v2736_v30 = vadd.f32 1e-06, %v2734_v14 }
0x1a8c   :  { %v2742_v46 = vmul.f32 %v3742_v54, %v2741_v44  ;;  %3743 = vrsqrt.f32 %v2736_v30  ;;  %vm2753_vm6 = vweird.f32 %v2736_v30 }
0x1a8d   :  { %3745 = vrcp.f32 %v3837_v28  ;;  %v3183_v28 = vld [vmem:[%s5454_s6 + $0x1f0] sm:$0xff] }
0x1a8e   :  { %v2746_v29 = vsel %vm2745_vm3, %v3742_v54, %v2742_v46 }
0x1a8f   :  { %v2757_v39 = vmul.f32 %v2746_v29, %v2722_v60 }
0x1a90   :  { %v2929_v11 = vpop.f32.mrf.mxu1 }
0x1a91   :  { %v2760_v52 = vmul.f32 %v3646_v32, %v2757_v39  ;;  %3488 = vmatmul.msk.f32.vlgmr.msra.gmra.mxu2 %vm77_vm0, %v2929_v11  ;;  %3489 = vmatmul.msk.f32.vlgmr.msra.gmra.mxu1 %vm77_vm0, %v2929_v11 }
0x1a92   :  { %v3744_v7 = vpop.eup %3743  ;;  %3230 = vmatpush.xpose.msra.mxu2 %v3189_v56 }
0x1a93   :  { %v2748_v4 = vmul.f32 %v3744_v7, %v2736_v30  ;;  %v2762_v27 = vmul.f32 0.17677669, %v2760_v52  ;;  %vm2754_vm5 = vweird.f32 %v3744_v7  ;;  %v3746_v18 = vpop.eup %3745 }
0x1a94   :  { %vm2755_vm7 = vmor %vm2753_vm6, %vm2754_vm5  ;;  %v3039_v60 = vmul.f32 2.0, %v3746_v18  ;;  %vm3043_vm4 = vweird.f32 %v3746_v18  ;;  %vm2899_vm5 = vcmask 0  }
0x1a95   :  { %v2749_v59 = vmul.f32 %v3744_v7, %v2748_v4  ;;  %3483 = vmatmul.msk.f32.vlgmr.msrb.gmra.mxu0 %vm77_vm0, %v2762_v27 }
0x1a96   :  { %v3040_v42 = vsub.f32 1.0, %v3039_v60  ;;  %3231 = vmatpush.xpose.msra.mxu2 %v3186_v0  ;;  %v3175_v60 = vld [vmem:[%s5454_s6 + $0x1b0] sm:$0xff]  ;;  %v3162_v0 = vld [vmem:[%s5454_s6 + $0x148] sm:$0xff] }
0x1a97   :  { %v2750_v34 = vmul.f32 0.5, %v2749_v59  ;;  %v3187_v59 = vld [vmem:[%s5454_s6 + $0x210] sm:$0xff] }
0x1a98   :  { %v3041_v51 = vmul.f32 %v3746_v18, %v3040_v42  ;;  %3190 = vmatpush.xpose.msra.mxu3 %v3187_v59 }
0x1a99   :  { %v2751_v37 = vsub.f32 1.5, %v2750_v34  ;;  %3490 = vmatmul.msk.f32.vlgmr.msrb.gmra.mxu2 %vm77_vm0, %v2929_v11  ;;  %v2949_v34 = vperm.slane %v3487_v49, 2 }
0x1a9a   :  { %v3042_v22 = vadd.f32 %v3746_v18, %v3041_v51  ;;  %3232 = vmatpush.xpose.msra.mxu2 %v3183_v28  ;;  %v3179_v51 = vld [vmem:[%s5454_s6 + $0x1d0] sm:$0xff] }
0x1a9b   :  { %v2752_v1 = vmul.f32 %v3744_v7, %v2751_v37 }
0x1a9c   :  { %v5240_v44 = vsel %vm3043_vm4, %v3746_v18, %v3042_v22  ;;  %3191 = vmatpush.xpose.msra.mxu3 %v3184_v31 }
0x1a9d   :  { %v2756_v3 = vsel %vm2755_vm7, %v3744_v7, %v2752_v1 }
0x1a9e   :  { %v2758_v9 = vmul.f32 %v2756_v3, %v2723_v19 }
0x1aa0   :  { %v2761_v8 = vmul.f32 %v3646_v32, %v2758_v9  ;;  %3192 = vmatpush.xpose.msra.mxu3 %v3181_v17  ;;  %v3157_v17 = vld [vmem:[%s5454_s6 + $0x120] sm:$0xff] }
0x1aa2   :  { %v2763_v6 = vmul.f32 0.17677669, %v2761_v8 }
0x1aa4   :  { %3484 = vmatmul.msk.f32.gmra.mxu0 %vm77_vm0, %v2763_v6  ;;  %vm3016_vm0 = vcmask 1041408  }
0x1b0e   :  { %v2993_v24 = vpop.f32.mrf.mxu1 }
0x1b0f   :  { %v2994_v62 = vadd.f32 %v2993_v24, %v2948_v10  ;;  %v3160_v10 = vld [vmem:[%s5454_s6 + $0x138] sm:$0xff]  ;;  %v3167_v24 = vld [vmem:[%s5454_s6 + $0x170] sm:$0xff] }
0x1b12   :  { %v2835_v36 = vpop.f32.mrf.mxu0 }
0x1b13   :  { %2841 = vst [vmem:[%s5455_s7] sm:$0xff] %v2835_v36  ;;  %v2843_v43 = vsel %vm555_vm13, %v2835_v36, -inf  ;;  %v2869_v14 = vmul.f32 %v2867_v2, %v2835_v36 }
0x1b14   :  { %2844 = vmax.xlane.f32.xlu2 %v2843_v43  ;;  %v2973_v40 = vpop.f32.mrf.mxu2 }
0x1b15   :  { %v2974_v41 = vadd.f32 %v2973_v40, %v2947_v21  ;;  %v3182_v40 = vld [vmem:[%s5454_s6 + $0x1e8] sm:$0xff] }
0x1b17   :  { %v3017_v20 = vsel %vm3016_vm0, %v2974_v41, 0.0 }
0x1b18   :  { %v3018_v50 = vrot.slane %v3017_v20, 4 }
0x1b1a   :  { %v3019_v48 = vadd.f32 %v3018_v50, %v3017_v20  ;;  %v3172_v50 = vld [vmem:[%s5454_s6 + $0x198] sm:$0xff] }
0x1b1c   :  { %v3020_v55 = vrot.slane %v3019_v48, 2  ;;  %v3013_v37 = vpop.f32.mrf.mxu2 }
0x1b1d   :  { %v3014_v1 = vadd.f32 %v3013_v37, %v2949_v34 }
0x1b1e   :  { %v3021_v63 = vadd.f32 %v3020_v55, %v3019_v48  ;;  %v3177_v48 = vld [vmem:[%s5454_s6 + $0x1c0] sm:$0xff] }
0x1b1f   :  { %v3031_v9 = vsel %vm3016_vm0, %v3014_v1, 0.0 }
0x1b20   :  { %v3022_v58 = vrot.slane %v3021_v63, 1  ;;  %v3032_v8 = vrot.slane %v3031_v9, 4 }
0x1b21   :  { %v2838_v61 = vpop.f32.mrf.mxu0 }
0x1b22   :  { %2842 = vst [vmem:[%s5455_s7 + $0x8] sm:$0xff] %v2838_v61  ;;  %v2846_v5 = vsel %vm555_vm13, %v2838_v61, -inf  ;;  %v2870_v15 = vmul.f32 %v2868_v45, %v2838_v61  ;;  %v3023_v30 = vadd.f32 %v3022_v58, %v3021_v63  ;;  %v3033_v25 = vadd.f32 %v3032_v8, %v3031_v9  ;;  %v3176_v63 = vld [vmem:[%s5454_s6 + $0x1b8] sm:$0xff]  ;;  %v3170_v9 = vld [vmem:[%s5454_s6 + $0x188] sm:$0xff] }
0x1b23   :  { %2847 = vmax.xlane.f32.xlu0 %v2846_v5  ;;  %v3178_v5 = vld [vmem:[%s5454_s6 + $0x1c8] sm:$0xff]  ;;  %v3168_v8 = vld [vmem:[%s5454_s6 + $0x178] sm:$0xff] }
0x1b24   :  { %2873 = vadd.xlane.f32.xlu1 %v2870_v15  ;;  %v3045_v23 = vmul.f32 %v5240_v44, %v3023_v30  ;;  %v3034_v53 = vrot.slane %v3033_v25, 2  ;;  %v3185_v15 = vld [vmem:[%s5454_s6 + $0x200] sm:$0xff]  ;;  %3193 = vmatpush.xpose.msra.mxu3 %v3178_v5 }
0x1b25   :  { %3211 = vmatpush.xpose.msrb.mxu1 %v3185_v15  ;;  %v3159_v15 = vld [vmem:[%s5454_s6 + $0x130] sm:$0xff] }
0x1b26   :  { %v5243_v32 = vsub.f32 %v2974_v41, %v3045_v23  ;;  %v3035_v11 = vadd.f32 %v3034_v53, %v3033_v25  ;;  %v3180_v41 = vld [vmem:[%s5454_s6 + $0x1d8] sm:$0xff] }
0x1b27   :  { %3233 = vmatpush.xpose.msra.mxu2 %v3180_v41 }
0x1b28   :  { %v3051_v39 = vmul.f32 %v5243_v32, %v5243_v32  ;;  %v3036_v16 = vrot.slane %v3035_v11, 1  ;;  %3194 = vmatpush.xpose.msra.mxu3 %v3175_v60  ;;  %v3158_v60 = vld [vmem:[%s5454_s6 + $0x128] sm:$0xff] }
0x1b29   :  { %3212 = vmatpush.xpose.msrb.mxu1 %v3182_v40  ;;  %v3156_v40 = vld [vmem:[%s5454_s6 + $0x118] sm:$0xff] }
0x1b2a   :  { %v3054_v52 = vsel %vm3016_vm0, %v3051_v39, 0.0  ;;  %v3166_v39 = vld [vmem:[%s5454_s6 + $0x168] sm:$0xff] }
0x1b2b   :  { %v3055_v7 = vrot.slane %v3054_v52, 4  ;;  %3234 = vmatpush.xpose.msra.mxu2 %v3177_v48 }
0x1b2c   :  { %3195 = vmatpush.xpose.msra.mxu3 %v3172_v50  ;;  %v3155_v50 = vld [vmem:[%s5454_s6 + $0x110] sm:$0xff] }
0x1b2d   :  { %v3056_v4 = vadd.f32 %v3055_v7, %v3054_v52  ;;  %3213 = vmatpush.xpose.msrb.mxu1 %v3179_v51  ;;  %v3173_v52 = vld [vmem:[%s5454_s6 + $0x1a0] sm:$0xff]  ;;  %v3171_v7 = vld [vmem:[%s5454_s6 + $0x190] sm:$0xff] }
0x1b2e   :  { %v3153_v51 = vld [vmem:[%s5454_s6 + $0x100] sm:$0xff] }
0x1b2f   :  { %v3057_v27 = vrot.slane %v3056_v4, 2 }
0x1b31   :  { %v3058_v3 = vadd.f32 %v3057_v27, %v3056_v4  ;;  %3214 = vmatpush.xpose.msrb.mxu1 %v3176_v63 }
0x1b33   :  { %v3059_v6 = vrot.slane %v3058_v3, 1 }
0x1b35   :  { %v3060_v26 = vadd.f32 %v3059_v6, %v3058_v3  ;;  %3215 = vmatpush.xpose.msrb.mxu1 %v3173_v52  ;;  %v3163_v3 = vld [vmem:[%s5454_s6 + $0x150] sm:$0xff] }
0x1b37   :  { %v3075_v45 = vmul.f32 %v3060_v26, %v5240_v44  ;;  %v3165_v26 = vld [vmem:[%s5454_s6 + $0x160] sm:$0xff] }
0x1b39   :  { %3216 = vmatpush.xpose.msrb.mxu1 %v3170_v9 }
0x1b3d   :  { %3217 = vmatpush.xpose.msrb.mxu1 %v3167_v24 }
0x1b41   :  { %3218 = vmatpush.xpose.msrb.mxu1 %v3164_v13 }
0x1b87   :  { %v5226_v12 = vpop.xlane.xlu2 %2844 }
0x1b88   :  { %v2849_v47 = vsub.f32 %v2835_v36, %v5226_v12  ;;  %v3024_v36 = vsel %vm3016_vm0, %v2994_v62, 0.0 }
0x1b89   :  { %v3025_v43 = vrot.slane %v3024_v36, 4 }
0x1b8a   :  { %v2851_v35 = vmul.f32 1.442695, %v2849_v47 }
0x1b8b   :  { %v3026_v47 = vadd.f32 %v3025_v43, %v3024_v36 }
0x1b8c   :  { %3747 = vpow2.f32 %v2851_v35  ;;  %v5280_v35 = vadd.f32 1e-05, %v3075_v45  ;;  %v3154_v45 = vld [vmem:[%s5454_s6 + $0x108] sm:$0xff] }
0x1b8d   :  { %v3027_v18 = vrot.slane %v3026_v47, 2 }
0x1b8f   :  { %v3028_v42 = vadd.f32 %v3027_v18, %v3026_v47 }
0x1b91   :  { %v3029_v20 = vrot.slane %v3028_v42, 1 }
0x1b92   :  { %v3748_v19 = vpop.eup %3747 }
0x1b93   :  { %v2855_v57 = vsel %vm555_vm13, %v3748_v19, 0.0  ;;  %v3030_v2 = vadd.f32 %v3029_v20, %v3028_v42 }
0x1b94   :  { %2856 = vadd.xlane.f32.xlu2 %v2855_v57 }
0x1b95   :  { %v3046_v22 = vmul.f32 %v5240_v44, %v3030_v2 }
0x1b96   :  { %v5234_v54 = vpop.xlane.xlu0 %2847 }
0x1b97   :  { %v2850_v33 = vsub.f32 %v2838_v61, %v5234_v54  ;;  %v3037_v61 = vadd.f32 %v3036_v16, %v3035_v11  ;;  %v5316_v30 = vsub.f32 %v2994_v62, %v3046_v22 }
0x1b99   :  { %v2853_v38 = vmul.f32 1.442695, %v2850_v33  ;;  %v3047_v49 = vmul.f32 %v5240_v44, %v3037_v61  ;;  %v3161_v61 = vld [vmem:[%s5454_s6 + $0x140] sm:$0xff] }
0x1b9a   :  { %3219 = vmatpush.xpose.msrb.mxu1 %v3161_v61 }
0x1b9b   :  { %3749 = vpow2.f32 %v2853_v38  ;;  %v5282_v21 = vsub.f32 %v3014_v1, %v3047_v49  ;;  %v3169_v38 = vld [vmem:[%s5454_s6 + $0x180] sm:$0xff] }
0x1b9c   :  { %2871 = vadd.xlane.f32.xlu2 %v2869_v14  ;;  %3751 = vrsqrt.f32 %v5280_v35  ;;  %v3174_v14 = vld [vmem:[%s5454_s6 + $0x1a8] sm:$0xff]  ;;  %3196 = vmatpush.xpose.msra.mxu3 %v3169_v38 }
0x1b9d   :  { %v3053_v19 = vmul.f32 %v5282_v21, %v5282_v21  ;;  %3235 = vmatpush.xpose.msra.mxu2 %v3174_v14 }
0x1b9e   :  { %3220 = vmatpush.xpose.msrb.mxu1 %v3158_v60 }
0x1b9f   :  { %v3068_v57 = vsel %vm3016_vm0, %v3053_v19, 0.0  ;;  %v3491_v19 = vld [vmem:[%s5454_s6 + $0x78] ss:$8 sm:$0x7] }
0x1ba0   :  { %v3069_v33 = vrot.slane %v3068_v57, 4  ;;  %3197 = vmatpush.xpose.msra.mxu3 %v3166_v39  ;;  %v3117_v2 = vperm.slane %v3491_v19, 0  ;;  %v3119_v22 = vperm.slane %v3491_v19, 2 }
0x1ba1   :  { %v3750_v46 = vpop.eup %3749  ;;  %3236 = vmatpush.xpose.msra.mxu2 %v3171_v7 }
0x1ba2   :  { %v2858_v29 = vsel %vm555_vm13, %v3750_v46, 0.0  ;;  %v3070_v55 = vadd.f32 %v3069_v33, %v3068_v57  ;;  %v5318_v23 = vpop.eup %3751  ;;  %vm3087_vm13 = vweird.f32 %v5280_v35  ;;  %v3148_v57 = vld [vmem:[%s5454_s6 + $0xd8] sm:$0xff]  ;;  %3221 = vmatpush.xpose.msrb.mxu1 %v3155_v50 }
0x1ba3   :  { %2859 = vadd.xlane.f32.xlu0 %v2858_v29  ;;  %v3052_v29 = vmul.f32 %v5316_v30, %v5316_v30  ;;  %v3082_v4 = vmul.f32 %v5318_v23, %v5280_v35  ;;  %vm3088_vm8 = vweird.f32 %v5318_v23  ;;  %v3151_v35 = vld [vmem:[%s5454_s6 + $0xf0] sm:$0xff] }
0x1ba4   :  { %v3071_v58 = vrot.slane %v3070_v55, 2  ;;  %3198 = vmatpush.xpose.msra.mxu3 %v3163_v3  ;;  %vm5376_vm10 = vmor %vm3087_vm13, %vm3088_vm8 }
0x1ba5   :  { %v3061_v59 = vsel %vm3016_vm0, %v3052_v29, 0.0  ;;  %v3083_v6 = vmul.f32 %v5318_v23, %v3082_v4  ;;  %3237 = vmatpush.xpose.msra.mxu2 %v3168_v8  ;;  %v3152_v29 = vld [vmem:[%s5454_s6 + $0xf8] sm:$0xff]  ;;  %v3118_v8 = vperm.slane %v3491_v19, 1 }
0x1ba6   :  { %v3072_v46 = vadd.f32 %v3071_v58, %v3070_v55  ;;  %v3062_v34 = vrot.slane %v3061_v59, 4  ;;  %v3492_v58 = vld [vmem:[%s5454_s6 + $0x90] ss:$8 sm:$0x7]  ;;  %3222 = vmatpush.xpose.msrb.mxu1 %v3152_v29 }
0x1ba7   :  { %v3084_v11 = vmul.f32 0.5, %v3083_v6  ;;  %v3131_v52 = vperm.slane %v3492_v58, 2  ;;  %v3129_v4 = vperm.slane %v3492_v58, 0 }
0x1ba8   :  { %v3073_v27 = vrot.slane %v3072_v46, 1  ;;  %v3063_v1 = vadd.f32 %v3062_v34, %v3061_v59  ;;  %3199 = vmatpush.xpose.msra.mxu3 %v3160_v10  ;;  %v3142_v59 = vld [vmem:[%s5454_s6 + $0xa8] sm:$0xff]  ;;  %v3149_v34 = vld [vmem:[%s5454_s6 + $0xe0] sm:$0xff]  ;;  %v3144_v10 = vld [vmem:[%s5454_s6 + $0xb8] sm:$0xff] }
0x1ba9   :  { %3238 = vmatpush.xpose.msra.mxu2 %v3165_v26  ;;  %v3085_v36 = vsub.f32 1.5, %v3084_v11 }
0x1baa   :  { %v3074_v37 = vadd.f32 %v3073_v27, %v3072_v46  ;;  %v3064_v31 = vrot.slane %v3063_v1, 2  ;;  %3223 = vmatpush.xpose.msrb.mxu1 %v3149_v34 }
0x1bab   :  { %v3086_v47 = vmul.f32 %v5318_v23, %v3085_v36 }
0x1bac   :  { %v3077_v25 = vmul.f32 %v3074_v37, %v5240_v44  ;;  %v3065_v53 = vadd.f32 %v3064_v31, %v3063_v1  ;;  %3200 = vmatpush.xpose.msra.mxu3 %v3157_v17  ;;  %v3147_v37 = vld [vmem:[%s5454_s6 + $0xd0] sm:$0xff] }
0x1bad   :  { %3239 = vmatpush.xpose.msra.mxu2 %v3162_v0  ;;  %v3090_v42 = vsel %vm5376_vm10, %v5318_v23, %v3086_v47 }
0x1bae   :  { %v3080_v56 = vadd.f32 1e-05, %v3077_v25  ;;  %v3066_v62 = vrot.slane %v3065_v53, 1  ;;  %v3111_v33 = vmul.f32 %v3090_v42, %v5243_v32  ;;  %v3145_v32 = vld [vmem:[%s5454_s6 + $0xc0] sm:$0xff] }
0x1bb0   :  { %3753 = vrsqrt.f32 %v3080_v56  ;;  %v3067_v16 = vadd.f32 %v3066_v62, %v3065_v53  ;;  %3201 = vmatpush.xpose.msra.mxu3 %v3154_v45  ;;  %vm3107_vm11 = vweird.f32 %v3080_v56  ;;  %v3123_v46 = vmul.f32 %v3117_v2, %v3111_v33  ;;  %v3146_v53 = vld [vmem:[%s5454_s6 + $0xc8] sm:$0xff]  ;;  %v3143_v62 = vld [vmem:[%s5454_s6 + $0xb0] sm:$0xff] }
0x1bb1   :  { %3240 = vmatpush.xpose.msra.mxu2 %v3159_v15  ;;  %3224 = vmatpush.xpose.msrb.mxu1 %v3146_v53  ;;  %v3839_v2 = vmov 16.0  }
0x1bb2   :  { %v3076_v43 = vmul.f32 %v3067_v16, %v5240_v44  ;;  %v3135_v1 = vadd.f32 %v3129_v4, %v3123_v46 }
0x1bb4   :  { %v3079_v44 = vadd.f32 1e-05, %v3076_v43  ;;  %3202 = vmatpush.xpose.msra.mxu3 %v3151_v35  ;;  %v3138_v6 = vmax.f32 %v3135_v1, 0.0  ;;  %v3141_v35 = vld [vmem:[%s5454_s6 + $0x228] ss:$0 sm:$0xff] }
0x1bb5   :  { %3241 = vmatpush.xpose.msra.mxu2 %v3156_v40  ;;  %3225 = vmatpush.xpose.msrb.mxu1 %v3143_v62 }
0x1bb6   :  { %v3754_v5 = vpop.eup %3753  ;;  %3755 = vrsqrt.f32 %v3079_v44  ;;  %vm3097_vm14 = vweird.f32 %v3079_v44 }
0x1bb7   :  { %v3102_v28 = vmul.f32 %v3754_v5, %v3080_v56  ;;  %vm3108_vm9 = vweird.f32 %v3754_v5  ;;  %v3130_v56 = vperm.slane %v3492_v58, 1 }
0x1bb8   :  { %vm3109_vm12 = vmor %vm3107_vm11, %vm3108_vm9  ;;  %3203 = vmatpush.xpose.msra.mxu3 %v3148_v57 }
0x1bb9   :  { %v3103_v18 = vmul.f32 %v3754_v5, %v3102_v28  ;;  %3242 = vmatpush.xpose.msra.mxu2 %v3153_v51  ;;  %v2874_v28 = vpop.xlane.xlu1 %2873 }
0x1bbb   :  { %v3104_v41 = vmul.f32 0.5, %v3103_v18 }
0x1bbc   :  { %v3756_v48 = vpop.eup %3755  ;;  %3204 = vmatpush.xpose.msra.mxu3 %v3145_v32 }
0x1bbd   :  { %v3105_v20 = vsub.f32 1.5, %v3104_v41  ;;  %v3092_v38 = vmul.f32 %v3756_v48, %v3079_v44  ;;  %vm3098_vm15 = vweird.f32 %v3756_v48 }
0x1bbe   :  { %vm3099_vm1 = vmor %vm3097_vm14, %vm3098_vm15 }
0x1bbf   :  { %v3106_v55 = vmul.f32 %v3754_v5, %v3105_v20  ;;  %v3093_v23 = vmul.f32 %v3756_v48, %v3092_v38 }
0x1bc0   :  { %3205 = vmatpush.xpose.msra.mxu3 %v3142_v59 }
0x1bc1   :  { %v3110_v63 = vsel %vm3109_vm12, %v3754_v5, %v3106_v55  ;;  %v3094_v7 = vmul.f32 0.5, %v3093_v23 }
0x1bc2   :  { %v3113_v14 = vmul.f32 %v3110_v63, %v5282_v21  ;;  %v3150_v21 = vld [vmem:[%s5454_s6 + $0xe8] sm:$0xff]  ;;  %s3840_s6 = smov [#allocation4]  }
0x1bc3   :  { %3243 = vmatpush.xpose.msra.mxu2 %v3150_v21  ;;  %v3095_v27 = vsub.f32 1.5, %v3094_v7  ;;  %3206 = vmatmul.f32.vlgmr.msra.gmra.mxu3 %v3138_v6  ;;  %s3269_s8 = sshll.u32 %s3840_s6, 4  ;;  %s3270_s8 = int_to_ptr.vmem [resolvable:$true] %s3269_s8 }
0x1bc4   :  { %v3125_v39 = vmul.f32 %v3119_v22, %v3113_v14 }
0x1bc5   :  { %v3096_v9 = vmul.f32 %v3756_v48, %v3095_v27 }
0x1bc6   :  { %v3137_v3 = vadd.f32 %v3131_v52, %v3125_v39 }
0x1bc7   :  { %3244 = vmatpush.xpose.msra.mxu2 %v3147_v37  ;;  %v3100_v25 = vsel %vm3099_vm1, %v3756_v48, %v3096_v9 }
0x1bc8   :  { %v3112_v31 = vmul.f32 %v3100_v25, %v5316_v30  ;;  %v3140_v24 = vmax.f32 %v3137_v3, 0.0 }
0x1bca   :  { %v3124_v26 = vmul.f32 %v3118_v8, %v3112_v31 }
0x1bcb   :  { %3245 = vmatpush.xpose.msra.mxu2 %v3144_v10 }
0x1bcc   :  { %v3136_v11 = vadd.f32 %v3130_v56, %v3124_v26 }
0x1bce   :  { %3246 = vmatmul.f32.vlgmr.msra.gmra.mxu2 %v3140_v24  ;;  %v3139_v30 = vmax.f32 %v3136_v11, 0.0 }
0x1bd0   :  { %3226 = vmatmul.f32.vlgmr.msrb.gmra.mxu1 %v3139_v30 }
0x1c07   :  { %v2857_v17 = vpop.xlane.xlu2 %2856 }
0x1c08   :  { %3757 = vlog2.f32 %v2857_v17 }
0x1c0e   :  { %v3758_v13 = vpop.eup %3757 }
0x1c0f   :  { %v2862_v16 = vmul.f32 0.6931472, %v3758_v13  ;;  %v2872_v61 = vpop.xlane.xlu2 %2871 }
0x1c11   :  { %v2865_v36 = vadd.f32 %v2862_v16, %v5226_v12 }
0x1c13   :  { %v2875_v5 = vsub.f32 %v2865_v36, %v2872_v61 }
0x1c15   :  { %v2878_v47 = vsel %vm2877_vm2, %v2875_v5, 0.0 }
0x1c16   :  { %v2860_v0 = vpop.xlane.xlu0 %2859 }
0x1c17   :  { %3759 = vlog2.f32 %v2860_v0 }
0x1c18   :  { %3761 = vrcp.f32 %v3839_v2 }
0x1c1d   :  { %v3760_v43 = vpop.eup %3759 }
0x1c1e   :  { %v2864_v45 = vmul.f32 0.6931472, %v3760_v43  ;;  %v3762_v55 = vpop.eup %3761 }
0x1c1f   :  { %v2892_v22 = vmul.f32 16.0, %v3762_v55  ;;  %vm2896_vm3 = vweird.f32 %v3762_v55 }
0x1c20   :  { %v2866_v15 = vadd.f32 %v2864_v45, %v5234_v54 }
0x1c21   :  { %v2893_v38 = vsub.f32 1.0, %v2892_v22 }
0x1c22   :  { %v2876_v44 = vsub.f32 %v2866_v15, %v2874_v28 }
0x1c23   :  { %v2894_v63 = vmul.f32 %v3762_v55, %v2893_v38 }
0x1c24   :  { %v2879_v49 = vsel %vm2877_vm2, %v2876_v44, 0.0 }
0x1c25   :  { %v2880_v18 = vadd.f32 %v2879_v49, %v2878_v47  ;;  %v2895_v14 = vadd.f32 %v3762_v55, %v2894_v63 }
0x1c27   :  { %2881 = vadd.xlane.f32.xlu0 %v2880_v18  ;;  %v2897_v58 = vsel %vm2896_vm3, %v3762_v55, %v2895_v14 }
0x1c46   :  { %v3207_v60 = vpop.f32.mrf.mxu3 }
0x1c47   :  { %v3208_v40 = vadd.f32 %v3207_v60, %v3141_v35 }
0x1c4d   :  { %v3227_v12 = vpop.f32.mrf.mxu1 }
0x1c4e   :  { %v3228_v41 = vadd.f32 %v3227_v12, %v3208_v40 }
0x1c51   :  { %v3247_v54 = vpop.f32.mrf.mxu2 }
0x1c52   :  { %v3248_v42 = vadd.f32 %v3247_v54, %v3228_v41 }
0x1c54   :  { %3250 = vst [vmem:[#allocation2] sm:$0x3] %v3248_v42 }
0x1c55   :  { %3263 = dma.vmem_to_hbm [thread:$0]  %s3259_s21, 32, %s3261_s23, [#allocation3]  }
0x1c9a   :  { %v2882_v19 = vpop.xlane.xlu0 %2881 }
0x1c9b   :  { %v2883_v20 = vrot.slane %v2882_v19, 4 }
0x1c9d   :  { %v2884_v57 = vadd.f32 %v2883_v20, %v2882_v19 }
0x1c9f   :  { %v2885_v50 = vrot.slane %v2884_v57, 2 }
0x1ca1   :  { %v2886_v51 = vadd.f32 %v2885_v50, %v2884_v57 }
0x1ca3   :  { %v2887_v48 = vrot.slane %v2886_v51, 1 }
0x1ca5   :  { %v2888_v33 = vadd.f32 %v2887_v48, %v2886_v51 }
0x1ca7   :  { %3493 = vpush %v2888_v33 }
0x1cd8   :  { %s3494_s7 = spop %3493 }
0x1cd9   :  { %v2890_v23 = vstv %s3494_s7 }
0x1cda   :  { %v2898_v46 = vmul.f32 %v2897_v58, %v2890_v23 }
0x1cdc   :  { %2900 = vst.msk [vmem:[#allocation4] sm:$0x1] %vm2899_vm5, %v2898_v46 }
0x1cdd   :  { %3274 = dma.vmem_to_hbm [thread:$0]  %s3270_s8, 16, %s3272_s24, [#allocation5]  }
0x1cde   :  { %3827 = dma.done.wait [#allocation3], 32  }
0x1cdf   :  { %3828 = vsyncadd [#allocation3], 4294967264 }
0x1ce0   :  { %3829 = dma.done.wait [#allocation5], 16  }
0x1ce1   :  { %3830 = vsyncadd [#allocation5], 4294967280 }
0x1ce2   :  { %3285 = vsyncpa [#allocation3], 1 }
0x1ce3   :  { %3286 = vsyncpa [#allocation5], 1 }

</bundles_post_ra>
